<compile_context>
chip_gen: v6e
topology: v6e:2x2x1
jax: 0.10.0
libtpu: 0.0.40
codegen_flags: <defaults>
</compile_context>

<pallas_src>
import jax
import jax.numpy as jnp
from jax.experimental import pallas as pl
from jax.experimental.pallas import tpu as pltpu

# ---- model hyperparameters ----
NODES = 8              # nodes per graph
NODE_SHIFT = 3         # log2(NODES)
IN_FEATURES = 16
HIDDEN = 32
N_CLASSES = 4
HEADS = 2
C1 = HIDDEN // HEADS   # per-head channels, layer 0 (concat=True)
C2 = N_CLASSES         # per-head channels, layer 1 (concat=False)
NEG_SLOPE = 0.2        # GATConv LeakyReLU default
BN_EPS = 1e-5
NEG_BIG = -1e30        # additive mask value for non-edges
LANES = 128

# ---- packed-parameter layout: ONE lane-dense [P_ROWS, 128] f32 slab, single DMA ----
R_W1 = 0                       # rows  0:16  cols 0:32 = W1, 32:34 = W1@a1_dst, 34:36 = W1@a1_src
R_W2 = R_W1 + IN_FEATURES      # rows 16:48  cols 0:8  = W2,  8:10 = W2@a2_dst, 10:12 = W2@a2_src
R_VEC = R_W2 + HIDDEN          # rows 48:56  b1 / bn_gamma / bn_beta / head0-lane-mask / b2
P_ROWS = R_VEC + 8


def _head_softmax(adst_col, asrc_row, adj_add):
    """Unnormalized masked attention + reciprocal denominator for one head.

    adst_col: [NB, 1], asrc_row: [1, NB], adj_add: additive mask (0 / -1e30).
    Returns (pu [NB, NB], rden [NB, 1]) with softmax == pu * rden row-wise.
    """
    e = adst_col + asrc_row
    e = jnp.maximum(e, NEG_SLOPE * e)             # LeakyReLU without compare/select
    e = e + adj_add                               # block-diagonal edge mask
    m = jnp.max(e, axis=1, keepdims=True)
    pu = jnp.exp(e - m)
    rden = pl.reciprocal(jnp.sum(pu, axis=1, keepdims=True), approx=True)  # EUP
    return pu, rden


def gnn_kernel(x_ref, adj_ref, p_ref, out_ref):
    nb = x_ref.shape[0]                                               # GROUP * NODES
    x = x_ref[...]                                                    # [nb, IN_FEATURES]

    # ---- static views into the packed parameter slab ----
    w1aug = p_ref[pl.ds(R_W1, IN_FEATURES), :]                        # [16, 128]
    w2aug = p_ref[pl.ds(R_W2, HIDDEN), :]                             # [32, 128]
    vecs = p_ref[pl.ds(R_VEC, 8), :]                                  # [ 8, 128]
    b1 = vecs[0:1, :HIDDEN]
    bn_g = vecs[1:2, :HIDDEN]
    bn_b = vecs[2:3, :HIDDEN]
    mask0 = vecs[3:4, :HIDDEN]                                        # 1.0 on head-0 lanes of layer 0
    b2 = vecs[4:5, :N_CLASSES]

    # ---- block-diagonal additive edge mask, synthesized in-kernel (never stored in HBM) ----
    adjflat = adj_ref[...]                                            # [nb, NODES] rows grouped by graph
    col8 = jax.lax.broadcasted_iota(jnp.int32, (NODES, nb), 1)
    sel = (jax.lax.broadcasted_iota(jnp.int32, (NODES, nb), 0)
           == (col8 & (NODES - 1))).astype(jnp.float32)               # [NODES, nb] column replicator
    adj_full = jnp.dot(adjflat, sel, preferred_element_type=jnp.float32)  # [nb, nb]: adj[g_r, i_r, c%8]
    rg = jax.lax.broadcasted_iota(jnp.int32, (nb, nb), 0) >> NODE_SHIFT   # graph id of dst row
    cg = jax.lax.broadcasted_iota(jnp.int32, (nb, nb), 1) >> NODE_SHIFT   # graph id of src col
    edge = jnp.logical_and(rg == cg, adj_full > 0.5)
    adj_add = jnp.where(edge, 0.0, NEG_BIG)                           # [nb, nb], reused by both layers

    # ---- GATConv layer 0 (heads concatenated); one fused matmul -> features + alphas ----
    h1full = jnp.dot(x, w1aug, preferred_element_type=jnp.float32)    # [nb, 128]
    h1 = h1full[:, :HIDDEN]                                           # [nb, 32]
    asrc1 = jnp.transpose(h1full[:, HIDDEN + HEADS:HIDDEN + 2 * HEADS])   # [2, nb]
    h1m0 = h1 * mask0                                                 # head-0 lane block
    h1m1 = h1 - h1m0                                                  # head-1 lane block

    pu0, r0 = _head_softmax(h1full[:, HIDDEN + 0:HIDDEN + 1], asrc1[0:1, :], adj_add)
    pu1, r1 = _head_softmax(h1full[:, HIDDEN + 1:HIDDEN + 2], asrc1[1:2, :], adj_add)
    # Masked aggregation lands each head directly in its lane block -> concat with no lane shuffle.
    x1 = (jnp.dot(pu0, h1m0, preferred_element_type=jnp.float32) * r0
          + jnp.dot(pu1, h1m1, preferred_element_type=jnp.float32) * r1
          + b1)                                                       # [nb, HIDDEN]

    # ---- BatchNorm over this step's nodes (training-mode batch statistics, two-pass) ----
    mean = jnp.mean(x1, axis=0, keepdims=True)
    xc = x1 - mean
    var = jnp.mean(xc * xc, axis=0, keepdims=True)
    x1 = xc * (bn_g * jax.lax.rsqrt(var + BN_EPS)) + bn_b

    # ---- GATConv layer 1 (mean over heads, concat=False); fused features + alphas ----
    d2 = HEADS * C2
    h2full = jnp.dot(x1, w2aug, preferred_element_type=jnp.float32)   # [nb, 128], cols 0:8 features
    asrc2 = jnp.transpose(h2full[:, d2 + HEADS:d2 + 2 * HEADS])       # [2, nb]

    pu0, r0 = _head_softmax(h2full[:, d2 + 0:d2 + 1], asrc2[0:1, :], adj_add)
    pu1, r1 = _head_softmax(h2full[:, d2 + 1:d2 + 2], asrc2[1:2, :], adj_add)
    # TODO(synk): could cast pu*/h* to bf16 for the v6e/v7x MXU; kept f32 for reference parity.
    x2 = (jnp.dot(pu0, h2full[:, 0:C2], preferred_element_type=jnp.float32) * r0
          + jnp.dot(pu1, h2full[:, C2:2 * C2], preferred_element_type=jnp.float32) * r1) * (1.0 / HEADS)
    x2 = x2 + b2                                                      # [nb, N_CLASSES]

    # ---- LogSoftmax(dim=1) ----
    m = jnp.max(x2, axis=1, keepdims=True)
    z = x2 - m
    lse = jnp.log(jnp.sum(jnp.exp(z), axis=1, keepdims=True))
    out_ref[...] = z - lse                # narrow (4-lane) store; tiny writeback, acceptable


def pack_params(params):
    """Pack all parameters + fused [W | W@A] attention projections into one [56, 128] slab."""
    A1 = jnp.zeros((HEADS * C1, 2 * HEADS), jnp.float32)
    A2 = jnp.zeros((HEADS * C2, 2 * HEADS), jnp.float32)
    for hd in range(HEADS):
        A1 = A1.at[hd * C1:(hd + 1) * C1, hd].set(params["a1d"][hd])
        A1 = A1.at[hd * C1:(hd + 1) * C1, HEADS + hd].set(params["a1s"][hd])
        A2 = A2.at[hd * C2:(hd + 1) * C2, hd].set(params["a2d"][hd])
        A2 = A2.at[hd * C2:(hd + 1) * C2, HEADS + hd].set(params["a2s"][hd])
    w1, w2 = params["w1"], params["w2"]

    P = jnp.zeros((P_ROWS, LANES), jnp.float32)
    P = P.at[R_W1:R_W1 + IN_FEATURES, :HIDDEN].set(w1)
    P = P.at[R_W1:R_W1 + IN_FEATURES, HIDDEN:HIDDEN + 2 * HEADS].set(w1 @ A1)   # fused alphas
    P = P.at[R_W2:R_W2 + HIDDEN, :HEADS * C2].set(w2)
    P = P.at[R_W2:R_W2 + HIDDEN, HEADS * C2:HEADS * C2 + 2 * HEADS].set(w2 @ A2)
    P = P.at[R_VEC + 0, :HIDDEN].set(params["b1"][0])
    P = P.at[R_VEC + 1, :HIDDEN].set(params["bn_g"][0])
    P = P.at[R_VEC + 2, :HIDDEN].set(params["bn_b"][0])
    P = P.at[R_VEC + 3, :C1].set(1.0)                      # head-0 lane mask, layer 0
    P = P.at[R_VEC + 4, :N_CLASSES].set(params["b2"][0])
    return P


def gnn_forward(x, adj_flat, packed_params, *, graphs_per_step=16):
    """x: [n_graphs*8, IN_FEATURES]; adj_flat: [n_graphs*8, 8] (adj[g,i,:] with self loops).

    Each grid step is one independent batched forward over `graphs_per_step` graphs
    (disjoint-union graph; BatchNorm statistics over that step's nodes). The grid axis is
    'parallel' so v7x shards groups across both TensorCores. Use graphs_per_step=16 (128-row
    matmuls) for v5e, >=32 for v6e/v7x.
    """
    n_nodes = x.shape[0]
    n_graphs = n_nodes // NODES
    assert n_graphs * NODES == n_nodes and n_graphs % graphs_per_step == 0
    nb = graphs_per_step * NODES
    return pl.pallas_call(
        gnn_kernel,
        out_shape=jax.ShapeDtypeStruct((n_nodes, N_CLASSES), jnp.float32),
        grid_spec=pltpu.PrefetchScalarGridSpec(
            num_scalar_prefetch=0,
            grid=(n_graphs // graphs_per_step,),
            in_specs=[
                pl.BlockSpec((nb, IN_FEATURES), lambda g: (g, 0)),
                pl.BlockSpec((nb, NODES), lambda g: (g, 0)),
                pl.BlockSpec((P_ROWS, LANES), lambda g: (0, 0)),   # same block every step -> no re-DMA
            ],
            out_specs=pl.BlockSpec((nb, N_CLASSES), lambda g: (g, 0)),
        ),
        compiler_params=pltpu.CompilerParams(dimension_semantics=("parallel",)),
    )(x, adj_flat, packed_params)


def _glorot(key, shape):
    lim = (6.0 / (shape[0] + shape[1])) ** 0.5
    return jax.random.uniform(key, shape, jnp.float32, -lim, lim)


def build_batched_graphs(key, n_graphs, edges_per_graph=24):
    """Data prep done once (like PyG batching): features + flattened per-graph adjacency rows."""
    kx, ks, kd = jax.random.split(key, 3)
    x = jax.random.normal(kx, (n_graphs * NODES, IN_FEATURES), jnp.float32)
    src = jax.random.randint(ks, (n_graphs, edges_per_graph), 0, NODES)
    dst = jax.random.randint(kd, (n_graphs, edges_per_graph), 0, NODES)
    adj = jnp.zeros((n_graphs, NODES, NODES), jnp.float32)
    gidx = jnp.repeat(jnp.arange(n_graphs), edges_per_graph)
    # adj[g, dst, src] = 1 (messages flow src -> dst); duplicates dedup'd by the dense mask.
    adj = adj.at[gidx, dst.reshape(-1), src.reshape(-1)].set(1.0)
    diag = jnp.arange(NODES)
    adj = adj.at[:, diag, diag].set(1.0)          # GATConv add_self_loops=True
    return x, adj.reshape(n_graphs * NODES, NODES)


if __name__ == "__main__":
    key = jax.random.PRNGKey(0)
    k_data, k0, k1, k2, k3, k4, k5 = jax.random.split(key, 7)

    NUM_GRAPHS = 32                                   # 2 grid steps of 16 graphs (128 nodes each)
    x, adj_flat = build_batched_graphs(k_data, NUM_GRAPHS)

    params = dict(
        # GATConv(in_features, hidden // heads, heads)
        w1=_glorot(k0, (IN_FEATURES, HEADS * C1)),
        a1s=_glorot(k1, (HEADS, C1)),
        a1d=_glorot(k2, (HEADS, C1)),
        b1=jnp.zeros((1, HEADS * C1), jnp.float32),
        # BatchNorm(hidden)
        bn_g=jnp.ones((1, HIDDEN), jnp.float32),
        bn_b=jnp.zeros((1, HIDDEN), jnp.float32),
        # GATConv(hidden, n_classes, heads, concat=False)
        w2=_glorot(k3, (HIDDEN, HEADS * C2)),
        a2s=_glorot(k4, (HEADS, C2)),
        a2d=_glorot(k5, (HEADS, C2)),
        b2=jnp.zeros((1, N_CLASSES), jnp.float32),
    )

    packed = pack_params(params)                      # packed + matmul-fused once, reused across calls
    out = gnn_forward(x, adj_flat, packed, graphs_per_step=16)
    jax.block_until_ready(out)

    assert out.shape == (NUM_GRAPHS * NODES, N_CLASSES)
    assert bool(jnp.all(jnp.isfinite(out)))
    # rows of log_softmax must exp-sum to 1
    assert bool(jnp.allclose(jnp.sum(jnp.exp(out), axis=1), 1.0, atol=1e-4))
    print("KERNEL_OK")
</pallas_src>

<mosaic_0001>
module attributes {stable_mosaic.version = 11 : i64} {
  func.func @gnn_kernel(%arg0: i32, %arg1: memref<128x16xf32, #tpu.memory_space<vmem>>, %arg2: memref<128x8xf32, #tpu.memory_space<vmem>>, %arg3: memref<56x128xf32, #tpu.memory_space<vmem>>, %arg4: memref<128x4xf32, #tpu.memory_space<vmem>>) attributes {dimension_semantics = [#tpu.dimension_semantics<parallel>], iteration_bounds = array<i64: 2>, scalar_prefetch = 0 : i64, scratch_operands = 0 : i64, tpu.core_type = #tpu.core_type<tc>, window_params = [{transform_indices = @transform_0, window_bounds = array<i64: 128, 16>}, {transform_indices = @transform_1, window_bounds = array<i64: 128, 8>}, {pipeline_mode = #tpu.pipeline_mode<synchronous>, transform_indices = @transform_2, window_bounds = array<i64: 56, 128>}, {transform_indices = @transform_3, window_bounds = array<i64: 128, 4>}]} {
    %c0 = arith.constant 0 : index
    %c0_0 = arith.constant 0 : index
    %0 = vector.load %arg1[%c0, %c0_0] : memref<128x16xf32, #tpu.memory_space<vmem>>, vector<128x16xf32>
    %c0_1 = arith.constant 0 : index
    %c0_2 = arith.constant 0 : index
    %1 = vector.load %arg3[%c0_1, %c0_2] : memref<56x128xf32, #tpu.memory_space<vmem>>, vector<16x128xf32>
    %c16 = arith.constant 16 : index
    %c0_3 = arith.constant 0 : index
    %2 = vector.load %arg3[%c16, %c0_3] : memref<56x128xf32, #tpu.memory_space<vmem>>, vector<32x128xf32>
    %c48 = arith.constant 48 : index
    %c0_4 = arith.constant 0 : index
    %3 = vector.load %arg3[%c48, %c0_4] : memref<56x128xf32, #tpu.memory_space<vmem>>, vector<8x128xf32>
    %4 = vector.extract_strided_slice %3 {offsets = [0, 0], sizes = [1, 32], strides = [1, 1]} : vector<8x128xf32> to vector<1x32xf32>
    %5 = vector.extract_strided_slice %3 {offsets = [1, 0], sizes = [1, 32], strides = [1, 1]} : vector<8x128xf32> to vector<1x32xf32>
    %6 = vector.extract_strided_slice %3 {offsets = [2, 0], sizes = [1, 32], strides = [1, 1]} : vector<8x128xf32> to vector<1x32xf32>
    %7 = vector.extract_strided_slice %3 {offsets = [3, 0], sizes = [1, 32], strides = [1, 1]} : vector<8x128xf32> to vector<1x32xf32>
    %8 = vector.extract_strided_slice %3 {offsets = [4, 0], sizes = [1, 4], strides = [1, 1]} : vector<8x128xf32> to vector<1x4xf32>
    %c0_5 = arith.constant 0 : index
    %c0_6 = arith.constant 0 : index
    %9 = vector.load %arg2[%c0_5, %c0_6] : memref<128x8xf32, #tpu.memory_space<vmem>>, vector<128x8xf32>
    %10 = tpu.iota {dimensions = array<i32: 1>} : vector<8x128xi32>
    %11 = tpu.iota {dimensions = array<i32: 0>} : vector<8x128xi32>
    %c7_i32 = arith.constant 7 : i32
    %12 = vector.broadcast %c7_i32 : i32 to vector<8x128xi32>
    %13 = arith.andi %10, %12 : vector<8x128xi32>
    %14 = arith.cmpi eq, %11, %13 : vector<8x128xi32>
    %15 = arith.extui %14 : vector<8x128xi1> to vector<8x128xi32>
    %16 = arith.sitofp %15 : vector<8x128xi32> to vector<8x128xf32>
    %cst = arith.constant dense<0.000000e+00> : vector<128x128xf32>
    %17 = tpu.matmul %9, %16, %cst {dimension_numbers = #tpu.dot_dimension_numbers<[1], [0], [0], [1], [0, 0, 1, 1], [], []>} : vector<128x8xf32>, vector<8x128xf32>, vector<128x128xf32> -> vector<128x128xf32>
    %18 = tpu.iota {dimensions = array<i32: 0>} : vector<128x128xi32>
    %c3_i32 = arith.constant 3 : i32
    %19 = vector.broadcast %c3_i32 : i32 to vector<128x128xi32>
    %20 = arith.shrsi %18, %19 : vector<128x128xi32>
    %21 = tpu.iota {dimensions = array<i32: 1>} : vector<128x128xi32>
    %c3_i32_7 = arith.constant 3 : i32
    %22 = vector.broadcast %c3_i32_7 : i32 to vector<128x128xi32>
    %23 = arith.shrsi %21, %22 : vector<128x128xi32>
    %24 = arith.cmpi eq, %20, %23 : vector<128x128xi32>
    %cst_8 = arith.constant 5.000000e-01 : f32
    %25 = vector.broadcast %cst_8 : f32 to vector<128x128xf32>
    %26 = arith.cmpf ogt, %17, %25 : vector<128x128xf32>
    %27 = arith.andi %24, %26 : vector<128x128xi1>
    %cst_9 = arith.constant 0.000000e+00 : f32
    %cst_10 = arith.constant -1.000000e+30 : f32
    %28 = vector.broadcast %cst_9 : f32 to vector<128x128xf32>
    %29 = vector.broadcast %cst_10 : f32 to vector<128x128xf32>
    %30 = arith.select %27, %28, %29 : vector<128x128xi1>, vector<128x128xf32>
    %cst_11 = arith.constant dense<0.000000e+00> : vector<128x128xf32>
    %31 = tpu.matmul %0, %1, %cst_11 {dimension_numbers = #tpu.dot_dimension_numbers<[1], [0], [0], [1], [0, 0, 1, 1], [], []>} : vector<128x16xf32>, vector<16x128xf32>, vector<128x128xf32> -> vector<128x128xf32>
    %32 = vector.extract_strided_slice %31 {offsets = [0, 0], sizes = [128, 32], strides = [1, 1]} : vector<128x128xf32> to vector<128x32xf32>
    %33 = vector.extract_strided_slice %31 {offsets = [0, 34], sizes = [128, 2], strides = [1, 1]} : vector<128x128xf32> to vector<128x2xf32>
    %34 = tpu.transpose %33, [1, 0] : vector<128x2xf32> -> vector<2x128xf32>
    %35 = vector.broadcast %7 : vector<1x32xf32> to vector<128x32xf32>
    %36 = arith.mulf %32, %35 : vector<128x32xf32>
    %37 = arith.subf %32, %36 : vector<128x32xf32>
    %38 = vector.extract_strided_slice %31 {offsets = [0, 32], sizes = [128, 1], strides = [1, 1]} : vector<128x128xf32> to vector<128x1xf32>
    %39 = vector.extract_strided_slice %34 {offsets = [0, 0], sizes = [1, 128], strides = [1, 1]} : vector<2x128xf32> to vector<1x128xf32>
    %40 = vector.broadcast %38 : vector<128x1xf32> to vector<128x128xf32>
    %41 = vector.broadcast %39 : vector<1x128xf32> to vector<128x128xf32>
    %42 = arith.addf %40, %41 : vector<128x128xf32>
    %cst_12 = arith.constant 2.000000e-01 : f32
    %43 = vector.broadcast %cst_12 : f32 to vector<128x128xf32>
    %44 = arith.mulf %43, %42 : vector<128x128xf32>
    %45 = arith.maximumf %42, %44 : vector<128x128xf32>
    %46 = arith.addf %45, %30 : vector<128x128xf32>
    %cst_13 = arith.constant dense<0xFF800000> : vector<128xf32>
    %47 = vector.multi_reduction <maximumf>, %46, %cst_13 [1] : vector<128x128xf32> to vector<128xf32>
    %48 = vector.shape_cast %47 : vector<128xf32> to vector<128x1xf32>
    %49 = vector.broadcast %48 : vector<128x1xf32> to vector<128x128xf32>
    %50 = arith.subf %46, %49 : vector<128x128xf32>
    %51 = math.exp %50 : vector<128x128xf32>
    %cst_14 = arith.constant dense<0.000000e+00> : vector<128xf32>
    %52 = vector.multi_reduction <add>, %51, %cst_14 [1] : vector<128x128xf32> to vector<128xf32>
    %53 = vector.shape_cast %52 : vector<128xf32> to vector<128x1xf32>
    %54 = tpu.reciprocal %53 {approx = true} : vector<128x1xf32> -> vector<128x1xf32>
    %55 = vector.extract_strided_slice %31 {offsets = [0, 33], sizes = [128, 1], strides = [1, 1]} : vector<128x128xf32> to vector<128x1xf32>
    %56 = vector.extract_strided_slice %34 {offsets = [1, 0], sizes = [1, 128], strides = [1, 1]} : vector<2x128xf32> to vector<1x128xf32>
    %57 = vector.broadcast %55 : vector<128x1xf32> to vector<128x128xf32>
    %58 = vector.broadcast %56 : vector<1x128xf32> to vector<128x128xf32>
    %59 = arith.addf %57, %58 : vector<128x128xf32>
    %cst_15 = arith.constant 2.000000e-01 : f32
    %60 = vector.broadcast %cst_15 : f32 to vector<128x128xf32>
    %61 = arith.mulf %60, %59 : vector<128x128xf32>
    %62 = arith.maximumf %59, %61 : vector<128x128xf32>
    %63 = arith.addf %62, %30 : vector<128x128xf32>
    %cst_16 = arith.constant dense<0xFF800000> : vector<128xf32>
    %64 = vector.multi_reduction <maximumf>, %63, %cst_16 [1] : vector<128x128xf32> to vector<128xf32>
    %65 = vector.shape_cast %64 : vector<128xf32> to vector<128x1xf32>
    %66 = vector.broadcast %65 : vector<128x1xf32> to vector<128x128xf32>
    %67 = arith.subf %63, %66 : vector<128x128xf32>
    %68 = math.exp %67 : vector<128x128xf32>
    %cst_17 = arith.constant dense<0.000000e+00> : vector<128xf32>
    %69 = vector.multi_reduction <add>, %68, %cst_17 [1] : vector<128x128xf32> to vector<128xf32>
    %70 = vector.shape_cast %69 : vector<128xf32> to vector<128x1xf32>
    %71 = tpu.reciprocal %70 {approx = true} : vector<128x1xf32> -> vector<128x1xf32>
    %cst_18 = arith.constant dense<0.000000e+00> : vector<128x32xf32>
    %72 = tpu.matmul %51, %36, %cst_18 {dimension_numbers = #tpu.dot_dimension_numbers<[1], [0], [0], [1], [0, 0, 1, 1], [], []>} : vector<128x128xf32>, vector<128x32xf32>, vector<128x32xf32> -> vector<128x32xf32>
    %73 = vector.broadcast %54 : vector<128x1xf32> to vector<128x32xf32>
    %74 = arith.mulf %72, %73 : vector<128x32xf32>
    %cst_19 = arith.constant dense<0.000000e+00> : vector<128x32xf32>
    %75 = tpu.matmul %68, %37, %cst_19 {dimension_numbers = #tpu.dot_dimension_numbers<[1], [0], [0], [1], [0, 0, 1, 1], [], []>} : vector<128x128xf32>, vector<128x32xf32>, vector<128x32xf32> -> vector<128x32xf32>
    %76 = vector.broadcast %71 : vector<128x1xf32> to vector<128x32xf32>
    %77 = arith.mulf %75, %76 : vector<128x32xf32>
    %78 = arith.addf %74, %77 : vector<128x32xf32>
    %79 = vector.broadcast %4 : vector<1x32xf32> to vector<128x32xf32>
    %80 = arith.addf %78, %79 : vector<128x32xf32>
    %cst_20 = arith.constant dense<0.000000e+00> : vector<32xf32>
    %81 = vector.multi_reduction <add>, %80, %cst_20 [0] : vector<128x32xf32> to vector<32xf32>
    %82 = vector.shape_cast %81 : vector<32xf32> to vector<1x32xf32>
    %cst_21 = arith.constant 1.280000e+02 : f32
    %83 = vector.broadcast %cst_21 : f32 to vector<1x32xf32>
    %84 = arith.divf %82, %83 : vector<1x32xf32>
    %85 = vector.broadcast %84 : vector<1x32xf32> to vector<128x32xf32>
    %86 = arith.subf %80, %85 : vector<128x32xf32>
    %87 = arith.mulf %86, %86 : vector<128x32xf32>
    %cst_22 = arith.constant dense<0.000000e+00> : vector<32xf32>
    %88 = vector.multi_reduction <add>, %87, %cst_22 [0] : vector<128x32xf32> to vector<32xf32>
    %89 = vector.shape_cast %88 : vector<32xf32> to vector<1x32xf32>
    %cst_23 = arith.constant 1.280000e+02 : f32
    %90 = vector.broadcast %cst_23 : f32 to vector<1x32xf32>
    %91 = arith.divf %89, %90 : vector<1x32xf32>
    %cst_24 = arith.constant 9.99999974E-6 : f32
    %92 = vector.broadcast %cst_24 : f32 to vector<1x32xf32>
    %93 = arith.addf %91, %92 : vector<1x32xf32>
    %94 = math.rsqrt %93 : vector<1x32xf32>
    %95 = arith.mulf %5, %94 : vector<1x32xf32>
    %96 = vector.broadcast %95 : vector<1x32xf32> to vector<128x32xf32>
    %97 = arith.mulf %86, %96 : vector<128x32xf32>
    %98 = vector.broadcast %6 : vector<1x32xf32> to vector<128x32xf32>
    %99 = arith.addf %97, %98 : vector<128x32xf32>
    %cst_25 = arith.constant dense<0.000000e+00> : vector<128x128xf32>
    %100 = tpu.matmul %99, %2, %cst_25 {dimension_numbers = #tpu.dot_dimension_numbers<[1], [0], [0], [1], [0, 0, 1, 1], [], []>} : vector<128x32xf32>, vector<32x128xf32>, vector<128x128xf32> -> vector<128x128xf32>
    %101 = vector.extract_strided_slice %100 {offsets = [0, 10], sizes = [128, 2], strides = [1, 1]} : vector<128x128xf32> to vector<128x2xf32>
    %102 = tpu.transpose %101, [1, 0] : vector<128x2xf32> -> vector<2x128xf32>
    %103 = vector.extract_strided_slice %100 {offsets = [0, 8], sizes = [128, 1], strides = [1, 1]} : vector<128x128xf32> to vector<128x1xf32>
    %104 = vector.extract_strided_slice %102 {offsets = [0, 0], sizes = [1, 128], strides = [1, 1]} : vector<2x128xf32> to vector<1x128xf32>
    %105 = vector.broadcast %103 : vector<128x1xf32> to vector<128x128xf32>
    %106 = vector.broadcast %104 : vector<1x128xf32> to vector<128x128xf32>
    %107 = arith.addf %105, %106 : vector<128x128xf32>
    %cst_26 = arith.constant 2.000000e-01 : f32
    %108 = vector.broadcast %cst_26 : f32 to vector<128x128xf32>
    %109 = arith.mulf %108, %107 : vector<128x128xf32>
    %110 = arith.maximumf %107, %109 : vector<128x128xf32>
    %111 = arith.addf %110, %30 : vector<128x128xf32>
    %cst_27 = arith.constant dense<0xFF800000> : vector<128xf32>
    %112 = vector.multi_reduction <maximumf>, %111, %cst_27 [1] : vector<128x128xf32> to vector<128xf32>
    %113 = vector.shape_cast %112 : vector<128xf32> to vector<128x1xf32>
    %114 = vector.broadcast %113 : vector<128x1xf32> to vector<128x128xf32>
    %115 = arith.subf %111, %114 : vector<128x128xf32>
    %116 = math.exp %115 : vector<128x128xf32>
    %cst_28 = arith.constant dense<0.000000e+00> : vector<128xf32>
    %117 = vector.multi_reduction <add>, %116, %cst_28 [1] : vector<128x128xf32> to vector<128xf32>
    %118 = vector.shape_cast %117 : vector<128xf32> to vector<128x1xf32>
    %119 = tpu.reciprocal %118 {approx = true} : vector<128x1xf32> -> vector<128x1xf32>
    %120 = vector.extract_strided_slice %100 {offsets = [0, 9], sizes = [128, 1], strides = [1, 1]} : vector<128x128xf32> to vector<128x1xf32>
    %121 = vector.extract_strided_slice %102 {offsets = [1, 0], sizes = [1, 128], strides = [1, 1]} : vector<2x128xf32> to vector<1x128xf32>
    %122 = vector.broadcast %120 : vector<128x1xf32> to vector<128x128xf32>
    %123 = vector.broadcast %121 : vector<1x128xf32> to vector<128x128xf32>
    %124 = arith.addf %122, %123 : vector<128x128xf32>
    %cst_29 = arith.constant 2.000000e-01 : f32
    %125 = vector.broadcast %cst_29 : f32 to vector<128x128xf32>
    %126 = arith.mulf %125, %124 : vector<128x128xf32>
    %127 = arith.maximumf %124, %126 : vector<128x128xf32>
    %128 = arith.addf %127, %30 : vector<128x128xf32>
    %cst_30 = arith.constant dense<0xFF800000> : vector<128xf32>
    %129 = vector.multi_reduction <maximumf>, %128, %cst_30 [1] : vector<128x128xf32> to vector<128xf32>
    %130 = vector.shape_cast %129 : vector<128xf32> to vector<128x1xf32>
    %131 = vector.broadcast %130 : vector<128x1xf32> to vector<128x128xf32>
    %132 = arith.subf %128, %131 : vector<128x128xf32>
    %133 = math.exp %132 : vector<128x128xf32>
    %cst_31 = arith.constant dense<0.000000e+00> : vector<128xf32>
    %134 = vector.multi_reduction <add>, %133, %cst_31 [1] : vector<128x128xf32> to vector<128xf32>
    %135 = vector.shape_cast %134 : vector<128xf32> to vector<128x1xf32>
    %136 = tpu.reciprocal %135 {approx = true} : vector<128x1xf32> -> vector<128x1xf32>
    %137 = vector.extract_strided_slice %100 {offsets = [0, 0], sizes = [128, 4], strides = [1, 1]} : vector<128x128xf32> to vector<128x4xf32>
    %cst_32 = arith.constant dense<0.000000e+00> : vector<128x4xf32>
    %138 = tpu.matmul %116, %137, %cst_32 {dimension_numbers = #tpu.dot_dimension_numbers<[1], [0], [0], [1], [0, 0, 1, 1], [], []>} : vector<128x128xf32>, vector<128x4xf32>, vector<128x4xf32> -> vector<128x4xf32>
    %139 = vector.broadcast %119 : vector<128x1xf32> to vector<128x4xf32>
    %140 = arith.mulf %138, %139 : vector<128x4xf32>
    %141 = vector.extract_strided_slice %100 {offsets = [0, 4], sizes = [128, 4], strides = [1, 1]} : vector<128x128xf32> to vector<128x4xf32>
    %cst_33 = arith.constant dense<0.000000e+00> : vector<128x4xf32>
    %142 = tpu.matmul %133, %141, %cst_33 {dimension_numbers = #tpu.dot_dimension_numbers<[1], [0], [0], [1], [0, 0, 1, 1], [], []>} : vector<128x128xf32>, vector<128x4xf32>, vector<128x4xf32> -> vector<128x4xf32>
    %143 = vector.broadcast %136 : vector<128x1xf32> to vector<128x4xf32>
    %144 = arith.mulf %142, %143 : vector<128x4xf32>
    %145 = arith.addf %140, %144 : vector<128x4xf32>
    %cst_34 = arith.constant 5.000000e-01 : f32
    %146 = vector.broadcast %cst_34 : f32 to vector<128x4xf32>
    %147 = arith.mulf %145, %146 : vector<128x4xf32>
    %148 = vector.broadcast %8 : vector<1x4xf32> to vector<128x4xf32>
    %149 = arith.addf %147, %148 : vector<128x4xf32>
    %cst_35 = arith.constant dense<0xFF800000> : vector<128xf32>
    %150 = vector.multi_reduction <maximumf>, %149, %cst_35 [1] : vector<128x4xf32> to vector<128xf32>
    %151 = vector.shape_cast %150 : vector<128xf32> to vector<128x1xf32>
    %152 = vector.broadcast %151 : vector<128x1xf32> to vector<128x4xf32>
    %153 = arith.subf %149, %152 : vector<128x4xf32>
    %154 = math.exp %153 : vector<128x4xf32>
    %cst_36 = arith.constant dense<0.000000e+00> : vector<128xf32>
    %155 = vector.multi_reduction <add>, %154, %cst_36 [1] : vector<128x4xf32> to vector<128xf32>
    %156 = vector.shape_cast %155 : vector<128xf32> to vector<128x1xf32>
    %157 = math.log %156 : vector<128x1xf32>
    %158 = vector.broadcast %157 : vector<128x1xf32> to vector<128x4xf32>
    %159 = arith.subf %153, %158 : vector<128x4xf32>
    %c0_37 = arith.constant 0 : index
    %c0_38 = arith.constant 0 : index
    %160 = vector.load %arg4[%c0_37, %c0_38] : memref<128x4xf32, #tpu.memory_space<vmem>>, vector<128x4xf32>
    tpu.vector_store %arg4[%c0_37, %c0_38], %159 {strides = array<i32>} : memref<128x4xf32, #tpu.memory_space<vmem>>, vector<128x4xf32>,
    return
  }
  func.func @transform_0(%arg0: i32) -> (i32, i32) {
    %c0_i32 = arith.constant 0 : i32
    %c0_i32_0 = arith.constant 0 : i32
    return %arg0, %c0_i32 : i32, i32
  }
  func.func @transform_1(%arg0: i32) -> (i32, i32) {
    %c0_i32 = arith.constant 0 : i32
    %c0_i32_0 = arith.constant 0 : i32
    return %arg0, %c0_i32 : i32, i32
  }
  func.func @transform_2(%arg0: i32) -> (i32, i32) {
    %c0_i32 = arith.constant 0 : i32
    %c0_i32_0 = arith.constant 0 : i32
    %c0_i32_1 = arith.constant 0 : i32
    return %c0_i32, %c0_i32_0 : i32, i32
  }
  func.func @transform_3(%arg0: i32) -> (i32, i32) {
    %c0_i32 = arith.constant 0 : i32
    %c0_i32_0 = arith.constant 0 : i32
    return %arg0, %c0_i32 : i32, i32
  }
}

</mosaic_0001>

<bundles_post_ra>
// kernel: tpu_custom_call.1
= control target key start
LH: loop header
LB: loop body
LE: loop exit
PB: predicated region body
PF: predicated region fallthrough
CT: control target
= control target key end

     0   :  { %s4404_s12 = smov 0   ;;  %s6266_s0 = inlined_call_operand.vmem [shape: f32[256,16], index: 0, kind: input, shape index: {}]   ;;  %s6267_s1 = inlined_call_operand.vmem [shape: f32[256,8], index: 1, kind: input, shape index: {}]   ;;  %s6268_s2 = inlined_call_operand.vmem [shape: f32[56,128], index: 2, kind: input, shape index: {}]   ;;  %s6269_s3 = inlined_call_operand.vmem [shape: f32[256,4], index: 3, kind: output, shape index: {}]  }
   0x1 LB: > { %s3398_s13 = sadd.s32 4294967295, %s4373_s12   ;;  %p3402_p0 = scmp.ge.s32.totalorder %s4373_s12, 1  ;;  %s4373_s12 = sphi %s4404_s12, %s13_s12  }
   0x2   : > { %p149_p1 = scmp.lt.s32.totalorder %s4373_s12, 3 }
   0x4   : > { %p150_p2 = pnand %p3402_p0, %p149_p1 }
   0x6   : > { %153 = sbr.rel (%p150_p2) target bundleno = 2381 (0x94d), region = 32 }
   0xb   : > { %v213_v0 = vld [vmem:[%s6268_s2 + $0x8] sm:$0xff]  ;;  %v212_v1 = vld [vmem:[%s6268_s2] sm:$0xff]  ;;  %s3403_s18 = sshll.u32 %s3398_s13, 4  ;;  %v4375_v2 = vmov 32   ;;  %vm533_vm0 = vcmask 130048   ;;  %v235_v19 = vlaneseq  ;;  %v4376_v23 = vmov 1.0  }
   0xc   : > { %3670 = vmatprep.subr.mxu1 %v213_v0  ;;  %p179_p3 = scmp.lt.s32.totalorder %s3403_s18, 31  ;;  %4003 = vset.pattern.permute.xlu1 %v4375_v2  ;;  %vm243_vm2 = vcmask 64512   ;;  %s4377_s26 = smov 94   ;;  %v4378_v43 = vmov 33   ;;  %v218_v55 = vld [vmem:[%s6268_s2 + $0x30] sm:$0xff] }
   0xd   : > { %3671 = vmatpush3.msra.mxu1 %v213_v0  ;;  %4004 = vset.pattern.permute.xlu0 %v4375_v2  ;;  %v4460_v20 = vand.u32 127, %v235_v19  ;;  %v4462_v21 = vshrl.u32 %v235_v19, 7  ;;  %s4381_s13 = smov 118   ;;  %s4383_s14 = smov 124  }
   0xe   : > { %3672 = vmatprep.subr.mxu1 %v212_v1  ;;  %s6364_s18 = smov (!%p179_p3, %s3403_s18), 31 }
   0xf   : > { %3673 = vmatpush3.msra.mxu1 %v212_v1  ;;  %s4420_s19 = sshll.u32 %s6364_s18, 3  ;;  %6305 = vst [vmem:[#allocation2_spill] sm:$0xff] %v4462_v21  ;;  %v239_v22 = vand.u32 7, %v4460_v20  ;;  %v825_v53 = vsub.s32 3, %v4462_v21 }
  0x10   : > { %s4426_s22 = scalar_lea.vmem %s6266_s0, %s4420_s19  ;;  %s4470_s25 = scalar_lea.vmem %s6267_s1, %s4420_s19 }
  0x11   : > { %v196_v3 = vld [vmem:[%s4426_s22] sm:$0xff]  ;;  %v197_v4 = vld [vmem:[%s4426_s22 + $0x8] sm:$0xff]  ;;  %v198_v5 = vld [vmem:[%s4426_s22 + $0x10] sm:$0xff]  ;;  %vm240_vm1 = vcmp.eq.s32.totalorder %v4462_v21, %v239_v22  ;;  %v4559_v57 = vrot.slane %v218_v55, %v825_v53  ;;  %s6213_s20 = scalar_lea.vmem %s6269_s3, %s4420_s19 }
  0x12   : > { %3674 = vmatprep.mubr.msk.f32.mxu1 %vm533_vm0, %v196_v3  ;;  %v199_v6 = vld [vmem:[%s4426_s22 + $0x18] sm:$0xff]  ;;  %v200_v7 = vld [vmem:[%s4426_s22 + $0x20] sm:$0xff]  ;;  %v201_v8 = vld [vmem:[%s4426_s22 + $0x28] sm:$0xff]  ;;  %3644 = vmatprep.subr.msk.mxu0 %vm240_vm1, %v4376_v23 }
  0x13   : > { %3675 = vmatmul.mubr.msk.f32.vlgmr.msra.gmra.mxu1 %vm533_vm0, %v197_v4  ;;  %v202_v9 = vld [vmem:[%s4426_s22 + $0x30] sm:$0xff]  ;;  %v203_v10 = vld [vmem:[%s4426_s22 + $0x38] sm:$0xff]  ;;  %v204_v11 = vld [vmem:[%s4426_s22 + $0x40] sm:$0xff]  ;;  %3645 = vmatpush3.msk.msra.mxu0 %vm240_vm1, %v4376_v23 }
  0x14   : > { %3677 = vmatprep.mubr.msk.f32.mxu1 %vm533_vm0, %v198_v5  ;;  %v205_v12 = vld [vmem:[%s4426_s22 + $0x48] sm:$0xff]  ;;  %v206_v13 = vld [vmem:[%s4426_s22 + $0x50] sm:$0xff]  ;;  %v207_v14 = vld [vmem:[%s4426_s22 + $0x58] sm:$0xff] }
  0x15   : > { %v208_v15 = vld [vmem:[%s4426_s22 + $0x60] sm:$0xff]  ;;  %v209_v16 = vld [vmem:[%s4426_s22 + $0x68] sm:$0xff]  ;;  %v210_v17 = vld [vmem:[%s4426_s22 + $0x70] sm:$0xff] }
  0x16   : > { %v211_v18 = vld [vmem:[%s4426_s22 + $0x78] sm:$0xff]  ;;  %v219_v24 = vld [vmem:[%s4470_s25] sm:$0xff]  ;;  %v220_v25 = vld [vmem:[%s4470_s25 + $0x8] sm:$0xff] }
  0x17   : > { %3678 = vmatmul.mubr.msk.f32.gmra.mxu1 %vm533_vm0, %v199_v6  ;;  %3646 = vmatprep.mubr.msk.f32.mxu0 %vm243_vm2, %v219_v24  ;;  %v221_v26 = vld [vmem:[%s4470_s25 + $0x10] sm:$0xff]  ;;  %v222_v27 = vld [vmem:[%s4470_s25 + $0x18] sm:$0xff]  ;;  %v223_v28 = vld [vmem:[%s4470_s25 + $0x20] sm:$0xff] }
  0x18   : > { %3680 = vmatprep.mubr.msk.f32.mxu1 %vm533_vm0, %v200_v7  ;;  %3647 = vmatmul.mubr.msk.f32.vlgmr.msra.gmra.mxu0 %vm243_vm2, %v220_v25  ;;  %v224_v29 = vld [vmem:[%s4470_s25 + $0x28] sm:$0xff]  ;;  %v225_v30 = vld [vmem:[%s4470_s25 + $0x30] sm:$0xff]  ;;  %v226_v31 = vld [vmem:[%s4470_s25 + $0x38] sm:$0xff] }
  0x19   : > { %3649 = vmatprep.mubr.msk.f32.mxu0 %vm243_vm2, %v221_v26  ;;  %v227_v32 = vld [vmem:[%s4470_s25 + $0x40] sm:$0xff]  ;;  %v228_v33 = vld [vmem:[%s4470_s25 + $0x48] sm:$0xff]  ;;  %v229_v34 = vld [vmem:[%s4470_s25 + $0x50] sm:$0xff] }
  0x1a   : > { %v230_v35 = vld [vmem:[%s4470_s25 + $0x58] sm:$0xff]  ;;  %v231_v36 = vld [vmem:[%s4470_s25 + $0x60] sm:$0xff]  ;;  %v232_v37 = vld [vmem:[%s4470_s25 + $0x68] sm:$0xff] }
  0x1b   : > { %3681 = vmatmul.mubr.msk.f32.gmra.mxu1 %vm533_vm0, %v201_v8  ;;  %v233_v38 = vld [vmem:[%s4470_s25 + $0x70] sm:$0xff]  ;;  %v234_v39 = vld [vmem:[%s4470_s25 + $0x78] sm:$0xff] }
  0x1c   : > { %3683 = vmatprep.mubr.msk.f32.mxu1 %vm533_vm0, %v202_v9  ;;  %3650 = vmatmul.mubr.msk.f32.gmra.mxu0 %vm243_vm2, %v222_v27 }
  0x1d   : > { %3652 = vmatprep.mubr.msk.f32.mxu0 %vm243_vm2, %v223_v28 }
  0x1f   : > { %3684 = vmatmul.mubr.msk.f32.gmra.mxu1 %vm533_vm0, %v203_v10 }
  0x20   : > { %3686 = vmatprep.mubr.msk.f32.mxu1 %vm533_vm0, %v204_v11  ;;  %3653 = vmatmul.mubr.msk.f32.gmra.mxu0 %vm243_vm2, %v224_v29 }
  0x21   : > { %3655 = vmatprep.mubr.msk.f32.mxu0 %vm243_vm2, %v225_v30 }
  0x23   : > { %3687 = vmatmul.mubr.msk.f32.gmra.mxu1 %vm533_vm0, %v205_v12 }
  0x24   : > { %3689 = vmatprep.mubr.msk.f32.mxu1 %vm533_vm0, %v206_v13  ;;  %3656 = vmatmul.mubr.msk.f32.gmra.mxu0 %vm243_vm2, %v226_v31 }
  0x25   : > { %3658 = vmatprep.mubr.msk.f32.mxu0 %vm243_vm2, %v227_v32 }
  0x27   : > { %3690 = vmatmul.mubr.msk.f32.gmra.mxu1 %vm533_vm0, %v207_v14 }
  0x28   : > { %3692 = vmatprep.mubr.msk.f32.mxu1 %vm533_vm0, %v208_v15  ;;  %3659 = vmatmul.mubr.msk.f32.gmra.mxu0 %vm243_vm2, %v228_v33 }
  0x29   : > { %3661 = vmatprep.mubr.msk.f32.mxu0 %vm243_vm2, %v229_v34 }
  0x2b   : > { %3693 = vmatmul.mubr.msk.f32.gmra.mxu1 %vm533_vm0, %v209_v16 }
  0x2c   : > { %3695 = vmatprep.mubr.msk.f32.mxu1 %vm533_vm0, %v210_v17  ;;  %3662 = vmatmul.mubr.msk.f32.gmra.mxu0 %vm243_vm2, %v230_v35 }
  0x2d   : > { %3664 = vmatprep.mubr.msk.f32.mxu0 %vm243_vm2, %v231_v36 }
  0x2f   : > { %3696 = vmatmul.mubr.msk.f32.gmra.mxu1 %vm533_vm0, %v211_v18 }
  0x30   : > { %3665 = vmatmul.mubr.msk.f32.gmra.mxu0 %vm243_vm2, %v232_v37 }
  0x31   : > { %3667 = vmatprep.mubr.msk.f32.mxu0 %vm243_vm2, %v233_v38 }
  0x34   : > { %3668 = vmatmul.mubr.msk.f32.gmra.mxu0 %vm243_vm2, %v234_v39 }
  0xd3   : > { %v4504_v40 = vpop.f32.mrf.mxu1 }
  0xd4   : > { %864 = vperm.xlu1 %4003, %v4504_v40   ;;  %745 = vrot.lane.b32.xlu0 %v4504_v40, %s4377_s26  ;;  %v828_v26 = vmul.f32 %v4504_v40, %v4559_v57 }
  0xd5   : > { %v4509_v41 = vpop.f32.mrf.mxu1 }
  0xd6   : > { %v827_v28 = vmul.f32 %v4559_v57, %v4509_v41  ;;  %v844_v29 = vsub.f32 %v4504_v40, %v828_v26 }
  0xd7   : > { %v4511_v42 = vpop.f32.mrf.mxu1 }
  0xd8   : > { %4005 = vset.pattern.permute.xlu1 %v4378_v43  ;;  %743 = vrot.lane.b32.xlu0 %v4509_v41, %s4377_s26  ;;  %v830_v22 = vmul.f32 %v4511_v42, %v4559_v57  ;;  %v843_v30 = vsub.f32 %v4509_v41, %v827_v28 }
  0xd9   : > { %1120 = vperm.xlu1 %4005, %v4509_v41   ;;  %v4517_v44 = vpop.f32.mrf.mxu1 }
  0xda   : > { %v829_v24 = vmul.f32 %v4559_v57, %v4517_v44  ;;  %v846_v25 = vsub.f32 %v4511_v42, %v830_v22 }
  0xdb   : > { %v4519_v45 = vpop.f32.mrf.mxu1 }
  0xdc   : > { %860 = vperm.xlu0 %4004, %v4509_v41   ;;  %v832_v17 = vmul.f32 %v4519_v45, %v4559_v57  ;;  %v845_v27 = vsub.f32 %v4517_v44, %v829_v24 }
  0xdd   : > { %749 = vrot.lane.b32.xlu1 %v4511_v42, %s4377_s26  ;;  %v4524_v46 = vpop.f32.mrf.mxu1 }
  0xde   : > { %v831_v18 = vmul.f32 %v4559_v57, %v4524_v46  ;;  %v848_v19 = vsub.f32 %v4519_v45, %v832_v17 }
  0xdf   : > { %v4526_v47 = vpop.f32.mrf.mxu1 }
  0xe0   : > { %872 = vperm.xlu0 %4004, %v4511_v42   ;;  %v834_v12 = vmul.f32 %v4526_v47, %v4559_v57  ;;  %v847_v23 = vsub.f32 %v4524_v46, %v831_v18 }
  0xe1   : > { %1132 = vperm.xlu1 %4005, %v4511_v42   ;;  %v4530_v48 = vpop.f32.mrf.mxu1 }
  0xe2   : > { %v833_v14 = vmul.f32 %v4559_v57, %v4530_v48  ;;  %v850_v15 = vsub.f32 %v4526_v47, %v834_v12 }
  0xe3   : > { %v4532_v49 = vpop.f32.mrf.mxu1 }
  0xe4   : > { %751 = vrot.lane.b32.xlu0 %v4524_v46, %s4377_s26  ;;  %v836_v8 = vmul.f32 %v4532_v49, %v4559_v57  ;;  %v849_v16 = vsub.f32 %v4530_v48, %v833_v14 }
  0xe5   : > { %747 = vrot.lane.b32.xlu1 %v4517_v44, %s4377_s26  ;;  %v4538_v50 = vpop.f32.mrf.mxu1 }
  0xe6   : > { %4006 = vset.pattern.permute.xlu1 %v4375_v2  ;;  %v835_v10 = vmul.f32 %v4559_v57, %v4538_v50  ;;  %v852_v11 = vsub.f32 %v4532_v49, %v836_v8 }
  0xe7   : > { %v4541_v51 = vpop.f32.mrf.mxu1 }
  0xe8   : > { %755 = vrot.lane.b32.xlu0 %v4530_v48, %s4377_s26  ;;  %v838_v4 = vmul.f32 %v4541_v51, %v4559_v57  ;;  %v851_v13 = vsub.f32 %v4538_v50, %v835_v10 }
  0xe9   : > { %868 = vperm.xlu1 %4006, %v4517_v44   ;;  %v4546_v52 = vpop.f32.mrf.mxu1 }
  0xea   : > { %v837_v6 = vmul.f32 %v4559_v57, %v4546_v52  ;;  %v854_v7 = vsub.f32 %v4541_v51, %v838_v4 }
  0xeb   : > { %v4549_v54 = vpop.f32.mrf.mxu1 }
  0xec   : > { %884 = vperm.xlu0 %4004, %v4530_v48   ;;  %v840_v63 = vmul.f32 %v4549_v54, %v4559_v57  ;;  %v853_v9 = vsub.f32 %v4546_v52, %v837_v6 }
  0xed   : > { %4007 = vset.pattern.permute.xlu1 %v4378_v43  ;;  %v4556_v56 = vpop.f32.mrf.mxu1 }
  0xee   : > { %1128 = vperm.xlu1 %4007, %v4517_v44   ;;  %v839_v1 = vmul.f32 %v4559_v57, %v4556_v56  ;;  %v856_v3 = vsub.f32 %v4549_v54, %v840_v63 }
  0xef   : > { %v4561_v58 = vpop.f32.mrf.mxu1 }
  0xf0   : > { %896 = vperm.xlu0 %4004, %v4532_v49   ;;  %v842_v59 = vmul.f32 %v4561_v58, %v4559_v57  ;;  %v855_v5 = vsub.f32 %v4556_v56, %v839_v1 }
  0xf1   : > { %v4566_v60 = vpop.f32.mrf.mxu1 }
  0xf2   : > { %753 = vrot.lane.b32.xlu1 %v4519_v45, %s4377_s26  ;;  %3698 = vmatprep.subr.mxu0 %v842_v59  ;;  %v841_v61 = vmul.f32 %v4559_v57, %v4566_v60  ;;  %v858_v62 = vsub.f32 %v4561_v58, %v842_v59 }
  0xf3   : > { %3699 = vmatpush3.msra.mxu0 %v842_v59  ;;  %4008 = vset.pattern.permute.xlu1 %v4375_v2 }
  0xf4   : > { %759 = vrot.lane.b32.xlu0 %v4538_v50, %s4377_s26  ;;  %3700 = vmatprep.subr.mxu0 %v841_v61  ;;  %v857_v0 = vsub.f32 %v4566_v60, %v841_v61 }
  0xf5   : > { %3754 = vmatprep.subr.mxu1 %v858_v62  ;;  %3701 = vmatpush3.msra.mxu0 %v841_v61 }
  0xf6   : > { %3755 = vmatpush3.msra.mxu1 %v858_v62  ;;  %880 = vperm.xlu1 %4008, %v4519_v45  }
  0xf7   : > { %3702 = vmatprep.subr.mxu0 %v840_v63  ;;  %3756 = vmatprep.subr.mxu1 %v857_v0 }
  0xf8   : > { %3703 = vmatpush3.msra.mxu0 %v840_v63  ;;  %3757 = vmatpush3.msra.mxu1 %v857_v0 }
  0xf9   : > { %763 = vrot.lane.b32.xlu0 %v4546_v52, %s4377_s26  ;;  %3704 = vmatprep.subr.mxu0 %v839_v1 }
  0xfa   : > { %3758 = vmatprep.subr.mxu1 %v856_v3  ;;  %3705 = vmatpush3.msra.mxu0 %v839_v1 }
  0xfb   : > { %3759 = vmatpush3.msra.mxu1 %v856_v3  ;;  %4009 = vset.pattern.permute.xlu1 %v4378_v43 }
  0xfc   : > { %3706 = vmatprep.subr.mxu0 %v838_v4  ;;  %3760 = vmatprep.subr.mxu1 %v855_v5 }
  0xfd   : > { %1140 = vperm.xlu1 %4009, %v4519_v45   ;;  %3707 = vmatpush3.msra.mxu0 %v838_v4 }
  0xfe   : > { %3761 = vmatpush3.msra.mxu1 %v855_v5  ;;  %767 = vrot.lane.b32.xlu0 %v4556_v56, %s4377_s26 }
  0xff   : > { %3708 = vmatprep.subr.mxu0 %v837_v6  ;;  %3762 = vmatprep.subr.mxu1 %v854_v7 }
 0x100   : > { %3709 = vmatpush3.msra.mxu0 %v837_v6  ;;  %3763 = vmatpush3.msra.mxu1 %v854_v7  ;;  %v4712_v6 = vpop.f32.mrf.mxu0 }
 0x101   : > { %3710 = vmatprep.subr.mxu0 %v836_v8  ;;  %3764 = vmatprep.subr.mxu1 %v853_v9  ;;  %vm486_vm7 = vcmp.gt.f32.partialorder %v4712_v6, 0.5 }
 0x102   : > { %4010 = vset.pattern.permute.xlu1 %v4375_v2  ;;  %3711 = vmatpush3.msra.mxu0 %v836_v8  ;;  %v358_v7 = vpop.f32.mrf.mxu0 }
 0x103   : > { %3765 = vmatpush3.msra.mxu1 %v853_v9  ;;  %876 = vperm.xlu1 %4010, %v4524_v46   ;;  %vm485_vm4 = vcmp.gt.f32.partialorder %v358_v7, 0.5 }
 0x104   : > { %908 = vperm.xlu0 %4004, %v4556_v56   ;;  %3712 = vmatprep.subr.mxu0 %v835_v10  ;;  %v4714_v8 = vpop.f32.mrf.mxu0 }
 0x105   : > { %3766 = vmatprep.subr.mxu1 %v852_v11  ;;  %3713 = vmatpush3.msra.mxu0 %v835_v10 }
 0x106   : > { %3767 = vmatpush3.msra.mxu1 %v852_v11  ;;  %3714 = vmatprep.subr.mxu0 %v834_v12  ;;  %v4716_v9 = vpop.f32.mrf.mxu0 }
 0x107   : > { %3768 = vmatprep.subr.mxu1 %v851_v13  ;;  %3715 = vmatpush3.msra.mxu0 %v834_v12 }
 0x108   : > { %3769 = vmatpush3.msra.mxu1 %v851_v13  ;;  %757 = vrot.lane.b32.xlu1 %v4526_v47, %s4377_s26  ;;  %v4718_v10 = vpop.f32.mrf.mxu0 }
 0x109   : > { %771 = vrot.lane.b32.xlu0 %v4566_v60, %s4377_s26  ;;  %3716 = vmatprep.subr.mxu0 %v833_v14 }
 0x10a   : > { %3770 = vmatprep.subr.mxu1 %v850_v15  ;;  %3717 = vmatpush3.msra.mxu0 %v833_v14  ;;  %v378_v11 = vpop.f32.mrf.mxu0 }
 0x10b   : > { %3771 = vmatpush3.msra.mxu1 %v850_v15  ;;  %3718 = vmatprep.subr.mxu0 %v832_v17  ;;  %vm489_vm6 = vcmp.gt.f32.partialorder %v378_v11, 0.5 }
 0x10c   : > { %3772 = vmatprep.subr.mxu1 %v849_v16  ;;  %3719 = vmatpush3.msra.mxu0 %v832_v17  ;;  %v4720_v12 = vpop.f32.mrf.mxu0 }
 0x10d   : > { %3773 = vmatpush3.msra.mxu1 %v849_v16  ;;  %888 = vperm.xlu1 %4010, %v4526_v47  }
 0x10e   : > { %916 = vperm.xlu0 %4004, %v4566_v60   ;;  %3720 = vmatprep.subr.mxu0 %v831_v18  ;;  %v4722_v13 = vpop.f32.mrf.mxu0 }
 0x10f   : > { %3774 = vmatprep.subr.mxu1 %v848_v19  ;;  %3721 = vmatpush3.msra.mxu0 %v831_v18  ;;  %v440_v18 = vadd.s32 32, %v4462_v21 }
 0x110   : > { %3775 = vmatpush3.msra.mxu1 %v848_v19  ;;  %3722 = vmatprep.subr.mxu0 %v830_v22  ;;  %v4726_v15 = vpop.f32.mrf.mxu0  ;;  %v437_v19 = vadd.s32 8, %v4462_v21 }
 0x111   : > { %3776 = vmatprep.subr.mxu1 %v847_v23  ;;  %3723 = vmatpush3.msra.mxu0 %v830_v22 }
 0x112   : > { %3777 = vmatpush3.msra.mxu1 %v847_v23  ;;  %4011 = vset.pattern.permute.xlu1 %v4378_v43  ;;  %v4730_v17 = vpop.f32.mrf.mxu0  ;;  %v446_v23 = vadd.s32 80, %v4462_v21 }
 0x113   : > { %920 = vperm.xlu0 %4004, %v4561_v58   ;;  %3724 = vmatprep.subr.mxu0 %v829_v24 }
 0x114   : > { %3778 = vmatprep.subr.mxu1 %v846_v25  ;;  %1144 = vperm.xlu1 %4011, %v4530_v48   ;;  %v3663_v22 = vpop.f32.mrf.mxu0 }
 0x115   : > { %3725 = vmatpush3.msra.mxu0 %v829_v24  ;;  %3779 = vmatpush3.msra.mxu1 %v846_v25  ;;  %v4736_v24 = vshra.s32 %v4460_v20, 3  ;;  %v452_v25 = vshra.s32 %v4462_v21, 3  ;;  %vm496_vm12 = vcmp.gt.f32.partialorder %v3663_v22, 0.5  ;;  %v6317_v22 = vmov -1e+30  }
 0x116   : > { %3726 = vmatprep.subr.mxu0 %v828_v26  ;;  %3780 = vmatprep.subr.mxu1 %v845_v27 }
 0x117   : > { %3727 = vmatpush3.msra.mxu0 %v828_v26  ;;  %3781 = vmatpush3.msra.mxu1 %v845_v27  ;;  %v456_v27 = vshra.s32 %v440_v18, 3  ;;  %vm469_vm3 = vcmp.eq.s32.totalorder %v452_v25, %v4736_v24 }
 0x118   : > { %4018 = vset.pattern.permute.xlu0 %v4378_v43  ;;  %3728 = vmatprep.subr.mxu0 %v827_v28  ;;  %vm4761_vm9 = vmand %vm469_vm3, %vm485_vm4 }
 0x119   : > { %3782 = vmatprep.subr.mxu1 %v844_v29  ;;  %761 = vrot.lane.b32.xlu1 %v4532_v49, %s4377_s26  ;;  %vm473_vm5 = vcmp.eq.s32.totalorder %v456_v27, %v4736_v24 }
 0x11a   : > { %1124 = vperm.xlu0 %4018, %v4504_v40   ;;  %3729 = vmatpush3.msra.mxu0 %v827_v28  ;;  %v447_v28 = vadd.s32 88, %v4462_v21  ;;  %vm505_vm11 = vmand %vm473_vm5, %vm489_vm6  ;;  %vm487_vm6 = vcmp.gt.f32.partialorder %v4716_v9, 0.5 }
 0x11b   : > { %3783 = vmatpush3.msra.mxu1 %v844_v29  ;;  %v4741_v29 = vsub.s32 0, %v4462_v21 }
 0x11c   : > { %3784 = vmatprep.subr.mxu1 %v843_v30 }
 0x11d   : > { %3785 = vmatpush3.msra.mxu1 %v843_v30  ;;  %1156 = vperm.xlu1 %4011, %v4532_v49   ;;  %v4744_v30 = vsub.s32 1, %v4462_v21 }
 0x11e   : > { %1136 = vperm.xlu0 %4018, %v4524_v46  }
 0x121   : > { %4012 = vset.pattern.permute.xlu1 %v4375_v2 }
 0x122   : > { %1148 = vperm.xlu0 %4018, %v4526_v47   ;;  %892 = vperm.xlu1 %4012, %v4538_v50  }
 0x126   : > { %4013 = vset.pattern.permute.xlu1 %v4378_v43  ;;  %1160 = vperm.xlu0 %4018, %v4546_v52  }
 0x127   : > { %1152 = vperm.xlu1 %4013, %v4538_v50  }
 0x12a   : > { %1172 = vperm.xlu0 %4018, %v4549_v54  }
 0x12b   : > { %765 = vrot.lane.b32.xlu1 %v4541_v51, %s4377_s26 }
 0x12c   : > { %4014 = vset.pattern.permute.xlu1 %v4375_v2 }
 0x12e   : > { %1176 = vperm.xlu0 %4018, %v4566_v60  }
 0x12f   : > { %904 = vperm.xlu1 %4014, %v4541_v51  }
 0x132   : > { %1180 = vperm.xlu0 %4018, %v4561_v58  }
 0x133   : > { %4015 = vset.pattern.permute.xlu1 %v4378_v43 }
 0x134   : > { %1164 = vperm.xlu1 %4015, %v4541_v51  }
 0x138   : > { %4016 = vset.pattern.permute.xlu1 %v4375_v2 }
 0x139   : > { %900 = vperm.xlu1 %4016, %v4546_v52  }
 0x13d   : > { %769 = vrot.lane.b32.xlu1 %v4549_v54, %s4377_s26 }
 0x141   : > { %912 = vperm.xlu1 %4016, %v4549_v54  }
 0x145   : > { %4017 = vset.pattern.permute.xlu1 %v4378_v43 }
 0x146   : > { %1168 = vperm.xlu1 %4017, %v4556_v56   ;;  %v746_v35 = vpop.permute.xlu0 %745 }
 0x14a   : > { %773 = vrot.lane.b32.xlu1 %v4561_v58, %s4377_s26  ;;  %v744_v38 = vpop.permute.xlu0 %743 }
 0x14f   : > { %v4668_v31 = vpop.permute.xlu1 %864 }
 0x154   : > { %v4670_v32 = vpop.permute.xlu1 %1120 }
 0x157   : > { %v4678_v40 = vpop.permute.xlu0 %860 }
 0x158   : > { %v750_v33 = vpop.permute.xlu1 %749 }
 0x15b   : > { %v4682_v42 = vpop.permute.xlu0 %872 }
 0x15c   : > { %v4672_v2 = vpop.permute.xlu1 %1132 }
 0x15f   : > { %v752_v44 = vpop.permute.xlu0 %751 }
 0x160   : > { %v748_v34 = vpop.permute.xlu1 %747 }
 0x163   : > { %v756_v46 = vpop.permute.xlu0 %755 }
 0x164   : > { %v4674_v36 = vpop.permute.xlu1 %868 }
 0x167   : > { %v4688_v48 = vpop.permute.xlu0 %884 }
 0x169   : > { %v4676_v37 = vpop.permute.xlu1 %1128 }
 0x16b   : > { %v4692_v50 = vpop.permute.xlu0 %896 }
 0x16d   : > { %v754_v39 = vpop.permute.xlu1 %753 }
 0x16f   : > { %v760_v52 = vpop.permute.xlu0 %759 }
 0x171   : > { %v4680_v41 = vpop.permute.xlu1 %880 }
 0x173   : > { %791 = vxpose.xlu1.b32.start [1/16] (narrow) %v744_v38, 8  ;;  %v764_v55 = vpop.permute.xlu0 %763  ;;  %v448_v38 = vadd.s32 96, %v4462_v21 }
 0x177   : > { %792 = vxpose.xlu1.b32.cont [2/16] (narrow) %v746_v35, 8  ;;  %v768_v59 = vpop.permute.xlu0 %767  ;;  %v462_v35 = vshra.s32 %v446_v23, 3 }
 0x178   : > { %v4684_v43 = vpop.permute.xlu1 %1140 }
 0x179   : > { %vm4767_vm10 = vcmp.eq.s32.totalorder %v462_v35, %v4736_v24 }
 0x17b   : > { %793 = vxpose.xlu1.b32.cont [3/16] (narrow) %v748_v34, 8  ;;  %v408_v34 = vpop.f32.mrf.mxu0 }
 0x17c   : > { %vm495_vm13 = vcmp.gt.f32.partialorder %v408_v34, 0.5 }
 0x17d   : > { %vm511_vm15 = vmand %vm4767_vm10, %vm495_vm13 }
 0x17e   : > { %v4686_v45 = vpop.permute.xlu1 %876 }
 0x17f   : > { %794 = vxpose.xlu1.b32.cont [4/16] (narrow) %v750_v33, 8  ;;  %v4706_v63 = vpop.permute.xlu0 %908  ;;  %v453_v33 = vshra.s32 %v437_v19, 3 }
 0x181   : > { %vm4757_vm8 = vcmp.eq.s32.totalorder %v453_v33, %v4736_v24 }
 0x182   : > { %v758_v47 = vpop.permute.xlu1 %757  ;;  %vm4823_vm3 = vmand %vm4757_vm8, %vm486_vm7 }
 0x183   : > { %795 = vxpose.xlu1.b32.cont [5/16] (narrow) %v752_v44, 8  ;;  %v772_v1 = vpop.permute.xlu0 %771  ;;  %v4850_v34 = vsel %vm4823_vm3, 0.0, %v6317_v22 }
 0x187   : > { %796 = vxpose.xlu1.b32.cont [6/16] (narrow) %v754_v39, 8  ;;  %v463_v39 = vshra.s32 %v447_v28, 3 }
 0x188   : > { %v4690_v49 = vpop.permute.xlu1 %888 }
 0x189   : > { %v4724_v14 = vpop.permute.xlu0 %916  ;;  %vm4784_vm14 = vcmp.eq.s32.totalorder %v463_v39, %v4736_v24 }
 0x18a   : > { %vm512_vm2 = vmand %vm4784_vm14, %vm496_vm12  ;;  %vm488_vm14 = vcmp.gt.f32.partialorder %v4714_v8, 0.5 }
 0x18b   : > { %797 = vxpose.xlu1.b32.cont [7/16] (narrow) %v756_v46, 8 }
 0x18e   : > { %v4728_v16 = vpop.permute.xlu0 %920 }
 0x18f   : > { %798 = vxpose.xlu1.b32.cont [8/16] (narrow) %v758_v47, 8  ;;  %v4694_v51 = vpop.permute.xlu1 %1144 }
 0x193   : > { %799 = vxpose.xlu1.b32.cont [9/16] (narrow) %v760_v52, 8  ;;  %v762_v53 = vpop.permute.xlu1 %761 }
 0x195   : > { %v1125_v26 = vpop.permute.xlu0 %1124 }
 0x197   : > { %800 = vxpose.xlu1.b32.cont [10/16] (narrow) %v762_v53, 8 }
 0x198   : > { %v4696_v54 = vpop.permute.xlu1 %1156 }
 0x199   : > { %v1137_v47 = vpop.permute.xlu0 %1136 }
 0x19b   : > { %801 = vxpose.xlu1.b32.cont [11/16] (narrow) %v764_v55, 8  ;;  %v438_v55 = vadd.s32 16, %v4462_v21 }
 0x19d   : > { %v4698_v56 = vpop.permute.xlu1 %892 }
 0x1a2   : > { %v4700_v57 = vpop.permute.xlu1 %1152 }
 0x1a6   : > { %v766_v58 = vpop.permute.xlu1 %765 }
 0x1a7   : > { %802 = vxpose.xlu1.b32.cont [12/16] (narrow) %v766_v58, 8 }
 0x1aa   : > { %v4702_v60 = vpop.permute.xlu1 %904 }
 0x1ab   : > { %803 = vxpose.xlu1.b32.cont [13/16] (narrow) %v768_v59, 8  ;;  %v4771_v59 = vpop.f32.mrf.mxu0 }
 0x1ac   : > { %vm498_vm8 = vcmp.gt.f32.partialorder %v4771_v59, 0.5 }
 0x1af   : > { %v4704_v61 = vpop.permute.xlu1 %1164 }
 0x1b4   : > { %v901_v62 = vpop.permute.xlu1 %900 }
 0x1b8   : > { %v770_v0 = vpop.permute.xlu1 %769 }
 0x1b9   : > { %804 = vxpose.xlu1.b32.cont [14/16] (narrow) %v770_v0, 8  ;;  %v464_v0 = vshra.s32 %v448_v38, 3 }
 0x1bb   : > { %vm4800_vm0 = vcmp.eq.s32.totalorder %v464_v0, %v4736_v24 }
 0x1bc   : > { %v4708_v3 = vpop.permute.xlu1 %912 }
 0x1bd   : > { %805 = vxpose.xlu1.b32.cont [15/16] (narrow) %v772_v1, 8 }
 0x1c1   : > { %v4710_v4 = vpop.permute.xlu1 %1168 }
 0x1c5   : > { %v774_v5 = vpop.permute.xlu1 %773 }
 0x1c6   : > { %806 = vxpose.xlu1.b32.end [16/16] (narrow) %v774_v5, 8 }
 0x206   : > { %v807_v20 = vpop.trf.xlu1 }
 0x207   : > { %v4751_v44 = vrot.slane %v807_v20, %v4741_v29  ;;  %v4754_v46 = vrot.slane %v807_v20, %v4744_v30 }
 0x209   : > { %v1191_v1 = vadd.f32 %v4754_v46, %v1137_v47  ;;  %v927_v5 = vadd.f32 %v4751_v44, %v4678_v40  ;;  %v937_v7 = vadd.f32 %v4751_v44, %v901_v62  ;;  %v1187_v11 = vadd.f32 %v4754_v46, %v4670_v32 }
 0x20a   : > { %v938_v18 = vadd.f32 %v4751_v44, %v4702_v60  ;;  %v928_v19 = vadd.f32 %v4751_v44, %v4668_v31  ;;  %v6270_v62 = vmov -1e+30   ;;  %v449_v60 = vadd.s32 104, %v4462_v21  ;;  %v418_v31 = vpop.f32.mrf.mxu0 }
 0x20b   : > { %v1207_v25 = vmul.f32 0.2, %v1191_v1  ;;  %v943_v40 = vmul.f32 0.2, %v927_v5  ;;  %v953_v27 = vmul.f32 0.2, %v937_v7  ;;  %v939_v47 = vadd.f32 %v4751_v44, %v4706_v63 }
 0x20c   : > { %v4791_v32 = vsel %vm4761_vm9, 0.0, %v6270_v62  ;;  %v4794_v28 = vsel %vm505_vm11, 0.0, %v6270_v62  ;;  %v1203_v33 = vmul.f32 0.2, %v1187_v11  ;;  %vm497_vm1 = vcmp.gt.f32.partialorder %v418_v31, 0.5  ;;  %v3669_v6 = vpop.f32.mrf.mxu0 }
 0x20d   : > { %6314 = vst [vmem:[#allocation3_spill] sm:$0xff] %v4791_v32  ;;  %v1223_v35 = vmax.f32 %v1191_v1, %v1207_v25  ;;  %v959_v38 = vmax.f32 %v927_v5, %v943_v40  ;;  %v954_v20 = vmul.f32 0.2, %v938_v18  ;;  %v944_v39 = vmul.f32 0.2, %v928_v19  ;;  %vm513_vm4 = vmand %vm4800_vm0, %vm497_vm1 }
 0x20e   : > { %v1188_v53 = vadd.f32 %v4754_v46, %v1125_v26  ;;  %v969_v62 = vmax.f32 %v937_v7, %v953_v27  ;;  %v1219_v1 = vmax.f32 %v1187_v11, %v1203_v33  ;;  %v454_v5 = vshra.s32 %v438_v55, 3 }
 0x20f   : > { %v4811_v58 = vadd.f32 %v1223_v35, %v4794_v28  ;;  %v4814_v0 = vadd.f32 %v959_v38, %v4791_v32  ;;  %v4817_v25 = vsel %vm511_vm15, 0.0, %v6317_v22  ;;  %v465_v23 = vshra.s32 %v449_v60, 3  ;;  %v428_v38 = vpop.f32.mrf.mxu0 }
 0x210   : > { %v439_v26 = vadd.s32 24, %v4462_v21  ;;  %v4829_v40 = vsel %vm512_vm2, 0.0, %v6317_v22  ;;  %v450_v7 = vadd.s32 112, %v4462_v21  ;;  %v970_v52 = vmax.f32 %v938_v18, %v954_v20 }
 0x211   : > { %1259 = vmax.xlane.f32.xlu1 %v4811_v58  ;;  %991 = vmax.xlane.f32.xlu0 %v4814_v0  ;;  %v960_v55 = vmax.f32 %v928_v19, %v944_v39  ;;  %v955_v11 = vmul.f32 0.2, %v939_v47  ;;  %v1204_v27 = vmul.f32 0.2, %v1188_v53  ;;  %v4838_v60 = vadd.f32 %v969_v62, %v4817_v25 }
 0x212   : > { %v4841_v33 = vadd.f32 %v1219_v1, %v4791_v32  ;;  %v940_v35 = vadd.f32 %v4751_v44, %v4708_v3  ;;  %v929_v31 = vadd.f32 %v4751_v44, %v4674_v36  ;;  %vm4853_vm5 = vcmp.eq.s32.totalorder %v454_v5, %v4736_v24 }
 0x213   : > { %vm4859_vm7 = vcmp.eq.s32.totalorder %v465_v23, %v4736_v24  ;;  %v4865_v36 = vsel %vm513_vm4, 0.0, %v6317_v22  ;;  %v451_v3 = vadd.s32 120, %v4462_v21  ;;  %v466_v62 = vshra.s32 %v450_v7, 3  ;;  %vm4884_vm9 = vmand %vm4853_vm5, %vm487_vm6 }
 0x214   : > { %v4871_v20 = vadd.f32 %v970_v52, %v4829_v40  ;;  %v4874_v39 = vadd.f32 %v960_v55, %v4850_v34  ;;  %v971_v1 = vmax.f32 %v939_v47, %v955_v11  ;;  %v1220_v5 = vmax.f32 %v1188_v53, %v1204_v27  ;;  %vm514_vm10 = vmand %vm4859_vm7, %vm498_vm8 }
 0x215   : > { %1011 = vmax.xlane.f32.xlu1 %v4838_v60  ;;  %1251 = vmax.xlane.f32.xlu0 %v4841_v33  ;;  %v956_v23 = vmul.f32 0.2, %v940_v35  ;;  %v945_v63 = vmul.f32 0.2, %v929_v31  ;;  %v941_v32 = vadd.f32 %v4751_v44, %v4724_v14  ;;  %v1189_v7 = vadd.f32 %v4754_v46, %v4676_v37 }
 0x216   : > { %v455_v55 = vshra.s32 %v439_v26, 3  ;;  %v467_v47 = vshra.s32 %v451_v3, 3  ;;  %vm4893_vm11 = vcmp.eq.s32.totalorder %v466_v62, %v4736_v24  ;;  %vm499_vm12 = vcmp.gt.f32.partialorder %v428_v38, 0.5 }
 0x217   : > { %v4900_v37 = vadd.f32 %v971_v1, %v4865_v36  ;;  %v4903_v9 = vadd.f32 %v1220_v5, %v4850_v34  ;;  %v942_v59 = vadd.f32 %v4751_v44, %v4728_v16  ;;  %v930_v53 = vadd.f32 %v4751_v44, %v4682_v42  ;;  %vm515_vm0 = vmand %vm4893_vm11, %vm499_vm12 }
 0x218   : > { %v972_v26 = vmax.f32 %v940_v35, %v956_v23  ;;  %v961_v11 = vmax.f32 %v929_v31, %v945_v63  ;;  %v957_v27 = vmul.f32 0.2, %v941_v32  ;;  %v1205_v18 = vmul.f32 0.2, %v1189_v7 }
 0x219   : > { %1013 = vmax.xlane.f32.xlu1 %v4871_v20  ;;  %993 = vmax.xlane.f32.xlu0 %v4874_v39  ;;  %v4912_v19 = vsel %vm4884_vm9, 0.0, %v6317_v22  ;;  %v4915_v3 = vsel %vm514_vm10, 0.0, %v6317_v22  ;;  %vm472_vm13 = vcmp.eq.s32.totalorder %v455_v55, %v4736_v24  ;;  %vm500_vm15 = vcmp.gt.f32.partialorder %v3669_v6, 0.5 }
 0x21a   : > { %vm484_vm1 = vcmp.eq.s32.totalorder %v467_v47, %v4736_v24  ;;  %v958_v42 = vmul.f32 0.2, %v942_v59  ;;  %v946_v16 = vmul.f32 0.2, %v930_v53  ;;  %v1190_v35 = vadd.f32 %v4754_v46, %v4672_v2  ;;  %vm504_vm2 = vmand %vm472_vm13, %vm488_vm14 }
 0x21b   : > { %v4928_v31 = vadd.f32 %v972_v26, %v4915_v3  ;;  %v4931_v8 = vadd.f32 %v961_v11, %v4912_v19  ;;  %v973_v6 = vmax.f32 %v941_v32, %v957_v27  ;;  %v1221_v62 = vmax.f32 %v1189_v7, %v1205_v18  ;;  %vm516_vm3 = vmand %vm484_vm1, %vm500_vm15 }
 0x21c   : > { %v4934_v38 = vsel %vm515_vm0, 0.0, %v6317_v22  ;;  %v441_v1 = vadd.s32 40, %v4462_v21  ;;  %v1206_v2 = vmul.f32 0.2, %v1190_v35  ;;  %v931_v5 = vadd.f32 %v4751_v44, %v4686_v45 }
 0x21d   : > { %1015 = vmax.xlane.f32.xlu1 %v4900_v37  ;;  %1253 = vmax.xlane.f32.xlu0 %v4903_v9  ;;  %v4942_v23 = vadd.f32 %v973_v6, %v4934_v38  ;;  %v4945_v32 = vadd.f32 %v1221_v62, %v4912_v19  ;;  %v974_v63 = vmax.f32 %v942_v59, %v958_v42  ;;  %v4948_v52 = vsel %vm504_vm2, 0.0, %v6317_v22 }
 0x21e   : > { %v962_v7 = vmax.f32 %v930_v53, %v946_v16  ;;  %v4951_v55 = vsel %vm516_vm3, 0.0, %v6317_v22  ;;  %v457_v47 = vshra.s32 %v441_v1, 3  ;;  %v947_v45 = vmul.f32 0.2, %v931_v5 }
 0x21f   : > { %v4956_v14 = vadd.f32 %v974_v63, %v4951_v55  ;;  %v1222_v59 = vmax.f32 %v1190_v35, %v1206_v2  ;;  %v932_v53 = vadd.f32 %v4751_v44, %v4680_v41  ;;  %vm490_vm5 = vcmp.gt.f32.partialorder %v4718_v10, 0.5 }
 0x220   : > { %v4959_v26 = vadd.f32 %v962_v7, %v4948_v52  ;;  %vm474_vm4 = vcmp.eq.s32.totalorder %v457_v47, %v4736_v24  ;;  %v442_v11 = vadd.s32 48, %v4462_v21  ;;  %v963_v18 = vmax.f32 %v931_v5, %v947_v45 }
 0x221   : > { %1017 = vmax.xlane.f32.xlu1 %v4928_v31  ;;  %995 = vmax.xlane.f32.xlu0 %v4931_v8  ;;  %v4969_v27 = vadd.f32 %v1222_v59, %v4948_v52  ;;  %v948_v42 = vmul.f32 0.2, %v932_v53  ;;  %v1192_v16 = vadd.f32 %v4754_v46, %v4684_v43  ;;  %vm506_vm6 = vmand %vm474_vm4, %vm490_vm5  ;;  %v933_v10 = vadd.f32 %v4751_v44, %v4688_v48 }
 0x222   : > { %v458_v41 = vshra.s32 %v442_v11, 3  ;;  %v4975_v35 = vadd.f32 %v963_v18, %v4794_v28  ;;  %v4980_v1 = vsel %vm506_vm6, 0.0, %v6317_v22  ;;  %v443_v2 = vadd.s32 56, %v4462_v21  ;;  %v1149_v11 = vpop.permute.xlu0 %1148 }
 0x223   : > { %v964_v6 = vmax.f32 %v932_v53, %v948_v42  ;;  %v1208_v62 = vmul.f32 0.2, %v1192_v16  ;;  %vm491_vm8 = vcmp.gt.f32.partialorder %v4722_v13, 0.5  ;;  %v949_v63 = vmul.f32 0.2, %v933_v10 }
 0x224   : > { %vm475_vm7 = vcmp.eq.s32.totalorder %v458_v41, %v4736_v24  ;;  %v1193_v7 = vadd.f32 %v4754_v46, %v4694_v51  ;;  %v459_v48 = vshra.s32 %v443_v2, 3  ;;  %v934_v13 = vadd.f32 %v4751_v44, %v4690_v49 }
 0x225   : > { %1019 = vmax.xlane.f32.xlu1 %v4942_v23  ;;  %1255 = vmax.xlane.f32.xlu0 %v4945_v32  ;;  %v4987_v43 = vadd.f32 %v964_v6, %v4980_v1  ;;  %v1224_v5 = vmax.f32 %v1192_v16, %v1208_v62  ;;  %vm507_vm9 = vmand %vm475_vm7, %vm491_vm8  ;;  %v965_v45 = vmax.f32 %v933_v10, %v949_v63  ;;  %vm492_vm11 = vcmp.gt.f32.partialorder %v4720_v12, 0.5 }
 0x226   : > { %v1209_v59 = vmul.f32 0.2, %v1193_v7  ;;  %v4998_v53 = vsel %vm507_vm9, 0.0, %v6317_v22  ;;  %vm476_vm10 = vcmp.eq.s32.totalorder %v459_v48, %v4736_v24  ;;  %v444_v51 = vadd.s32 64, %v4462_v21 }
 0x227   : > { %v4993_v47 = vadd.f32 %v1224_v5, %v4980_v1  ;;  %v5005_v18 = vadd.f32 %v965_v45, %v4998_v53  ;;  %v950_v16 = vmul.f32 0.2, %v934_v13  ;;  %v1194_v41 = vadd.f32 %v4754_v46, %v1149_v11  ;;  %vm508_vm12 = vmand %vm476_vm10, %vm492_vm11 }
 0x228   : > { %v1225_v42 = vmax.f32 %v1193_v7, %v1209_v59  ;;  %v460_v49 = vshra.s32 %v444_v51, 3  ;;  %v935_v12 = vadd.f32 %v4751_v44, %v4698_v56  ;;  %v5015_v2 = vsel %vm508_vm12, 0.0, %v6317_v22 }
 0x229   : > { %1021 = vmax.xlane.f32.xlu1 %v4956_v14  ;;  %997 = vmax.xlane.f32.xlu0 %v4959_v26  ;;  %v966_v62 = vmax.f32 %v934_v13, %v950_v16  ;;  %v1210_v10 = vmul.f32 0.2, %v1194_v41  ;;  %v445_v5 = vadd.s32 72, %v4462_v21  ;;  %vm493_vm14 = vcmp.gt.f32.partialorder %v4730_v17, 0.5 }
 0x22a   : > { %v5010_v6 = vadd.f32 %v1225_v42, %v4998_v53  ;;  %vm477_vm13 = vcmp.eq.s32.totalorder %v460_v49, %v4736_v24  ;;  %v951_v48 = vmul.f32 0.2, %v935_v12  ;;  %v1195_v45 = vadd.f32 %v4754_v46, %v4700_v57 }
 0x22b   : > { %v5022_v63 = vadd.f32 %v966_v62, %v5015_v2  ;;  %v1226_v7 = vmax.f32 %v1194_v41, %v1210_v10  ;;  %vm509_vm15 = vmand %vm477_vm13, %vm493_vm14  ;;  %v461_v56 = vshra.s32 %v445_v5, 3  ;;  %v936_v17 = vadd.f32 %v4751_v44, %v4692_v50  ;;  %v1161_v50 = vpop.permute.xlu0 %1160 }
 0x22c   : > { %v967_v13 = vmax.f32 %v935_v12, %v951_v48  ;;  %v1211_v11 = vmul.f32 0.2, %v1195_v45  ;;  %v5033_v51 = vsel %vm509_vm15, 0.0, %v6317_v22  ;;  %vm494_vm1 = vcmp.gt.f32.partialorder %v4726_v15, 0.5 }
 0x22d   : > { %1257 = vmax.xlane.f32.xlu0 %v4969_v27  ;;  %v5028_v59 = vadd.f32 %v1226_v7, %v5015_v2  ;;  %vm478_vm0 = vcmp.eq.s32.totalorder %v461_v56, %v4736_v24  ;;  %v952_v16 = vmul.f32 0.2, %v936_v17  ;;  %v1196_v41 = vadd.f32 %v4754_v46, %v4696_v54 }
 0x22e   : > { %v5039_v57 = vadd.f32 %v967_v13, %v5033_v51  ;;  %v1227_v42 = vmax.f32 %v1195_v45, %v1211_v11  ;;  %vm510_vm2 = vmand %vm478_vm0, %vm494_vm1  ;;  %v1197_v24 = vadd.f32 %v4754_v46, %v1161_v50  ;;  %v1198_v5 = vadd.f32 %v4754_v46, %v4704_v61 }
 0x22f   : > { %v968_v49 = vmax.f32 %v936_v17, %v952_v16  ;;  %v1212_v62 = vmul.f32 0.2, %v1196_v41  ;;  %v5049_v15 = vsel %vm510_vm2, 0.0, %v6317_v22  ;;  %v1199_v22 = vadd.f32 %v4754_v46, %v4710_v4  ;;  %v1173_v56 = vpop.permute.xlu0 %1172 }
 0x230   : > { %v5045_v44 = vadd.f32 %v1227_v42, %v5033_v51  ;;  %v1213_v12 = vmul.f32 0.2, %v1197_v24  ;;  %v1214_v45 = vmul.f32 0.2, %v1198_v5  ;;  %v1200_v61 = vadd.f32 %v4754_v46, %v1173_v56 }
 0x231   : > { %999 = vmax.xlane.f32.xlu0 %v4975_v35  ;;  %v5053_v10 = vadd.f32 %v968_v49, %v5049_v15  ;;  %v1228_v54 = vmax.f32 %v1196_v41, %v1212_v62  ;;  %v1215_v17 = vmul.f32 0.2, %v1199_v22  ;;  %vm1737_vm3 = vcmask 261120  }
 0x232   : > { %v1229_v48 = vmax.f32 %v1197_v24, %v1213_v12  ;;  %v1230_v11 = vmax.f32 %v1198_v5, %v1214_v45  ;;  %v1216_v50 = vmul.f32 0.2, %v1200_v61  ;;  %vm3121_vm4 = vcmask 31744  }
 0x233   : > { %v5059_v7 = vadd.f32 %v1228_v54, %v5049_v15  ;;  %v1177_v42 = vpop.permute.xlu0 %1176  ;;  %v1231_v41 = vmax.f32 %v1199_v22, %v1215_v17 }
 0x234   : > { %v5065_v13 = vadd.f32 %v1229_v48, %v4817_v25  ;;  %v5070_v16 = vadd.f32 %v1230_v11, %v4829_v40  ;;  %v1201_v4 = vadd.f32 %v4754_v46, %v1177_v42  ;;  %v1232_v24 = vmax.f32 %v1200_v61, %v1216_v50 }
 0x235   : > { %1001 = vmax.xlane.f32.xlu0 %v4987_v43  ;;  %v5075_v62 = vadd.f32 %v1231_v41, %v4865_v36 }
 0x236   : > { %v1217_v54 = vmul.f32 0.2, %v1201_v4  ;;  %v5080_v5 = vadd.f32 %v1232_v24, %v4915_v3 }
 0x237   : > { %v1181_v49 = vpop.permute.xlu0 %1180 }
 0x238   : > { %v1202_v12 = vadd.f32 %v4754_v46, %v1181_v49  ;;  %v1233_v48 = vmax.f32 %v1201_v4, %v1217_v54 }
 0x239   : > { %1261 = vmax.xlane.f32.xlu0 %v4993_v47 }
 0x23a   : > { %v1218_v45 = vmul.f32 0.2, %v1202_v12  ;;  %v5084_v22 = vadd.f32 %v1233_v48, %v4934_v38 }
 0x23c   : > { %v1234_v56 = vmax.f32 %v1202_v12, %v1218_v45 }
 0x23d   : > { %1003 = vmax.xlane.f32.xlu0 %v5005_v18 }
 0x23e   : > { %v5088_v11 = vadd.f32 %v1234_v56, %v4951_v55 }
 0x241   : > { %1263 = vmax.xlane.f32.xlu0 %v5010_v6 }
 0x245   : > { %1005 = vmax.xlane.f32.xlu0 %v5022_v63 }
 0x249   : > { %1265 = vmax.xlane.f32.xlu0 %v5028_v59 }
 0x24d   : > { %1007 = vmax.xlane.f32.xlu0 %v5039_v57 }
 0x251   : > { %1267 = vmax.xlane.f32.xlu0 %v5045_v44 }
 0x255   : > { %1009 = vmax.xlane.f32.xlu0 %v5053_v10 }
 0x259   : > { %1269 = vmax.xlane.f32.xlu0 %v5059_v7 }
 0x25d   : > { %1271 = vmax.xlane.f32.xlu0 %v5065_v13 }
 0x261   : > { %1273 = vmax.xlane.f32.xlu0 %v5070_v16 }
 0x265   : > { %1275 = vmax.xlane.f32.xlu0 %v5075_v62 }
 0x269   : > { %1277 = vmax.xlane.f32.xlu0 %v5080_v5 }
 0x26d   : > { %1279 = vmax.xlane.f32.xlu0 %v5084_v22 }
 0x271   : > { %1281 = vmax.xlane.f32.xlu0 %v5088_v11 }
 0x29a   : > { %v992_v46 = vpop.xlane.xlu0 %991 }
 0x29b   : > { %v1023_v17 = vsub.f32 %v4814_v0, %v992_v46 }
 0x29d   : > { %v1039_v61 = vmul.f32 1.442695, %v1023_v17 }
 0x29e   : > { %v1252_v42 = vpop.xlane.xlu0 %1251 }
 0x29f   : > { %v1283_v41 = vsub.f32 %v4841_v33, %v1252_v42  ;;  %4043 = vpow2.f32 %v1039_v61  ;;  %v1260_v61 = vpop.xlane.xlu1 %1259 }
 0x2a1   : > { %v1299_v50 = vmul.f32 1.442695, %v1283_v41 }
 0x2a2   : > { %v994_v4 = vpop.xlane.xlu0 %993 }
 0x2a3   : > { %v1024_v49 = vsub.f32 %v4874_v39, %v994_v4  ;;  %4045 = vpow2.f32 %v1299_v50  ;;  %v1287_v50 = vsub.f32 %v4811_v58, %v1260_v61 }
 0x2a5   : > { %v1041_v24 = vmul.f32 1.442695, %v1024_v49 }
 0x2a6   : > { %v1254_v54 = vpop.xlane.xlu0 %1253 }
 0x2a7   : > { %v1284_v12 = vsub.f32 %v4903_v9, %v1254_v54  ;;  %4047 = vpow2.f32 %v1041_v24 }
 0x2a9   : > { %v1301_v48 = vmul.f32 1.442695, %v1284_v12 }
 0x2aa   : > { %v996_v45 = vpop.xlane.xlu0 %995 }
 0x2ab   : > { %v1025_v56 = vsub.f32 %v4931_v8, %v996_v45  ;;  %4049 = vpow2.f32 %v1301_v48 }
 0x2ac   : > { %v4044_v0 = vpop.eup %4043 }
 0x2ad   : > { %v1043_v46 = vmul.f32 1.442695, %v1025_v56  ;;  %1071 = vadd.xlane.f32.xlu1 %v4044_v0  ;;  %3730 = vmatprep.mubr.f32.mxu0 %v4044_v0 }
 0x2ae   : > { %v1256_v33 = vpop.xlane.xlu0 %1255 }
 0x2af   : > { %v1285_v17 = vsub.f32 %v4945_v32, %v1256_v33  ;;  %4051 = vpow2.f32 %v1043_v46  ;;  %v1307_v32 = vmul.f32 1.442695, %v1287_v50 }
 0x2b0   : > { %v4046_v39 = vpop.eup %4045 }
 0x2b1   : > { %v1303_v42 = vmul.f32 1.442695, %v1285_v17  ;;  %1331 = vadd.xlane.f32.xlu1 %v4046_v39  ;;  %3786 = vmatprep.mubr.f32.mxu1 %v4046_v39 }
 0x2b2   : > { %v998_v9 = vpop.xlane.xlu0 %997 }
 0x2b3   : > { %v1026_v41 = vsub.f32 %v4959_v26, %v998_v9  ;;  %4053 = vpow2.f32 %v1303_v42  ;;  %v1012_v42 = vpop.xlane.xlu1 %1011 }
 0x2b4   : > { %v4048_v8 = vpop.eup %4047 }
 0x2b5   : > { %v1045_v4 = vmul.f32 1.442695, %v1026_v41  ;;  %1073 = vadd.xlane.f32.xlu0 %v4048_v8  ;;  %3731 = vmatmul.mubr.f32.vlgmr.msra.gmra.mxu0 %v4048_v8 }
 0x2b6   : > { %v1258_v49 = vpop.xlane.xlu0 %1257 }
 0x2b7   : > { %v1286_v24 = vsub.f32 %v4969_v27, %v1258_v49  ;;  %4055 = vpow2.f32 %v1045_v4  ;;  %v1014_v49 = vpop.xlane.xlu1 %1013 }
 0x2b8   : > { %v4050_v54 = vpop.eup %4049 }
 0x2b9   : > { %v1305_v12 = vmul.f32 1.442695, %v1286_v24  ;;  %1333 = vadd.xlane.f32.xlu0 %v4050_v54  ;;  %3787 = vmatmul.mubr.f32.vlgmr.msra.gmra.mxu1 %v4050_v54 }
 0x2ba   : > { %v1000_v48 = vpop.xlane.xlu0 %999 }
 0x2bb   : > { %4057 = vpow2.f32 %v1305_v12  ;;  %v1027_v26 = vsub.f32 %v4975_v35, %v1000_v48 }
 0x2bc   : > { %4059 = vpow2.f32 %v1307_v32  ;;  %v4052_v58 = vpop.eup %4051 }
 0x2bd   : > { %v1047_v45 = vmul.f32 1.442695, %v1027_v26  ;;  %1075 = vadd.xlane.f32.xlu1 %v4052_v58  ;;  %3733 = vmatprep.mubr.f32.mxu0 %v4052_v58  ;;  %v1016_v26 = vpop.xlane.xlu1 %1015 }
 0x2be   : > { %v1002_v56 = vpop.xlane.xlu0 %1001 }
 0x2bf   : > { %4061 = vpow2.f32 %v1047_v45  ;;  %v1028_v0 = vsub.f32 %v4987_v43, %v1002_v56 }
 0x2c0   : > { %v4054_v27 = vpop.eup %4053 }
 0x2c1   : > { %v1049_v46 = vmul.f32 1.442695, %v1028_v0  ;;  %1335 = vadd.xlane.f32.xlu0 %v4054_v27  ;;  %3789 = vmatprep.mubr.f32.mxu1 %v4054_v27 }
 0x2c2   : > { %v1262_v33 = vpop.xlane.xlu0 %1261 }
 0x2c3   : > { %4063 = vpow2.f32 %v1049_v46  ;;  %v1288_v17 = vsub.f32 %v4993_v47, %v1262_v33  ;;  %v1018_v46 = vpop.xlane.xlu1 %1017 }
 0x2c4   : > { %v4056_v39 = vpop.eup %4055 }
 0x2c5   : > { %v1309_v61 = vmul.f32 1.442695, %v1288_v17  ;;  %1077 = vadd.xlane.f32.xlu1 %v4056_v39  ;;  %3734 = vmatmul.mubr.f32.gmra.mxu0 %v4056_v39 }
 0x2c6   : > { %v1004_v35 = vpop.xlane.xlu0 %1003 }
 0x2c7   : > { %4065 = vpow2.f32 %v1309_v61  ;;  %v1029_v9 = vsub.f32 %v5005_v18, %v1004_v35 }
 0x2c8   : > { %v4058_v41 = vpop.eup %4057 }
 0x2c9   : > { %v4060_v50 = vpop.eup %4059  ;;  %v1051_v43 = vmul.f32 1.442695, %v1029_v9  ;;  %1337 = vadd.xlane.f32.xlu0 %v4058_v41  ;;  %3790 = vmatmul.mubr.f32.gmra.mxu1 %v4058_v41  ;;  %v1020_v9 = vpop.xlane.xlu1 %1019 }
 0x2ca   : > { %v1264_v8 = vpop.xlane.xlu0 %1263  ;;  %3792 = vmatprep.mubr.f32.mxu1 %v4060_v50 }
 0x2cb   : > { %4067 = vpow2.f32 %v1051_v43  ;;  %v1289_v4 = vsub.f32 %v5010_v6, %v1264_v8  ;;  %v1034_v43 = vsub.f32 %v4871_v20, %v1014_v49  ;;  %v1035_v8 = vsub.f32 %v4900_v37, %v1016_v26 }
 0x2cc   : > { %v4062_v47 = vpop.eup %4061 }
 0x2cd   : > { %v1311_v24 = vmul.f32 1.442695, %v1289_v4  ;;  %1339 = vadd.xlane.f32.xlu0 %v4060_v50  ;;  %1079 = vadd.xlane.f32.xlu1 %v4062_v47 }
 0x2ce   : > { %3736 = vmatprep.mubr.f32.mxu0 %v4062_v47  ;;  %v1006_v32 = vpop.xlane.xlu0 %1005  ;;  %v1061_v47 = vmul.f32 1.442695, %v1034_v43 }
 0x2cf   : > { %4069 = vpow2.f32 %v1311_v24  ;;  %v1030_v18 = vsub.f32 %v5022_v63, %v1006_v32  ;;  %v1036_v24 = vsub.f32 %v4928_v31, %v1018_v46  ;;  %v1063_v32 = vmul.f32 1.442695, %v1035_v8 }
 0x2d0   : > { %v4064_v54 = vpop.eup %4063 }
 0x2d1   : > { %v1053_v12 = vmul.f32 1.442695, %v1030_v18  ;;  %1081 = vadd.xlane.f32.xlu1 %v4064_v54  ;;  %3737 = vmatmul.mubr.f32.gmra.mxu0 %v4064_v54  ;;  %v1022_v18 = vpop.xlane.xlu1 %1021 }
 0x2d2   : > { %v1266_v48 = vpop.xlane.xlu0 %1265 }
 0x2d3   : > { %4071 = vpow2.f32 %v1053_v12  ;;  %v1290_v58 = vsub.f32 %v5028_v59, %v1266_v48  ;;  %v1033_v59 = vsub.f32 %v4838_v60, %v1012_v42  ;;  %v1065_v12 = vmul.f32 1.442695, %v1036_v24 }
 0x2d4   : > { %v4066_v6 = vpop.eup %4065 }
 0x2d5   : > { %v1313_v45 = vmul.f32 1.442695, %v1290_v58  ;;  %1341 = vadd.xlane.f32.xlu0 %v4066_v6  ;;  %3793 = vmatmul.mubr.f32.gmra.mxu1 %v4066_v6  ;;  %v1059_v50 = vmul.f32 1.442695, %v1033_v59 }
 0x2d6   : > { %v1008_v56 = vpop.xlane.xlu0 %1007 }
 0x2d7   : > { %4073 = vpow2.f32 %v1313_v45  ;;  %v1031_v0 = vsub.f32 %v5039_v57, %v1008_v56 }
 0x2d8   : > { %v4068_v27 = vpop.eup %4067 }
 0x2d9   : > { %v1055_v63 = vmul.f32 1.442695, %v1031_v0  ;;  %1083 = vadd.xlane.f32.xlu1 %v4068_v27  ;;  %3739 = vmatprep.mubr.f32.mxu0 %v4068_v27 }
 0x2da   : > { %v1268_v33 = vpop.xlane.xlu0 %1267 }
 0x2db   : > { %4075 = vpow2.f32 %v1055_v63  ;;  %v1291_v17 = vsub.f32 %v5045_v44, %v1268_v33 }
 0x2dc   : > { %v4070_v39 = vpop.eup %4069 }
 0x2dd   : > { %v1315_v61 = vmul.f32 1.442695, %v1291_v17  ;;  %1343 = vadd.xlane.f32.xlu0 %v4070_v39  ;;  %3795 = vmatprep.mubr.f32.mxu1 %v4070_v39 }
 0x2de   : > { %v1010_v35 = vpop.xlane.xlu0 %1009 }
 0x2df   : > { %4077 = vpow2.f32 %v1315_v61  ;;  %v1032_v57 = vsub.f32 %v5053_v10, %v1010_v35  ;;  %v1037_v10 = vsub.f32 %v4942_v23, %v1020_v9 }
 0x2e0   : > { %v4072_v41 = vpop.eup %4071 }
 0x2e1   : > { %v1057_v4 = vmul.f32 1.442695, %v1032_v57  ;;  %1085 = vadd.xlane.f32.xlu1 %v4072_v41  ;;  %3740 = vmatmul.mubr.f32.gmra.mxu0 %v4072_v41  ;;  %v1067_v48 = vmul.f32 1.442695, %v1037_v10 }
 0x2e2   : > { %v1270_v44 = vpop.xlane.xlu0 %1269 }
 0x2e3   : > { %4079 = vpow2.f32 %v1057_v4  ;;  %v1292_v60 = vsub.f32 %v5059_v7, %v1270_v44  ;;  %v1038_v7 = vsub.f32 %v4956_v14, %v1022_v18 }
 0x2e4   : > { %v4074_v42 = vpop.eup %4073  ;;  %4081 = vpow2.f32 %v1059_v50 }
 0x2e5   : > { %v1317_v54 = vmul.f32 1.442695, %v1292_v60  ;;  %1345 = vadd.xlane.f32.xlu0 %v4074_v42  ;;  %3796 = vmatmul.mubr.f32.gmra.mxu1 %v4074_v42  ;;  %v1069_v6 = vmul.f32 1.442695, %v1038_v7 }
 0x2e6   : > { %v1272_v20 = vpop.xlane.xlu0 %1271 }
 0x2e7   : > { %4083 = vpow2.f32 %v1317_v54  ;;  %v1293_v37 = vsub.f32 %v5065_v13, %v1272_v20 }
 0x2e8   : > { %v4076_v49 = vpop.eup %4075  ;;  %4085 = vpow2.f32 %v1061_v47 }
 0x2e9   : > { %4087 = vpow2.f32 %v1063_v32  ;;  %v1319_v26 = vmul.f32 1.442695, %v1293_v37  ;;  %1087 = vadd.xlane.f32.xlu1 %v4076_v49  ;;  %3742 = vmatprep.mubr.f32.mxu0 %v4076_v49 }
 0x2ea   : > { %v1274_v31 = vpop.xlane.xlu0 %1273 }
 0x2eb   : > { %4089 = vpow2.f32 %v1319_v26  ;;  %v1294_v23 = vsub.f32 %v5070_v16, %v1274_v31 }
 0x2ec   : > { %v4078_v58 = vpop.eup %4077  ;;  %4091 = vpow2.f32 %v1065_v12 }
 0x2ed   : > { %4093 = vpow2.f32 %v1067_v48  ;;  %v1321_v45 = vmul.f32 1.442695, %v1294_v23  ;;  %1347 = vadd.xlane.f32.xlu0 %v4078_v58  ;;  %3798 = vmatprep.mubr.f32.mxu1 %v4078_v58 }
 0x2ee   : > { %v1276_v13 = vpop.xlane.xlu0 %1275 }
 0x2ef   : > { %4095 = vpow2.f32 %v1321_v45  ;;  %v1295_v14 = vsub.f32 %v5075_v62, %v1276_v13 }
 0x2f0   : > { %v4080_v56 = vpop.eup %4079  ;;  %4097 = vpow2.f32 %v1069_v6 }
 0x2f1   : > { %v4082_v0 = vpop.eup %4081  ;;  %v1323_v27 = vmul.f32 1.442695, %v1295_v14  ;;  %1089 = vadd.xlane.f32.xlu1 %v4080_v56  ;;  %3743 = vmatmul.mubr.f32.gmra.mxu0 %v4080_v56 }
 0x2f2   : > { %v1278_v46 = vpop.xlane.xlu0 %1277  ;;  %3745 = vmatprep.mubr.f32.mxu0 %v4082_v0 }
 0x2f3   : > { %4099 = vpow2.f32 %v1323_v27  ;;  %v1296_v16 = vsub.f32 %v5080_v5, %v1278_v46 }
 0x2f4   : > { %v4084_v63 = vpop.eup %4083 }
 0x2f5   : > { %v4086_v33 = vpop.eup %4085  ;;  %v1325_v17 = vmul.f32 1.442695, %v1296_v16  ;;  %1091 = vadd.xlane.f32.xlu1 %v4082_v0  ;;  %1349 = vadd.xlane.f32.xlu0 %v4084_v63 }
 0x2f6   : > { %v4088_v39 = vpop.eup %4087  ;;  %3746 = vmatmul.mubr.f32.gmra.mxu0 %v4086_v33  ;;  %3799 = vmatmul.mubr.f32.gmra.mxu1 %v4084_v63  ;;  %v1280_v62 = vpop.xlane.xlu0 %1279 }
 0x2f7   : > { %4101 = vpow2.f32 %v1325_v17  ;;  %v1297_v59 = vsub.f32 %v5084_v22, %v1280_v62  ;;  %3748 = vmatprep.mubr.f32.mxu0 %v4088_v39 }
 0x2f8   : > { %v4090_v61 = vpop.eup %4089 }
 0x2f9   : > { %v4092_v35 = vpop.eup %4091  ;;  %v1327_v9 = vmul.f32 1.442695, %v1297_v59  ;;  %1093 = vadd.xlane.f32.xlu1 %v4086_v33  ;;  %1351 = vadd.xlane.f32.xlu0 %v4090_v61 }
 0x2fa   : > { %v4094_v57 = vpop.eup %4093  ;;  %3749 = vmatmul.mubr.f32.gmra.mxu0 %v4092_v35  ;;  %3801 = vmatprep.mubr.f32.mxu1 %v4090_v61  ;;  %v1282_v5 = vpop.xlane.xlu0 %1281 }
 0x2fb   : > { %4103 = vpow2.f32 %v1327_v9  ;;  %v1298_v41 = vsub.f32 %v5088_v11, %v1282_v5  ;;  %3751 = vmatprep.mubr.f32.mxu0 %v4094_v57 }
 0x2fc   : > { %v4096_v50 = vpop.eup %4095 }
 0x2fd   : > { %v4098_v43 = vpop.eup %4097  ;;  %v1329_v8 = vmul.f32 1.442695, %v1298_v41  ;;  %1095 = vadd.xlane.f32.xlu1 %v4088_v39  ;;  %1353 = vadd.xlane.f32.xlu0 %v4096_v50 }
 0x2fe   : > { %3752 = vmatmul.mubr.f32.gmra.mxu0 %v4098_v43  ;;  %3802 = vmatmul.mubr.f32.gmra.mxu1 %v4096_v50 }
 0x2ff   : > { %4105 = vpow2.f32 %v1329_v8 }
 0x300   : > { %v4100_v22 = vpop.eup %4099 }
 0x301   : > { %1097 = vadd.xlane.f32.xlu1 %v4092_v35  ;;  %1355 = vadd.xlane.f32.xlu0 %v4100_v22 }
 0x302   : > { %3804 = vmatprep.mubr.f32.mxu1 %v4100_v22 }
 0x304   : > { %v4102_v4 = vpop.eup %4101 }
 0x305   : > { %1099 = vadd.xlane.f32.xlu1 %v4094_v57  ;;  %1357 = vadd.xlane.f32.xlu0 %v4102_v4 }
 0x306   : > { %3805 = vmatmul.mubr.f32.gmra.mxu1 %v4102_v4 }
 0x308   : > { %v4104_v44 = vpop.eup %4103 }
 0x309   : > { %1101 = vadd.xlane.f32.xlu1 %v4098_v43  ;;  %1359 = vadd.xlane.f32.xlu0 %v4104_v44 }
 0x30a   : > { %3807 = vmatprep.mubr.f32.mxu1 %v4104_v44 }
 0x30c   : > { %v4106_v11 = vpop.eup %4105 }
 0x30d   : > { %1361 = vadd.xlane.f32.xlu0 %v4106_v11  ;;  %3808 = vmatmul.mubr.f32.gmra.mxu1 %v4106_v11 }
 0x336   : > { %v1072_v60 = vpop.xlane.xlu1 %1071 }
 0x337   : > { %4107 = vrcp.f32 %v1072_v60 }
 0x33a   : > { %v1332_v47 = vpop.xlane.xlu1 %1331 }
 0x33b   : > { %4109 = vrcp.f32 %v1332_v47 }
 0x33e   : > { %v1074_v42 = vpop.xlane.xlu0 %1073 }
 0x342   : > { %v1334_v24 = vpop.xlane.xlu0 %1333 }
 0x343   : > { %4111 = vrcp.f32 %v1334_v24  ;;  %v5136_v24 = vld [vmem:[%s6268_s2 + $0x30] sm:$0xff] }
 0x344   : > { %v4108_v33 = vpop.eup %4107 }
 0x346   : > { %v1076_v32 = vpop.xlane.xlu1 %1075 }
 0x348   : > { %v4110_v17 = vpop.eup %4109 }
 0x34a   : > { %v1336_v10 = vpop.xlane.xlu0 %1335 }
 0x34b   : > { %4113 = vrcp.f32 %v1336_v10 }
 0x34c   : > { %4115 = vrcp.f32 %v1074_v42 }
 0x34d   : > { %4117 = vrcp.f32 %v1076_v32  ;;  %v5140_v32 = vrot.slane %v5136_v24, %v4741_v29 }
 0x34e   : > { %v1078_v18 = vpop.xlane.xlu1 %1077 }
 0x350   : > { %v4112_v62 = vpop.eup %4111 }
 0x352   : > { %v1338_v54 = vpop.xlane.xlu0 %1337 }
 0x353   : > { %4119 = vrcp.f32 %v1338_v54 }
 0x356   : > { %v1080_v20 = vpop.xlane.xlu1 %1079  ;;  %v1340_v37 = vpop.xlane.xlu0 %1339 }
 0x357   : > { %4121 = vrcp.f32 %v1340_v37 }
 0x358   : > { %4123 = vrcp.f32 %v1078_v18  ;;  %v4114_v61 = vpop.eup %4113 }
 0x359   : > { %4125 = vrcp.f32 %v1080_v20  ;;  %v4116_v57 = vpop.eup %4115 }
 0x35a   : > { %v1082_v49 = vpop.xlane.xlu1 %1081  ;;  %v4118_v8 = vpop.eup %4117 }
 0x35e   : > { %v1342_v12 = vpop.xlane.xlu0 %1341 }
 0x35f   : > { %4127 = vrcp.f32 %v1342_v12 }
 0x360   : > { %v4120_v47 = vpop.eup %4119 }
 0x362   : > { %v1084_v7 = vpop.xlane.xlu1 %1083 }
 0x364   : > { %v4122_v54 = vpop.eup %4121 }
 0x366   : > { %v1344_v48 = vpop.xlane.xlu0 %1343 }
 0x367   : > { %4129 = vrcp.f32 %v1344_v48 }
 0x368   : > { %4131 = vrcp.f32 %v1082_v49  ;;  %v4124_v49 = vpop.eup %4123 }
 0x369   : > { %4133 = vrcp.f32 %v1084_v7 }
 0x36a   : > { %v1086_v26 = vpop.xlane.xlu1 %1085 }
 0x36e   : > { %v1346_v31 = vpop.xlane.xlu0 %1345 }
 0x36f   : > { %4135 = vrcp.f32 %v1346_v31 }
 0x370   : > { %4137 = vrcp.f32 %v1086_v26 }
 0x372   : > { %v1088_v23 = vpop.xlane.xlu1 %1087 }
 0x373   : > { %4139 = vrcp.f32 %v1088_v23 }
 0x375   : > { %v3732_v13 = vpop.f32.mrf.mxu0 }
 0x376   : > { %v1348_v58 = vpop.xlane.xlu0 %1347  ;;  %v1525_v44 = vmul.f32 %v4116_v57, %v3732_v13  ;;  %v4126_v13 = vpop.eup %4125 }
 0x377   : > { %v1445_v0 = vpop.f32.mrf.mxu0  ;;  %4141 = vrcp.f32 %v1348_v58 }
 0x378   : > { %v1524_v5 = vmul.f32 %v4108_v33, %v1445_v0 }
 0x379   : > { %v3788_v6 = vpop.f32.mrf.mxu1 }
 0x37a   : > { %v5123_v45 = vpop.xlane.xlu1 %1089  ;;  %v1686_v41 = vmul.f32 %v4112_v62, %v3788_v6 }
 0x37b   : > { %v1606_v56 = vpop.f32.mrf.mxu1 }
 0x37c   : > { %v1685_v59 = vmul.f32 %v4110_v17, %v1606_v56  ;;  %v1702_v10 = vadd.f32 %v1686_v41, %v1525_v44 }
 0x37e   : > { %v5125_v14 = vpop.xlane.xlu0 %1349  ;;  %v5127_v46 = vpop.xlane.xlu1 %1091  ;;  %v1701_v11 = vadd.f32 %v1685_v59, %v1524_v5  ;;  %v5150_v0 = vadd.f32 %v5140_v32, %v1702_v10  ;;  %v217_v10 = vld [vmem:[%s6268_s2 + $0x28] sm:$0xff] }
 0x37f   : > { %4143 = vrcp.f32 %v5125_v14  ;;  %3810 = vmatprep.subr.mxu0 %v217_v10 }
 0x380   : > { %v5143_v12 = vadd.f32 %v5140_v32, %v1701_v11  ;;  %4145 = vrcp.f32 %v5123_v45  ;;  %3811 = vmatpush3.msra.mxu0 %v217_v10 }
 0x381   : > { %4147 = vrcp.f32 %v5127_v46 }
 0x382   : > { %v5129_v16 = vpop.xlane.xlu0 %1351  ;;  %v5131_v50 = vpop.xlane.xlu1 %1093 }
 0x383   : > { %4149 = vrcp.f32 %v5129_v16 }
 0x385   : > { %v3735_v63 = vpop.f32.mrf.mxu0 }
 0x386   : > { %v1354_v22 = vpop.xlane.xlu0 %1353  ;;  %v5145_v7 = vpop.xlane.xlu1 %1095  ;;  %v1527_v26 = vmul.f32 %v4124_v49, %v3735_v63  ;;  %v1739_v63 = vsel %vm1737_vm3, %v5150_v0, 0.0 }
 0x387   : > { %v1455_v35 = vpop.f32.mrf.mxu0  ;;  %4151 = vrcp.f32 %v1354_v22 }
 0x388   : > { %v1526_v60 = vmul.f32 %v4118_v8, %v1455_v35  ;;  %4153 = vrcp.f32 %v5131_v50 }
 0x389   : > { %v3791_v27 = vpop.f32.mrf.mxu1  ;;  %4155 = vrcp.f32 %v5145_v7 }
 0x38a   : > { %v1688_v48 = vmul.f32 %v4120_v47, %v3791_v27  ;;  %v5147_v56 = vpop.xlane.xlu0 %1355  ;;  %v1738_v27 = vsel %vm1737_vm3, %v5143_v12, 0.0  ;;  %v1098_v57 = vpop.xlane.xlu1 %1097 }
 0x38b   : > { %v1616_v39 = vpop.f32.mrf.mxu1  ;;  %v1740_v44 = vadd.f32 %v1739_v63, %v1738_v27 }
 0x38c   : > { %v1687_v43 = vmul.f32 %v4114_v61, %v1616_v39  ;;  %v4128_v39 = vpop.eup %4127  ;;  %v1704_v58 = vadd.f32 %v1688_v48, %v1527_v26 }
 0x38d   : > { %v4130_v59 = vpop.eup %4129 }
 0x38e   : > { %v1703_v18 = vadd.f32 %v1687_v43, %v1526_v60  ;;  %v4132_v35 = vpop.eup %4131  ;;  %v1358_v14 = vpop.xlane.xlu0 %1357  ;;  %v5165_v60 = vadd.f32 %v5140_v32, %v1704_v58 }
 0x38f   : > { %v4134_v8 = vpop.eup %4133  ;;  %v1100_v16 = vpop.xlane.xlu1 %1099  ;;  %4157 = vrcp.f32 %v1358_v14 }
 0x390   : > { %v5153_v33 = vadd.f32 %v5140_v32, %v1703_v18  ;;  %4159 = vrcp.f32 %v5147_v56 }
 0x391   : > { %v3738_v4 = vpop.f32.mrf.mxu0  ;;  %4161 = vrcp.f32 %v1098_v57 }
 0x392   : > { %v1741_v5 = vsel %vm1737_vm3, %v5153_v33, 0.0  ;;  %v1529_v45 = vmul.f32 %v4132_v35, %v3738_v4  ;;  %v215_v4 = vld [vmem:[%s6268_s2 + $0x18] sm:$0xff] }
 0x393   : > { %v1465_v20 = vpop.f32.mrf.mxu0  ;;  %v1742_v46 = vadd.f32 %v1741_v5, %v1740_v44  ;;  %v1102_v44 = vpop.xlane.xlu1 %1101 }
 0x394   : > { %v1528_v23 = vmul.f32 %v4126_v13, %v1465_v20  ;;  %v4136_v20 = vpop.eup %4135  ;;  %4163 = vrcp.f32 %v1102_v44 }
 0x395   : > { %v3794_v9 = vpop.f32.mrf.mxu1  ;;  %v4138_v48 = vpop.eup %4137 }
 0x396   : > { %v1690_v41 = vmul.f32 %v4128_v39, %v3794_v9  ;;  %v216_v9 = vld [vmem:[%s6268_s2 + $0x20] sm:$0xff]  ;;  %v1360_v39 = vpop.xlane.xlu0 %1359 }
 0x397   : > { %v1626_v42 = vpop.f32.mrf.mxu1  ;;  %3812 = vmatprep.subr.mxu0 %v216_v9 }
 0x398   : > { %v1689_v6 = vmul.f32 %v4122_v54, %v1626_v42  ;;  %v1706_v18 = vadd.f32 %v1690_v41, %v1529_v45  ;;  %3813 = vmatpush3.msra.mxu0 %v216_v9 }
 0x399   : > { %3814 = vmatprep.subr.mxu0 %v215_v4 }
 0x39a   : > { %v1705_v62 = vadd.f32 %v1689_v6, %v1528_v23  ;;  %v1743_v6 = vsel %vm1737_vm3, %v5165_v60, 0.0  ;;  %v214_v23 = vld [vmem:[%s6268_s2 + $0x10] sm:$0xff]  ;;  %v5189_v50 = vadd.f32 %v5140_v32, %v1706_v18  ;;  %3815 = vmatpush3.msra.mxu0 %v215_v4  ;;  %v1362_v10 = vpop.xlane.xlu0 %1361 }
 0x39b   : > { %v1744_v27 = vadd.f32 %v1743_v6, %v1742_v46  ;;  %3816 = vmatprep.subr.mxu0 %v214_v23  ;;  %4165 = vrcp.f32 %v1362_v10 }
 0x39c   : > { %v5168_v42 = vadd.f32 %v5140_v32, %v1705_v62  ;;  %3817 = vmatpush3.msra.mxu0 %v214_v23  ;;  %v1747_v45 = vsel %vm1737_vm3, %v5189_v50, 0.0  ;;  %4167 = vrcp.f32 %v1100_v16 }
 0x39d   : > { %4169 = vrcp.f32 %v1360_v39 }
 0x39e   : > { %v1745_v22 = vsel %vm1737_vm3, %v5168_v42, 0.0 }
 0x3a1   : > { %v3741_v31 = vpop.f32.mrf.mxu0 }
 0x3a2   : > { %v1531_v62 = vmul.f32 %v4138_v48, %v3741_v31 }
 0x3a3   : > { %v1475_v61 = vpop.f32.mrf.mxu0 }
 0x3a4   : > { %v1530_v47 = vmul.f32 %v4134_v8, %v1475_v61 }
 0x3a5   : > { %v3797_v37 = vpop.f32.mrf.mxu1 }
 0x3a6   : > { %v1692_v13 = vmul.f32 %v4136_v20, %v3797_v37  ;;  %v1746_v37 = vadd.f32 %v1745_v22, %v1744_v27 }
 0x3a7   : > { %v1636_v17 = vpop.f32.mrf.mxu1 }
 0x3a8   : > { %v1691_v43 = vmul.f32 %v4130_v59, %v1636_v17  ;;  %v4140_v17 = vpop.eup %4139  ;;  %v1708_v41 = vadd.f32 %v1692_v13, %v1531_v62  ;;  %v1748_v9 = vadd.f32 %v1747_v45, %v1746_v37 }
 0x3a9   : > { %v4142_v58 = vpop.eup %4141 }
 0x3aa   : > { %v1707_v54 = vadd.f32 %v1691_v43, %v1530_v47  ;;  %v4144_v43 = vpop.eup %4143  ;;  %v5201_v18 = vadd.f32 %v5140_v32, %v1708_v41 }
 0x3ab   : > { %v4146_v31 = vpop.eup %4145 }
 0x3ac   : > { %v5192_v59 = vadd.f32 %v5140_v32, %v1707_v54  ;;  %v4148_v14 = vpop.eup %4147  ;;  %v1751_v23 = vsel %vm1737_vm3, %v5201_v18, 0.0 }
 0x3ad   : > { %v4150_v20 = vpop.eup %4149 }
 0x3ae   : > { %v1749_v7 = vsel %vm1737_vm3, %v5192_v59, 0.0  ;;  %v4152_v6 = vpop.eup %4151 }
 0x3af   : > { %v1750_v4 = vadd.f32 %v1749_v7, %v1748_v9  ;;  %v4154_v27 = vpop.eup %4153 }
 0x3b0   : > { %v4156_v39 = vpop.eup %4155 }
 0x3b1   : > { %v3744_v11 = vpop.f32.mrf.mxu0 }
 0x3b2   : > { %v1533_v54 = vmul.f32 %v4146_v31, %v3744_v11 }
 0x3b3   : > { %v1485_v49 = vpop.f32.mrf.mxu0 }
 0x3b4   : > { %v1532_v35 = vmul.f32 %v4140_v17, %v1485_v49 }
 0x3b6   : > { %v3800_v26 = vpop.f32.mrf.mxu1  ;;  %v3747_v63 = vpop.f32.mrf.mxu0 }
 0x3b7   : > { %v1694_v47 = vmul.f32 %v4144_v43, %v3800_v26 }
 0x3b8   : > { %v1646_v61 = vpop.f32.mrf.mxu1  ;;  %v1495_v46 = vpop.f32.mrf.mxu0 }
 0x3b9   : > { %v1693_v5 = vmul.f32 %v4142_v58, %v1646_v61  ;;  %v1710_v49 = vadd.f32 %v1694_v47, %v1533_v54  ;;  %v1534_v22 = vmul.f32 %v4148_v14, %v1495_v46  ;;  %v1752_v58 = vadd.f32 %v1751_v23, %v1750_v4 }
 0x3ba   : > { %v3750_v13 = vpop.f32.mrf.mxu0  ;;  %v1535_v61 = vmul.f32 %v4154_v27, %v3747_v63 }
 0x3bb   : > { %v1709_v8 = vadd.f32 %v1693_v5, %v1532_v35  ;;  %v5211_v37 = vadd.f32 %v5140_v32, %v1710_v49 }
 0x3bc   : > { %v1505_v16 = vpop.f32.mrf.mxu0 }
 0x3bd   : > { %v5204_v56 = vadd.f32 %v5140_v32, %v1709_v8  ;;  %v4158_v8 = vpop.eup %4157  ;;  %v1755_v44 = vsel %vm1737_vm3, %v5211_v37, 0.0  ;;  %v1536_v10 = vmul.f32 %v4156_v39, %v1505_v16 }
 0x3be   : > { %v3803_v57 = vpop.f32.mrf.mxu1  ;;  %v4160_v31 = vpop.eup %4159 }
 0x3bf   : > { %v1753_v11 = vsel %vm1737_vm3, %v5204_v56, 0.0  ;;  %v1696_v17 = vmul.f32 %v4152_v6, %v3803_v57  ;;  %v4162_v47 = vpop.eup %4161  ;;  %v3753_v9 = vpop.f32.mrf.mxu0 }
 0x3c0   : > { %v1656_v48 = vpop.f32.mrf.mxu1  ;;  %v1754_v35 = vadd.f32 %v1753_v11, %v1752_v58  ;;  %v1537_v54 = vmul.f32 %v4162_v47, %v3750_v13  ;;  %v4164_v49 = vpop.eup %4163 }
 0x3c1   : > { %v1695_v26 = vmul.f32 %v4150_v20, %v1656_v48  ;;  %v1712_v41 = vadd.f32 %v1696_v17, %v1535_v61  ;;  %v4166_v6 = vpop.eup %4165  ;;  %v1539_v17 = vmul.f32 %v4164_v49, %v3753_v9 }
 0x3c2   : > { %v1756_v46 = vadd.f32 %v1755_v44, %v1754_v35  ;;  %v4168_v11 = vpop.eup %4167 }
 0x3c3   : > { %v1711_v62 = vadd.f32 %v1695_v26, %v1534_v22  ;;  %v5221_v57 = vadd.f32 %v5140_v32, %v1712_v41  ;;  %v1515_v22 = vpop.f32.mrf.mxu0  ;;  %v4170_v13 = vpop.eup %4169 }
 0x3c4   : > { %v1538_v16 = vmul.f32 %v4168_v11, %v1515_v22 }
 0x3c5   : > { %v5214_v5 = vadd.f32 %v5140_v32, %v1711_v62  ;;  %v1759_v27 = vsel %vm1737_vm3, %v5221_v57, 0.0 }
 0x3c6   : > { %v3806_v43 = vpop.f32.mrf.mxu1 }
 0x3c7   : > { %v1757_v45 = vsel %vm1737_vm3, %v5214_v5, 0.0  ;;  %v1698_v63 = vmul.f32 %v4158_v8, %v3806_v43 }
 0x3c8   : > { %v1666_v7 = vpop.f32.mrf.mxu1  ;;  %v1758_v4 = vadd.f32 %v1757_v45, %v1756_v46 }
 0x3c9   : > { %v1697_v14 = vmul.f32 %v4160_v31, %v1666_v7  ;;  %v1714_v48 = vadd.f32 %v1698_v63, %v1537_v54  ;;  %v4380_v7 = vmov 8  }
 0x3ca   : > { %v1760_v62 = vadd.f32 %v1759_v27, %v1758_v4  ;;  %4019 = vset.pattern.permute.xlu1 %v4380_v7  ;;  %4021 = vset.pattern.permute.xlu0 %v4380_v7 }
 0x3cb   : > { %v1713_v20 = vadd.f32 %v1697_v14, %v1536_v10  ;;  %v5231_v39 = vadd.f32 %v5140_v32, %v1714_v48 }
 0x3cd   : > { %v5224_v26 = vadd.f32 %v5140_v32, %v1713_v20  ;;  %v3809_v23 = vpop.f32.mrf.mxu1  ;;  %v1763_v44 = vsel %vm1737_vm3, %v5231_v39, 0.0 }
 0x3ce   : > { %v1700_v58 = vmul.f32 %v4166_v6, %v3809_v23 }
 0x3cf   : > { %v1761_v61 = vsel %vm1737_vm3, %v5224_v26, 0.0  ;;  %v1676_v35 = vpop.f32.mrf.mxu1 }
 0x3d0   : > { %v1716_v41 = vadd.f32 %v1700_v58, %v1539_v17  ;;  %v1699_v43 = vmul.f32 %v4170_v13, %v1676_v35  ;;  %v1762_v8 = vadd.f32 %v1761_v61, %v1760_v62 }
 0x3d2   : > { %v1715_v31 = vadd.f32 %v1699_v43, %v1538_v16  ;;  %v5236_v45 = vadd.f32 %v5140_v32, %v1716_v41  ;;  %v1764_v47 = vadd.f32 %v1763_v44, %v1762_v8 }
 0x3d4   : > { %v1735_v63 = vadd.f32 %v5140_v32, %v1715_v31  ;;  %v1767_v46 = vsel %vm1737_vm3, %v5236_v45, 0.0 }
 0x3d6   : > { %v1765_v10 = vsel %vm1737_vm3, %v1735_v63, 0.0 }
 0x3d7   : > { %v1766_v9 = vadd.f32 %v1765_v10, %v1764_v47 }
 0x3d9   : > { %v1768_v14 = vadd.f32 %v1767_v46, %v1766_v9 }
 0x3db   : > { %v1769_v54 = vrot.slane %v1768_v14, 4 }
 0x3dd   : > { %v1770_v4 = vadd.f32 %v1769_v54, %v1768_v14 }
 0x3df   : > { %v1771_v20 = vrot.slane %v1770_v4, 2 }
 0x3e1   : > { %v1772_v49 = vadd.f32 %v1771_v20, %v1770_v4 }
 0x3e3   : > { %v1773_v48 = vrot.slane %v1772_v49, 1 }
 0x3e5   : > { %v1774_v6 = vadd.f32 %v1773_v48, %v1772_v49 }
 0x3e7   : > { %v1776_v32 = vmul.f32 0.0078125, %v1774_v6 }
 0x3e9   : > { %v5245_v22 = vsub.f32 %v5143_v12, %v1776_v32  ;;  %v5248_v23 = vsub.f32 %v5150_v0, %v1776_v32  ;;  %v5251_v11 = vsub.f32 %v5153_v33, %v1776_v32  ;;  %v5254_v17 = vsub.f32 %v5165_v60, %v1776_v32 }
 0x3ea   : > { %v5261_v13 = vsub.f32 %v5168_v42, %v1776_v32  ;;  %v5266_v0 = vsub.f32 %v5189_v50, %v1776_v32  ;;  %v5273_v35 = vsub.f32 %v5192_v59, %v1776_v32  ;;  %v5279_v50 = vsub.f32 %v5201_v18, %v1776_v32 }
 0x3eb   : > { %v1793_v27 = vmul.f32 %v5245_v22, %v5245_v22  ;;  %v1794_v58 = vmul.f32 %v5248_v23, %v5248_v23  ;;  %v1795_v12 = vmul.f32 %v5251_v11, %v5251_v11  ;;  %v1796_v33 = vmul.f32 %v5254_v17, %v5254_v17 }
 0x3ec   : > { %v1797_v42 = vmul.f32 %v5261_v13, %v5261_v13  ;;  %v1798_v43 = vmul.f32 %v5266_v0, %v5266_v0  ;;  %v5285_v44 = vsub.f32 %v5204_v56, %v1776_v32  ;;  %v1799_v59 = vmul.f32 %v5273_v35, %v5273_v35 }
 0x3ed   : > { %v1809_v60 = vsel %vm1737_vm3, %v1793_v27, 0.0  ;;  %v1810_v62 = vsel %vm1737_vm3, %v1794_v58, 0.0  ;;  %v1812_v16 = vsel %vm1737_vm3, %v1795_v12, 0.0  ;;  %v1814_v8 = vsel %vm1737_vm3, %v1796_v33, 0.0 }
 0x3ee   : > { %v1811_v61 = vadd.f32 %v1810_v62, %v1809_v60  ;;  %v1816_v47 = vsel %vm1737_vm3, %v1797_v42, 0.0  ;;  %v5291_v9 = vsub.f32 %v5211_v37, %v1776_v32  ;;  %v1800_v18 = vmul.f32 %v5279_v50, %v5279_v50 }
 0x3ef   : > { %v1818_v46 = vsel %vm1737_vm3, %v1798_v43, 0.0  ;;  %v5297_v54 = vsub.f32 %v5214_v5, %v1776_v32  ;;  %v1801_v56 = vmul.f32 %v5285_v44, %v5285_v44  ;;  %v1820_v4 = vsel %vm1737_vm3, %v1799_v59, 0.0 }
 0x3f0   : > { %v1813_v41 = vadd.f32 %v1812_v16, %v1811_v61  ;;  %v5303_v49 = vsub.f32 %v5221_v57, %v1776_v32  ;;  %v1802_v37 = vmul.f32 %v5291_v9, %v5291_v9  ;;  %v1822_v48 = vsel %vm1737_vm3, %v1800_v18, 0.0 }
 0x3f1   : > { %v5309_v27 = vsub.f32 %v5224_v26, %v1776_v32  ;;  %v1803_v5 = vmul.f32 %v5297_v54, %v5297_v54  ;;  %v1824_v58 = vsel %vm1737_vm3, %v1801_v56, 0.0  ;;  %v5315_v33 = vsub.f32 %v5231_v39, %v1776_v32 }
 0x3f2   : > { %v1815_v31 = vadd.f32 %v1814_v8, %v1813_v41  ;;  %v1804_v57 = vmul.f32 %v5303_v49, %v5303_v49  ;;  %v1826_v60 = vsel %vm1737_vm3, %v1802_v37, 0.0  ;;  %v5320_v61 = vsub.f32 %v1735_v63, %v1776_v32 }
 0x3f3   : > { %v1805_v26 = vmul.f32 %v5309_v27, %v5309_v27  ;;  %v1828_v42 = vsel %vm1737_vm3, %v1803_v5, 0.0  ;;  %v5326_v41 = vsub.f32 %v5236_v45, %v1776_v32  ;;  %v1806_v39 = vmul.f32 %v5315_v33, %v5315_v33 }
 0x3f4   : > { %v1817_v10 = vadd.f32 %v1816_v47, %v1815_v31  ;;  %v1830_v43 = vsel %vm1737_vm3, %v1804_v57, 0.0  ;;  %v1807_v31 = vmul.f32 %v5320_v61, %v5320_v61 }
 0x3f5   : > { %v1832_v63 = vsel %vm1737_vm3, %v1805_v26, 0.0  ;;  %v1808_v47 = vmul.f32 %v5326_v41, %v5326_v41 }
 0x3f6   : > { %v1819_v14 = vadd.f32 %v1818_v46, %v1817_v10  ;;  %v1834_v10 = vsel %vm1737_vm3, %v1806_v39, 0.0  ;;  %v1836_v45 = vsel %vm1737_vm3, %v1807_v31, 0.0 }
 0x3f7   : > { %v1838_v46 = vsel %vm1737_vm3, %v1808_v47, 0.0 }
 0x3f8   : > { %v1821_v20 = vadd.f32 %v1820_v4, %v1819_v14 }
 0x3fa   : > { %v1823_v6 = vadd.f32 %v1822_v48, %v1821_v20 }
 0x3fc   : > { %v1825_v12 = vadd.f32 %v1824_v58, %v1823_v6 }
 0x3fe   : > { %v1827_v62 = vadd.f32 %v1826_v60, %v1825_v12  ;;  %v1872_v12 = vsub.s32 2, %v4462_v21 }
 0x400   : > { %v1829_v16 = vadd.f32 %v1828_v42, %v1827_v62  ;;  %v1873_v26 = vrot.slane %v5136_v24, %v1872_v12 }
 0x402   : > { %v1831_v8 = vadd.f32 %v1830_v43, %v1829_v16 }
 0x404   : > { %v1833_v59 = vadd.f32 %v1832_v63, %v1831_v8 }
 0x406   : > { %v1835_v18 = vadd.f32 %v1834_v10, %v1833_v59 }
 0x408   : > { %v1837_v32 = vadd.f32 %v1836_v45, %v1835_v18 }
 0x40a   : > { %v1839_v14 = vadd.f32 %v1838_v46, %v1837_v32 }
 0x40c   : > { %v1840_v56 = vrot.slane %v1839_v14, 4 }
 0x40e   : > { %v1841_v4 = vadd.f32 %v1840_v56, %v1839_v14 }
 0x410   : > { %v1842_v20 = vrot.slane %v1841_v4, 2 }
 0x412   : > { %v1843_v37 = vadd.f32 %v1842_v20, %v1841_v4 }
 0x414   : > { %v1844_v48 = vrot.slane %v1843_v37, 1 }
 0x416   : > { %v1845_v6 = vadd.f32 %v1844_v48, %v1843_v37 }
 0x418   : > { %v1846_v5 = vmul.f32 0.0078125, %v1845_v6 }
 0x41a   : > { %v1847_v58 = vadd.f32 1e-05, %v1846_v5 }
 0x41c   : > { %4171 = vrsqrt.f32 %v1847_v58 }
 0x429   : > { %v4172_v57 = vpop.eup %4171 }
 0x42a   : > { %v1849_v60 = vmul.f32 %v5136_v24, %v4172_v57 }
 0x42c   : > { %v1853_v62 = vrot.slane %v1849_v60, %v4744_v30 }
 0x42e   : > { %v1854_v42 = vmul.f32 %v1853_v62, %v5245_v22  ;;  %v1855_v16 = vmul.f32 %v1853_v62, %v5248_v23  ;;  %v1856_v39 = vmul.f32 %v1853_v62, %v5251_v11  ;;  %v1857_v31 = vmul.f32 %v1853_v62, %v5254_v17 }
 0x42f   : > { %v1858_v59 = vmul.f32 %v1853_v62, %v5261_v13  ;;  %v1859_v22 = vmul.f32 %v1853_v62, %v5266_v0  ;;  %v1860_v23 = vmul.f32 %v1853_v62, %v5273_v35  ;;  %v1861_v17 = vmul.f32 %v1853_v62, %v5279_v50 }
 0x430   : > { %v1874_v43 = vadd.f32 %v1873_v26, %v1854_v42  ;;  %v1875_v8 = vadd.f32 %v1873_v26, %v1855_v16  ;;  %v1876_v63 = vadd.f32 %v1873_v26, %v1856_v39  ;;  %v1877_v24 = vadd.f32 %v1873_v26, %v1857_v31 }
 0x431   : > { %v1878_v47 = vadd.f32 %v1873_v26, %v1858_v59  ;;  %v1879_v11 = vadd.f32 %v1873_v26, %v1859_v22  ;;  %v1880_v10 = vadd.f32 %v1873_v26, %v1860_v23  ;;  %v1862_v13 = vmul.f32 %v1853_v62, %v5285_v44 }
 0x432   : > { %3818 = vmatprep.mubr.msk.f32.mxu0 %vm1737_vm3, %v1874_v43  ;;  %v1881_v18 = vadd.f32 %v1873_v26, %v1861_v17  ;;  %v1863_v0 = vmul.f32 %v1853_v62, %v5291_v9  ;;  %v1864_v35 = vmul.f32 %v1853_v62, %v5297_v54  ;;  %v1865_v50 = vmul.f32 %v1853_v62, %v5303_v49 }
 0x433   : > { %3819 = vmatmul.mubr.msk.f32.vlgmr.msra.gmra.mxu0 %vm1737_vm3, %v1875_v8  ;;  %v1882_v45 = vadd.f32 %v1873_v26, %v1862_v13  ;;  %v1866_v44 = vmul.f32 %v1853_v62, %v5309_v27  ;;  %v1867_v9 = vmul.f32 %v1853_v62, %v5315_v33  ;;  %v1868_v56 = vmul.f32 %v1853_v62, %v5320_v61 }
 0x434   : > { %3821 = vmatprep.mubr.msk.f32.mxu0 %vm1737_vm3, %v1876_v63  ;;  %v1883_v32 = vadd.f32 %v1873_v26, %v1863_v0  ;;  %v1884_v46 = vadd.f32 %v1873_v26, %v1864_v35  ;;  %v1885_v14 = vadd.f32 %v1873_v26, %v1865_v50  ;;  %v1869_v49 = vmul.f32 %v1853_v62, %v5326_v41 }
 0x435   : > { %v1886_v54 = vadd.f32 %v1873_v26, %v1866_v44  ;;  %v1887_v4 = vadd.f32 %v1873_v26, %v1867_v9  ;;  %v1888_v20 = vadd.f32 %v1873_v26, %v1868_v56  ;;  %v6274_v41 = vmov 9  }
 0x436   : > { %v1889_v27 = vadd.f32 %v1873_v26, %v1869_v49 }
 0x437   : > { %3822 = vmatmul.mubr.msk.f32.gmra.mxu0 %vm1737_vm3, %v1877_v24 }
 0x438   : > { %3824 = vmatprep.mubr.msk.f32.mxu0 %vm1737_vm3, %v1878_v47 }
 0x43b   : > { %3825 = vmatmul.mubr.msk.f32.gmra.mxu0 %vm1737_vm3, %v1879_v11 }
 0x43c   : > { %3827 = vmatprep.mubr.msk.f32.mxu0 %vm1737_vm3, %v1880_v10 }
 0x43f   : > { %3828 = vmatmul.mubr.msk.f32.gmra.mxu0 %vm1737_vm3, %v1881_v18 }
 0x440   : > { %3830 = vmatprep.mubr.msk.f32.mxu0 %vm1737_vm3, %v1882_v45 }
 0x443   : > { %3831 = vmatmul.mubr.msk.f32.gmra.mxu0 %vm1737_vm3, %v1883_v32 }
 0x444   : > { %3833 = vmatprep.mubr.msk.f32.mxu0 %vm1737_vm3, %v1884_v46 }
 0x447   : > { %3834 = vmatmul.mubr.msk.f32.gmra.mxu0 %vm1737_vm3, %v1885_v14 }
 0x448   : > { %3836 = vmatprep.mubr.msk.f32.mxu0 %vm1737_vm3, %v1886_v54 }
 0x44b   : > { %3837 = vmatmul.mubr.msk.f32.gmra.mxu0 %vm1737_vm3, %v1887_v4 }
 0x44c   : > { %3839 = vmatprep.mubr.msk.f32.mxu0 %vm1737_vm3, %v1888_v20 }
 0x44f   : > { %3840 = vmatmul.mubr.msk.f32.gmra.mxu0 %vm1737_vm3, %v1889_v27 }
 0x4f3   : > { %v5375_v37 = vpop.f32.mrf.mxu0 }
 0x4f4   : > { %6328 = vst [vmem:[#allocation4_spill] sm:$0xff] %v5375_v37  ;;  %2184 = vperm.xlu1 %4019, %v5375_v37   ;;  %2101 = vrot.lane.b32.xlu0 %v5375_v37, %s4381_s13 }
 0x4f5   : > { %v5380_v33 = vpop.f32.mrf.mxu0 }
 0x4f6   : > { %6329 = vst [vmem:[#allocation5_spill] sm:$0xff] %v5380_v33 }
 0x4f7   : > { %v5382_v61 = vpop.f32.mrf.mxu0 }
 0x4f8   : > { %4020 = vset.pattern.permute.xlu1 %v6274_v41  ;;  %2180 = vperm.xlu0 %4021, %v5380_v33  }
 0x4f9   : > { %2444 = vperm.xlu1 %4020, %v5375_v37   ;;  %v5387_v48 = vpop.f32.mrf.mxu0 }
 0x4fb   : > { %v3826_v6 = vpop.f32.mrf.mxu0 }
 0x4fc   : > { %4022 = vset.pattern.permute.xlu0 %v6274_v41 }
 0x4fd   : > { %2440 = vperm.xlu0 %4022, %v5380_v33   ;;  %2099 = vrot.lane.b32.xlu1 %v5380_v33, %s4381_s13  ;;  %v5393_v5 = vpop.f32.mrf.mxu0 }
 0x4ff   : > { %v5395_v58 = vpop.f32.mrf.mxu0 }
 0x501   : > { %4023 = vset.pattern.permute.xlu0 %v4380_v7  ;;  %2105 = vrot.lane.b32.xlu1 %v5382_v61, %s4381_s13  ;;  %v5400_v12 = vpop.f32.mrf.mxu0 }
 0x502   : > { %2192 = vperm.xlu0 %4023, %v5382_v61  }
 0x503   : > { %v5403_v57 = vpop.f32.mrf.mxu0 }
 0x505   : > { %2452 = vperm.xlu1 %4020, %v5382_v61   ;;  %v5406_v60 = vpop.f32.mrf.mxu0 }
 0x506   : > { %2866 = vrot.lane.b32.xlu0 %v5382_v61, %s4383_s14 }
 0x507   : > { %v5410_v62 = vpop.f32.mrf.mxu0 }
 0x509   : > { %2103 = vrot.lane.b32.xlu1 %v5387_v48, %s4381_s13  ;;  %v5414_v26 = vpop.f32.mrf.mxu0 }
 0x50a   : > { %2200 = vperm.xlu0 %4023, %v3826_v6   ;;  %4024 = vset.pattern.permute.xlu1 %v4380_v7 }
 0x50b   : > { %v5417_v42 = vpop.f32.mrf.mxu0 }
 0x50d   : > { %2188 = vperm.xlu1 %4024, %v5387_v48   ;;  %v5420_v16 = vpop.f32.mrf.mxu0 }
 0x50e   : > { %2107 = vrot.lane.b32.xlu0 %v5393_v5, %s4381_s13 }
 0x50f   : > { %v5424_v39 = vpop.f32.mrf.mxu0 }
 0x510   : > { %3842 = vmatprep.subr.mxu1 %v5424_v39 }
 0x511   : > { %4025 = vset.pattern.permute.xlu1 %v6274_v41  ;;  %v5428_v43 = vpop.f32.mrf.mxu0  ;;  %3843 = vmatpush3.msra.mxu1 %v5424_v39 }
 0x512   : > { %2448 = vperm.xlu1 %4025, %v5387_v48   ;;  %2208 = vperm.xlu0 %4023, %v5395_v58  }
 0x513   : > { %3844 = vmatprep.subr.mxu1 %v5428_v43 }
 0x514   : > { %3845 = vmatpush3.msra.mxu1 %v5428_v43 }
 0x515   : > { %3846 = vmatprep.subr.mxu1 %v5417_v42 }
 0x516   : > { %3847 = vmatpush3.msra.mxu1 %v5417_v42  ;;  %2109 = vrot.lane.b32.xlu1 %v3826_v6, %s4381_s13 }
 0x517   : > { %2111 = vrot.lane.b32.xlu0 %v5400_v12, %s4381_s13  ;;  %3848 = vmatprep.subr.mxu1 %v5420_v16 }
 0x518   : > { %3849 = vmatpush3.msra.mxu1 %v5420_v16 }
 0x519   : > { %3850 = vmatprep.subr.mxu1 %v5410_v62 }
 0x51a   : > { %3851 = vmatpush3.msra.mxu1 %v5410_v62  ;;  %2460 = vperm.xlu1 %4025, %v3826_v6  }
 0x51b   : > { %2872 = vrot.lane.b32.xlu0 %v5400_v12, %s4383_s14  ;;  %3852 = vmatprep.subr.mxu1 %v5414_v26 }
 0x51c   : > { %3853 = vmatpush3.msra.mxu1 %v5414_v26 }
 0x51d   : > { %3854 = vmatprep.subr.mxu1 %v5403_v57 }
 0x51e   : > { %3855 = vmatpush3.msra.mxu1 %v5403_v57  ;;  %2870 = vrot.lane.b32.xlu1 %v3826_v6, %s4383_s14 }
 0x51f   : > { %2216 = vperm.xlu0 %4023, %v5403_v57   ;;  %3856 = vmatprep.subr.mxu1 %v5406_v60 }
 0x520   : > { %3857 = vmatpush3.msra.mxu1 %v5406_v60  ;;  %4026 = vset.pattern.permute.xlu1 %v4380_v7 }
 0x521   : > { %3858 = vmatprep.subr.mxu1 %v5395_v58 }
 0x522   : > { %3859 = vmatpush3.msra.mxu1 %v5395_v58  ;;  %2196 = vperm.xlu1 %4026, %v5393_v5  }
 0x523   : > { %2115 = vrot.lane.b32.xlu0 %v5406_v60, %s4381_s13  ;;  %3860 = vmatprep.subr.mxu1 %v5400_v12 }
 0x524   : > { %3861 = vmatpush3.msra.mxu1 %v5400_v12 }
 0x525   : > { %3862 = vmatprep.subr.mxu1 %v3826_v6 }
 0x526   : > { %3863 = vmatpush3.msra.mxu1 %v3826_v6  ;;  %4027 = vset.pattern.permute.xlu1 %v6274_v41 }
 0x527   : > { %2876 = vrot.lane.b32.xlu0 %v5406_v60, %s4383_s14  ;;  %3864 = vmatprep.subr.mxu1 %v5393_v5 }
 0x528   : > { %2456 = vperm.xlu1 %4027, %v5393_v5   ;;  %3865 = vmatpush3.msra.mxu1 %v5393_v5 }
 0x529   : > { %3866 = vmatprep.subr.mxu1 %v5382_v61 }
 0x52a   : > { %3867 = vmatpush3.msra.mxu1 %v5382_v61 }
 0x52b   : > { %2224 = vperm.xlu0 %4023, %v5410_v62   ;;  %3868 = vmatprep.subr.mxu1 %v5387_v48 }
 0x52c   : > { %2868 = vrot.lane.b32.xlu1 %v5393_v5, %s4383_s14  ;;  %3869 = vmatpush3.msra.mxu1 %v5387_v48 }
 0x52d   : > { %3870 = vmatprep.subr.mxu1 %v5375_v37 }
 0x52e   : > { %3871 = vmatpush3.msra.mxu1 %v5375_v37 }
 0x52f   : > { %2882 = vrot.lane.b32.xlu0 %v5410_v62, %s4383_s14  ;;  %3872 = vmatprep.subr.mxu1 %v5380_v33 }
 0x530   : > { %2113 = vrot.lane.b32.xlu1 %v5395_v58, %s4381_s13  ;;  %3873 = vmatpush3.msra.mxu1 %v5380_v33 }
 0x533   : > { %2119 = vrot.lane.b32.xlu0 %v5414_v26, %s4381_s13 }
 0x534   : > { %2468 = vperm.xlu1 %4027, %v5395_v58  }
 0x537   : > { %2880 = vrot.lane.b32.xlu0 %v5414_v26, %s4383_s14 }
 0x538   : > { %2874 = vrot.lane.b32.xlu1 %v5395_v58, %s4383_s14 }
 0x539   : > { %4028 = vset.pattern.permute.xlu1 %v4380_v7 }
 0x53b   : > { %2886 = vrot.lane.b32.xlu0 %v5417_v42, %s4383_s14 }
 0x53c   : > { %2204 = vperm.xlu1 %4028, %v5400_v12  }
 0x53f   : > { %2123 = vrot.lane.b32.xlu0 %v5420_v16, %s4381_s13 }
 0x540   : > { %4029 = vset.pattern.permute.xlu1 %v6274_v41 }
 0x541   : > { %2464 = vperm.xlu1 %4029, %v5400_v12  }
 0x543   : > { %2127 = vrot.lane.b32.xlu0 %v5428_v43, %s4381_s13 }
 0x545   : > { %2117 = vrot.lane.b32.xlu1 %v5403_v57, %s4381_s13 }
 0x549   : > { %2476 = vperm.xlu1 %4029, %v5403_v57  }
 0x54d   : > { %2878 = vrot.lane.b32.xlu1 %v5403_v57, %s4383_s14 }
 0x54e   : > { %4030 = vset.pattern.permute.xlu1 %v4380_v7 }
 0x551   : > { %2212 = vperm.xlu1 %4030, %v5406_v60  }
 0x555   : > { %4031 = vset.pattern.permute.xlu1 %v6274_v41 }
 0x556   : > { %2472 = vperm.xlu1 %4031, %v5406_v60  }
 0x55a   : > { %2121 = vrot.lane.b32.xlu1 %v5410_v62, %s4381_s13 }
 0x55e   : > { %2484 = vperm.xlu1 %4031, %v5410_v62  }
 0x562   : > { %4032 = vset.pattern.permute.xlu1 %v4380_v7 }
 0x563   : > { %2220 = vperm.xlu1 %4032, %v5414_v26  }
 0x566   : > { %v2102_v8 = vpop.permute.xlu0 %2101 }
 0x567   : > { %4033 = vset.pattern.permute.xlu1 %v6274_v41 }
 0x568   : > { %2480 = vperm.xlu1 %4033, %v5414_v26  }
 0x56c   : > { %2125 = vrot.lane.b32.xlu1 %v5417_v42, %s4381_s13 }
 0x56d   : > { %4034 = vset.pattern.permute.xlu1 %v4380_v7 }
 0x56f   : > { %v5519_v31 = vpop.permute.xlu1 %2184 }
 0x570   : > { %2232 = vperm.xlu1 %4034, %v5417_v42  }
 0x573   : > { %v5522_v63 = vpop.permute.xlu0 %2180 }
 0x574   : > { %4035 = vset.pattern.permute.xlu1 %v6274_v41  ;;  %v5525_v59 = vpop.permute.xlu1 %2444 }
 0x575   : > { %2492 = vperm.xlu1 %4035, %v5417_v42  }
 0x578   : > { %v5528_v24 = vpop.permute.xlu0 %2440  ;;  %v2100_v22 = vpop.permute.xlu1 %2099 }
 0x579   : > { %4036 = vset.pattern.permute.xlu1 %v4380_v7  ;;  %2147 = vxpose.xlu0.b32.start [1/16] (narrow) %v2100_v22, 8 }
 0x57a   : > { %2228 = vperm.xlu1 %4036, %v5420_v16  }
 0x57c   : > { %v2106_v47 = vpop.permute.xlu1 %2105 }
 0x57d   : > { %v5532_v23 = vpop.permute.xlu0 %2192  ;;  %2148 = vxpose.xlu0.b32.cont [2/16] (narrow) %v2102_v8, 8 }
 0x57e   : > { %4037 = vset.pattern.permute.xlu1 %v6274_v41 }
 0x57f   : > { %2488 = vperm.xlu1 %4037, %v5420_v16  }
 0x580   : > { %v5536_v11 = vpop.permute.xlu1 %2452 }
 0x581   : > { %v5538_v17 = vpop.permute.xlu0 %2866 }
 0x582   : > { %6330 = vst [vmem:[#allocation6_spill] sm:$0xff] %v5538_v17 }
 0x583   : > { %2884 = vrot.lane.b32.xlu1 %v5420_v16, %s4383_s14 }
 0x584   : > { %v2104_v10 = vpop.permute.xlu1 %2103  ;;  %4038 = vset.pattern.permute.xlu1 %v4380_v7 }
 0x585   : > { %v5543_v13 = vpop.permute.xlu0 %2200  ;;  %2149 = vxpose.xlu0.b32.cont [3/16] (narrow) %v2104_v10, 8 }
 0x587   : > { %2129 = vrot.lane.b32.xlu1 %v5424_v39, %s4381_s13 }
 0x588   : > { %v5547_v18 = vpop.permute.xlu1 %2188 }
 0x589   : > { %v2108_v0 = vpop.permute.xlu0 %2107  ;;  %2150 = vxpose.xlu0.b32.cont [4/16] (narrow) %v2106_v47, 8 }
 0x58b   : > { %2864 = vrot.lane.b32.xlu1 %v5387_v48, %s4383_s14 }
 0x58d   : > { %v5551_v45 = vpop.permute.xlu1 %2448  ;;  %2151 = vxpose.xlu0.b32.cont [5/16] (narrow) %v2108_v0, 8  ;;  %v5553_v35 = vpop.permute.xlu0 %2208 }
 0x58f   : > { %2240 = vperm.xlu1 %4038, %v5424_v39  }
 0x591   : > { %v2110_v32 = vpop.permute.xlu1 %2109  ;;  %v2112_v50 = vpop.permute.xlu0 %2111 }
 0x592   : > { %2152 = vxpose.xlu0.b32.cont [6/16] (narrow) %v2110_v32, 8 }
 0x593   : > { %4039 = vset.pattern.permute.xlu1 %v6274_v41 }
 0x594   : > { %2500 = vperm.xlu1 %4039, %v5424_v39  }
 0x595   : > { %v5558_v46 = vpop.permute.xlu1 %2460  ;;  %v5568_v9 = vpop.permute.xlu0 %2872 }
 0x596   : > { %2153 = vxpose.xlu0.b32.cont [7/16] (narrow) %v2112_v50, 8  ;;  %6332 = vst [vmem:[#allocation8_spill] sm:$0xff] %v5568_v9 }
 0x598   : > { %2890 = vrot.lane.b32.xlu1 %v5424_v39, %s4383_s14 }
 0x599   : > { %v5562_v44 = vpop.permute.xlu1 %2870  ;;  %4040 = vset.pattern.permute.xlu1 %v4380_v7 }
 0x59a   : > { %6331 = vst [vmem:[#allocation7_spill] sm:$0xff] %v5562_v44  ;;  %v5576_v54 = vpop.permute.xlu0 %2216 }
 0x59c   : > { %2236 = vperm.xlu1 %4040, %v5428_v43  }
 0x59d   : > { %v5566_v14 = vpop.permute.xlu1 %2196 }
 0x59e   : > { %v2116_v49 = vpop.permute.xlu0 %2115 }
 0x5a0   : > { %4041 = vset.pattern.permute.xlu1 %v6274_v41 }
 0x5a1   : > { %2496 = vperm.xlu1 %4041, %v5428_v43  }
 0x5a2   : > { %v5582_v27 = vpop.permute.xlu0 %2876 }
 0x5a3   : > { %v5572_v56 = vpop.permute.xlu1 %2456  ;;  %6334 = vst [vmem:[#allocation10_spill] sm:$0xff] %v5582_v27 }
 0x5a5   : > { %2888 = vrot.lane.b32.xlu1 %v5428_v43, %s4383_s14 }
 0x5a6   : > { %v5588_v6 = vpop.permute.xlu0 %2224 }
 0x5a7   : > { %v5578_v4 = vpop.permute.xlu1 %2868 }
 0x5a8   : > { %6333 = vst [vmem:[#allocation9_spill] sm:$0xff] %v5578_v4 }
 0x5aa   : > { %v5592_v58 = vpop.permute.xlu0 %2882 }
 0x5ab   : > { %v2114_v7 = vpop.permute.xlu1 %2113  ;;  %6336 = vst [vmem:[#allocation12_spill] sm:$0xff] %v5592_v58 }
 0x5ac   : > { %2154 = vxpose.xlu0.b32.cont [8/16] (narrow) %v2114_v7, 8 }
 0x5ae   : > { %v2120_v57 = vpop.permute.xlu0 %2119 }
 0x5af   : > { %v5580_v20 = vpop.permute.xlu1 %2468 }
 0x5b0   : > { %2155 = vxpose.xlu0.b32.cont [9/16] (narrow) %v2116_v49, 8 }
 0x5b2   : > { %v5600_v42 = vpop.permute.xlu0 %2880 }
 0x5b3   : > { %v5584_v61 = vpop.permute.xlu1 %2874  ;;  %6338 = vst [vmem:[#allocation14_spill] sm:$0xff] %v5600_v42 }
 0x5b4   : > { %6335 = vst [vmem:[#allocation11_spill] sm:$0xff] %v5584_v61 }
 0x5b6   : > { %v5604_v39 = vpop.permute.xlu0 %2886 }
 0x5b7   : > { %v5586_v48 = vpop.permute.xlu1 %2204  ;;  %6339 = vst [vmem:[#allocation15_spill] sm:$0xff] %v5604_v39 }
 0x5ba   : > { %v2124_v8 = vpop.permute.xlu0 %2123 }
 0x5bc   : > { %v5590_v5 = vpop.permute.xlu1 %2464 }
 0x5be   : > { %v2128_v32 = vpop.permute.xlu0 %2127 }
 0x5c0   : > { %v2118_v12 = vpop.permute.xlu1 %2117 }
 0x5c1   : > { %2156 = vxpose.xlu0.b32.cont [10/16] (narrow) %v2118_v12, 8 }
 0x5c4   : > { %v5594_v60 = vpop.permute.xlu1 %2476 }
 0x5c5   : > { %2157 = vxpose.xlu0.b32.cont [11/16] (narrow) %v2120_v57, 8 }
 0x5c8   : > { %v5596_v62 = vpop.permute.xlu1 %2878 }
 0x5c9   : > { %6337 = vst [vmem:[#allocation13_spill] sm:$0xff] %v5596_v62 }
 0x5cc   : > { %v5598_v26 = vpop.permute.xlu1 %2212 }
 0x5d1   : > { %v5602_v16 = vpop.permute.xlu1 %2472 }
 0x5d5   : > { %v2122_v43 = vpop.permute.xlu1 %2121 }
 0x5d6   : > { %2158 = vxpose.xlu0.b32.cont [12/16] (narrow) %v2122_v43, 8 }
 0x5d9   : > { %v5606_v22 = vpop.permute.xlu1 %2484 }
 0x5da   : > { %2159 = vxpose.xlu0.b32.cont [13/16] (narrow) %v2124_v8, 8 }
 0x5de   : > { %v5608_v47 = vpop.permute.xlu1 %2220 }
 0x5e3   : > { %v5610_v10 = vpop.permute.xlu1 %2480 }
 0x5e7   : > { %v2126_v0 = vpop.permute.xlu1 %2125 }
 0x5e8   : > { %2160 = vxpose.xlu0.b32.cont [14/16] (narrow) %v2126_v0, 8 }
 0x5eb   : > { %v5612_v50 = vpop.permute.xlu1 %2232 }
 0x5ec   : > { %2161 = vxpose.xlu0.b32.cont [15/16] (narrow) %v2128_v32, 8 }
 0x5f0   : > { %v5614_v7 = vpop.permute.xlu1 %2492 }
 0x5f5   : > { %v2229_v49 = vpop.permute.xlu1 %2228 }
 0x5fa   : > { %v5616_v12 = vpop.permute.xlu1 %2488 }
 0x5fe   : > { %v5618_v57 = vpop.permute.xlu1 %2884 }
 0x5ff   : > { %6340 = vst [vmem:[#allocation16_spill] sm:$0xff] %v5618_v57 }
 0x602   : > { %v2130_v43 = vpop.permute.xlu1 %2129 }
 0x603   : > { %2162 = vxpose.xlu0.b32.end [16/16] (narrow) %v2130_v43, 8  ;;  %v6344_v43 = vmov 9  }
 0x606   : > { %v5620_v8 = vpop.permute.xlu1 %2864 }
 0x607   : > { %6341 = vst [vmem:[#allocation17_spill] sm:$0xff] %v5620_v8 }
 0x60a   : > { %v5622_v41 = vpop.permute.xlu1 %2240 }
 0x60f   : > { %v5624_v21 = vpop.permute.xlu1 %2500 }
 0x613   : > { %v5626_v0 = vpop.permute.xlu1 %2890 }
 0x614   : > { %6342 = vst [vmem:[#allocation18_spill] sm:$0xff] %v5626_v0  ;;  %3898 = vmatprep.subr.mxu0 %v5626_v0  ;;  %3954 = vmatprep.subr.mxu1 %v5626_v0 }
 0x615   : > { %3899 = vmatpush3.msra.mxu0 %v5626_v0 }
 0x617   : > { %v5631_v32 = vpop.permute.xlu1 %2236 }
 0x61c   : > { %v5633_v33 = vpop.permute.xlu1 %2496 }
 0x620   : > { %v5635_v37 = vpop.permute.xlu1 %2888 }
 0x621   : > { %6343 = vst [vmem:[#allocation19_spill] sm:$0xff] %v5635_v37  ;;  %3900 = vmatprep.subr.mxu0 %v5635_v37 }
 0x622   : > { %3901 = vmatpush3.msra.mxu0 %v5635_v37 }
 0x623   : > { %3902 = vmatprep.subr.mxu0 %v5604_v39 }
 0x624   : > { %3903 = vmatpush3.msra.mxu0 %v5604_v39 }
 0x625   : > { %3904 = vmatprep.subr.mxu0 %v5618_v57 }
 0x626   : > { %3905 = vmatpush3.msra.mxu0 %v5618_v57 }
 0x627   : > { %3906 = vmatprep.subr.mxu0 %v5592_v58 }
 0x628   : > { %3907 = vmatpush3.msra.mxu0 %v5592_v58 }
 0x629   : > { %3908 = vmatprep.subr.mxu0 %v5600_v42 }
 0x62a   : > { %3909 = vmatpush3.msra.mxu0 %v5600_v42 }
 0x62b   : > { %3910 = vmatprep.subr.mxu0 %v5596_v62 }
 0x62c   : > { %3911 = vmatpush3.msra.mxu0 %v5596_v62  ;;  %4042 = vset.pattern.permute.xlu0 %v6344_v43 }
 0x62d   : > { %3912 = vmatprep.subr.mxu0 %v5582_v27 }
 0x62e   : > { %3913 = vmatpush3.msra.mxu0 %v5582_v27 }
 0x62f   : > { %3914 = vmatprep.subr.mxu0 %v5584_v61 }
 0x630   : > { %3915 = vmatpush3.msra.mxu0 %v5584_v61 }
 0x631   : > { %3916 = vmatprep.subr.mxu0 %v5568_v9 }
 0x632   : > { %3917 = vmatpush3.msra.mxu0 %v5568_v9 }
 0x633   : > { %3918 = vmatprep.subr.mxu0 %v5562_v44 }
 0x634   : > { %3919 = vmatpush3.msra.mxu0 %v5562_v44 }
 0x635   : > { %3920 = vmatprep.subr.mxu0 %v5578_v4 }
 0x636   : > { %3921 = vmatpush3.msra.mxu0 %v5578_v4 }
 0x637   : > { %3922 = vmatprep.subr.mxu0 %v5538_v17 }
 0x638   : > { %3923 = vmatpush3.msra.mxu0 %v5538_v17 }
 0x639   : > { %3924 = vmatprep.subr.mxu0 %v5620_v8 }
 0x63a   : > { %3925 = vmatpush3.msra.mxu0 %v5620_v8 }
 0x643   : > { %v2163_v43 = vpop.trf.xlu0 }
 0x644   : > { %v5665_v61 = vrot.slane %v2163_v43, %v4741_v29  ;;  %v5676_v27 = vrot.slane %v2163_v43, %v4744_v30 }
 0x646   : > { %v2248_v9 = vadd.f32 %v5665_v61, %v5519_v31  ;;  %v2247_v44 = vadd.f32 %v5665_v61, %v5522_v63  ;;  %v2258_v4 = vadd.f32 %v5665_v61, %v5588_v6  ;;  %v2249_v17 = vadd.f32 %v5665_v61, %v5547_v18 }
 0x647   : > { %v2259_v8 = vadd.f32 %v5665_v61, %v2229_v49  ;;  %v2250_v29 = vadd.f32 %v5665_v61, %v5532_v23  ;;  %v2507_v6 = vadd.f32 %v5676_v27, %v5528_v24  ;;  %v2251_v30 = vadd.f32 %v5665_v61, %v5566_v14  ;;  %v6345_v49 = vld [vmem:[#allocation3_spill] sm:$0xff] }
 0x648   : > { %v2264_v62 = vmul.f32 0.2, %v2248_v9  ;;  %v2263_v42 = vmul.f32 0.2, %v2247_v44  ;;  %v2274_v31 = vmul.f32 0.2, %v2258_v4 }
 0x649   : > { %v2265_v58 = vmul.f32 0.2, %v2249_v17  ;;  %v2275_v39 = vmul.f32 0.2, %v2259_v8  ;;  %v2266_v37 = vmul.f32 0.2, %v2250_v29 }
 0x64a   : > { %v2280_v57 = vmax.f32 %v2248_v9, %v2264_v62  ;;  %v2279_v63 = vmax.f32 %v2247_v44, %v2263_v42  ;;  %v2290_v23 = vmax.f32 %v2258_v4, %v2274_v31  ;;  %v2523_v62 = vmul.f32 0.2, %v2507_v6 }
 0x64b   : > { %v2281_v0 = vmax.f32 %v2249_v17, %v2265_v58  ;;  %v2291_v44 = vmax.f32 %v2259_v8, %v2275_v39  ;;  %v2282_v9 = vmax.f32 %v2250_v29, %v2266_v37  ;;  %v2267_v42 = vmul.f32 0.2, %v2251_v30 }
 0x64c   : > { %v5686_v18 = vadd.f32 %v2280_v57, %v4850_v34  ;;  %v5689_v43 = vadd.f32 %v2279_v63, %v6345_v49  ;;  %v5694_v24 = vadd.f32 %v2290_v23, %v4829_v40  ;;  %v2260_v57 = vadd.f32 %v5665_v61, %v5612_v50 }
 0x64d   : > { %v5697_v14 = vadd.f32 %v2281_v0, %v4912_v19  ;;  %v2252_v17 = vadd.f32 %v5665_v61, %v5543_v13  ;;  %v5706_v37 = vadd.f32 %v2291_v44, %v4865_v36  ;;  %v5709_v4 = vadd.f32 %v2282_v9, %v4948_v52 }
 0x64e   : > { %2313 = vmax.xlane.f32.xlu0 %v5686_v18  ;;  %2311 = vmax.xlane.f32.xlu1 %v5689_v43  ;;  %v2539_v58 = vmax.f32 %v2507_v6, %v2523_v62  ;;  %v2283_v39 = vmax.f32 %v2251_v30, %v2267_v42  ;;  %v2276_v8 = vmul.f32 0.2, %v2260_v57  ;;  %v2508_v50 = vadd.f32 %v5676_v27, %v5525_v59 }
 0x64f   : > { %v2268_v0 = vmul.f32 0.2, %v2252_v17  ;;  %v2253_v13 = vadd.f32 %v5665_v61, %v5586_v48  ;;  %v2509_v63 = vadd.f32 %v5676_v27, %v5551_v45  ;;  %v2254_v6 = vadd.f32 %v5665_v61, %v5553_v35 }
 0x650   : > { %v5718_v29 = vadd.f32 %v2539_v58, %v6345_v49  ;;  %v5721_v31 = vadd.f32 %v2283_v39, %v4794_v28  ;;  %v2292_v59 = vmax.f32 %v2260_v57, %v2276_v8  ;;  %v2524_v23 = vmul.f32 0.2, %v2508_v50 }
 0x651   : > { %v2284_v30 = vmax.f32 %v2252_v17, %v2268_v0  ;;  %v2269_v48 = vmul.f32 0.2, %v2253_v13  ;;  %v2525_v44 = vmul.f32 0.2, %v2509_v63  ;;  %v2270_v49 = vmul.f32 0.2, %v2254_v6 }
 0x652   : > { %2333 = vmax.xlane.f32.xlu0 %v5694_v24  ;;  %2315 = vmax.xlane.f32.xlu1 %v5697_v14  ;;  %v2517_v9 = vadd.f32 %v5676_v27, %v5610_v10  ;;  %v2255_v62 = vadd.f32 %v5665_v61, %v5598_v26  ;;  %v5734_v45 = vadd.f32 %v2292_v59, %v4915_v3 }
 0x653   : > { %v5737_v35 = vadd.f32 %v2284_v30, %v4980_v1  ;;  %v2540_v42 = vmax.f32 %v2508_v50, %v2524_v23  ;;  %v2285_v57 = vmax.f32 %v2253_v13, %v2269_v48  ;;  %v2541_v17 = vmax.f32 %v2509_v63, %v2525_v44 }
 0x654   : > { %v2286_v58 = vmax.f32 %v2254_v6, %v2270_v49  ;;  %v2533_v39 = vmul.f32 0.2, %v2517_v9  ;;  %v2271_v8 = vmul.f32 0.2, %v2255_v62  ;;  %v2519_v0 = vadd.f32 %v5676_v27, %v5616_v12 }
 0x655   : > { %v5742_v10 = vadd.f32 %v2540_v42, %v4850_v34  ;;  %v5745_v26 = vadd.f32 %v2285_v57, %v4998_v53  ;;  %v2256_v50 = vadd.f32 %v5665_v61, %v5576_v54  ;;  %v5754_v13 = vadd.f32 %v2541_v17, %v4912_v19 }
 0x656   : > { %2335 = vmax.xlane.f32.xlu0 %v5706_v37  ;;  %2317 = vmax.xlane.f32.xlu1 %v5709_v4  ;;  %v5757_v63 = vadd.f32 %v2286_v58, %v5015_v2  ;;  %v2549_v34 = vmax.f32 %v2517_v9, %v2533_v39  ;;  %v2287_v6 = vmax.f32 %v2255_v62, %v2271_v8  ;;  %v2535_v59 = vmul.f32 0.2, %v2519_v0 }
 0x657   : > { %v2272_v30 = vmul.f32 0.2, %v2256_v50  ;;  %v2514_v12 = vadd.f32 %v5676_v27, %v5580_v20  ;;  %v2257_v54 = vadd.f32 %v5665_v61, %v5608_v47  ;;  %v2521_v48 = vadd.f32 %v5676_v27, %v5633_v33 }
 0x658   : > { %v5766_v19 = vadd.f32 %v2549_v34, %v4817_v25  ;;  %v5769_v23 = vadd.f32 %v2287_v6, %v5033_v51  ;;  %v2261_v44 = vadd.f32 %v5665_v61, %v5631_v32  ;;  %v2551_v20 = vmax.f32 %v2519_v0, %v2535_v59 }
 0x659   : > { %v2288_v49 = vmax.f32 %v2256_v50, %v2272_v30  ;;  %v2530_v9 = vmul.f32 0.2, %v2514_v12  ;;  %v2273_v47 = vmul.f32 0.2, %v2257_v54  ;;  %v2537_v62 = vmul.f32 0.2, %v2521_v48 }
 0x65a   : > { %2571 = vmax.xlane.f32.xlu0 %v5718_v29  ;;  %2319 = vmax.xlane.f32.xlu1 %v5721_v31  ;;  %v2277_v42 = vmul.f32 0.2, %v2261_v44  ;;  %v2516_v57 = vadd.f32 %v5676_v27, %v5594_v60  ;;  %v2262_v17 = vadd.f32 %v5665_v61, %v5622_v41  ;;  %v5782_v33 = vadd.f32 %v2551_v20, %v4865_v36 }
 0x65b   : > { %v5785_v32 = vadd.f32 %v2288_v49, %v5049_v15  ;;  %v2546_v58 = vmax.f32 %v2514_v12, %v2530_v9  ;;  %v2289_v39 = vmax.f32 %v2257_v54, %v2273_v47  ;;  %v2553_v8 = vmax.f32 %v2521_v48, %v2537_v62 }
 0x65c   : > { %v2293_v0 = vmax.f32 %v2261_v44, %v2277_v42  ;;  %v2532_v50 = vmul.f32 0.2, %v2516_v57  ;;  %v2278_v36 = vmul.f32 0.2, %v2262_v17  ;;  %v2510_v61 = vadd.f32 %v5676_v27, %v5536_v11 }
 0x65d   : > { %v5790_v60 = vadd.f32 %v2546_v58, %v5015_v2  ;;  %v5793_v41 = vadd.f32 %v2289_v39, %v4817_v25  ;;  %v2511_v6 = vadd.f32 %v5676_v27, %v5572_v56  ;;  %v5802_v59 = vadd.f32 %v2553_v8, %v4934_v38 }
 0x65e   : > { %2337 = vmax.xlane.f32.xlu0 %v5734_v45  ;;  %2321 = vmax.xlane.f32.xlu1 %v5737_v35  ;;  %v2548_v34 = vmax.f32 %v2516_v57, %v2532_v50  ;;  %v5805_v2 = vadd.f32 %v2293_v0, %v4934_v38  ;;  %v2294_v25 = vmax.f32 %v2262_v17, %v2278_v36  ;;  %v2526_v30 = vmul.f32 0.2, %v2510_v61 }
 0x65f   : > { %v2527_v56 = vmul.f32 0.2, %v2511_v6  ;;  %v2512_v48 = vadd.f32 %v5676_v27, %v5558_v46  ;;  %v2513_v46 = vadd.f32 %v5676_v27, %v5590_v5  ;;  %v2515_v5 = vadd.f32 %v5676_v27, %v5602_v16 }
 0x660   : > { %v5810_v11 = vadd.f32 %v2548_v34, %v5049_v15  ;;  %v5813_v12 = vadd.f32 %v2294_v25, %v4951_v55  ;;  %v2542_v54 = vmax.f32 %v2510_v61, %v2526_v30  ;;  %v2518_v15 = vadd.f32 %v5676_v27, %v5606_v22 }
 0x661   : > { %v2543_v44 = vmax.f32 %v2511_v6, %v2527_v56  ;;  %v2528_v20 = vmul.f32 0.2, %v2512_v48  ;;  %v2529_v42 = vmul.f32 0.2, %v2513_v46  ;;  %v2520_v22 = vadd.f32 %v5676_v27, %v5614_v7 }
 0x662   : > { %2573 = vmax.xlane.f32.xlu0 %v5742_v10  ;;  %2323 = vmax.xlane.f32.xlu1 %v5745_v26  ;;  %v5820_v38 = vadd.f32 %v2542_v54, %v4948_v52  ;;  %v2534_v47 = vmul.f32 0.2, %v2518_v15  ;;  %v2531_v39 = vmul.f32 0.2, %v2515_v5  ;;  %v2522_v7 = vadd.f32 %v5676_v27, %v5624_v21  ;;  %v6347_v27 = vld [vmem:[#allocation5_spill] sm:$0xff] }
 0x663   : > { %v5826_v49 = vadd.f32 %v2543_v44, %v4794_v28  ;;  %v2544_v9 = vmax.f32 %v2512_v48, %v2528_v20  ;;  %v2545_v57 = vmax.f32 %v2513_v46, %v2529_v42  ;;  %v2536_v17 = vmul.f32 0.2, %v2520_v22 }
 0x664   : > { %v2550_v62 = vmax.f32 %v2518_v15, %v2534_v47  ;;  %v2547_v0 = vmax.f32 %v2515_v5, %v2531_v39  ;;  %v2538_v16 = vmul.f32 0.2, %v2522_v7  ;;  %v6348_v5 = vld [vmem:[#allocation18_spill] sm:$0xff] }
 0x665   : > { %v5832_v52 = vadd.f32 %v2544_v9, %v4980_v1  ;;  %v5844_v1 = vadd.f32 %v2545_v57, %v4998_v53  ;;  %v2552_v58 = vmax.f32 %v2520_v22, %v2536_v17 }
 0x666   : > { %2575 = vmax.xlane.f32.xlu0 %v5754_v13  ;;  %2325 = vmax.xlane.f32.xlu1 %v5757_v63  ;;  %v5838_v28 = vadd.f32 %v2550_v62, %v4829_v40  ;;  %v6346_v40 = vld [vmem:[#allocation4_spill] sm:$0xff]  ;;  %v5856_v53 = vadd.f32 %v2547_v0, %v5033_v51  ;;  %v2554_v50 = vmax.f32 %v2522_v7, %v2538_v16  ;;  %v6349_v7 = vld [vmem:[#allocation19_spill] sm:$0xff] }
 0x667   : > { %v5852_v8 = vadd.f32 %v2552_v58, %v4915_v3  ;;  %v6350_v0 = vld [vmem:[#allocation15_spill] sm:$0xff] }
 0x668   : > { %v5860_v21 = vadd.f32 %v2554_v50, %v4951_v55 }
 0x66a   : > { %2591 = vmax.xlane.f32.xlu0 %v5766_v19  ;;  %2327 = vmax.xlane.f32.xlu1 %v5769_v23 }
 0x66e   : > { %2595 = vmax.xlane.f32.xlu0 %v5782_v33  ;;  %2329 = vmax.xlane.f32.xlu1 %v5785_v32 }
 0x672   : > { %2585 = vmax.xlane.f32.xlu0 %v5790_v60  ;;  %2331 = vmax.xlane.f32.xlu1 %v5793_v41 }
 0x676   : > { %2599 = vmax.xlane.f32.xlu0 %v5802_v59  ;;  %2339 = vmax.xlane.f32.xlu1 %v5805_v2 }
 0x67a   : > { %2589 = vmax.xlane.f32.xlu0 %v5810_v11  ;;  %2341 = vmax.xlane.f32.xlu1 %v5813_v12 }
 0x67e   : > { %2577 = vmax.xlane.f32.xlu1 %v5820_v38 }
 0x682   : > { %2579 = vmax.xlane.f32.xlu1 %v5826_v49 }
 0x686   : > { %2581 = vmax.xlane.f32.xlu1 %v5832_v52 }
 0x68a   : > { %2593 = vmax.xlane.f32.xlu1 %v5838_v28 }
 0x68e   : > { %2583 = vmax.xlane.f32.xlu1 %v5844_v1 }
 0x690   : > { %2862 = vrot.lane.b32.xlu0 %v6346_v40, %s4383_s14 }
 0x692   : > { %2597 = vmax.xlane.f32.xlu1 %v5852_v8 }
 0x696   : > { %2587 = vmax.xlane.f32.xlu1 %v5856_v53 }
 0x69a   : > { %2601 = vmax.xlane.f32.xlu1 %v5860_v21 }
 0x6ab   : > { %2860 = vrot.lane.b32.xlu1 %v6347_v27, %s4383_s14  ;;  %v6351_v27 = vld [vmem:[#allocation16_spill] sm:$0xff] }
 0x6d7   : > { %v2314_v3 = vpop.xlane.xlu0 %2313  ;;  %v2312_v36 = vpop.xlane.xlu1 %2311 }
 0x6d8   : > { %v2344_v61 = vsub.f32 %v5686_v18, %v2314_v3  ;;  %v2343_v34 = vsub.f32 %v5689_v43, %v2312_v36 }
 0x6da   : > { %v2361_v6 = vmul.f32 1.442695, %v2344_v61  ;;  %v2359_v51 = vmul.f32 1.442695, %v2343_v34  ;;  %v6352_v61 = vld [vmem:[#allocation12_spill] sm:$0xff] }
 0x6db   : > { %v5867_v25 = vpop.xlane.xlu0 %2333  ;;  %v2316_v30 = vpop.xlane.xlu1 %2315 }
 0x6dc   : > { %4173 = vpow2.f32 %v2361_v6  ;;  %v2345_v55 = vsub.f32 %v5697_v14, %v2316_v30  ;;  %v6353_v30 = vld [vmem:[#allocation14_spill] sm:$0xff] }
 0x6dd   : > { %4175 = vpow2.f32 %v2359_v51 }
 0x6de   : > { %v2363_v54 = vmul.f32 1.442695, %v2345_v55 }
 0x6df   : > { %v5870_v56 = vpop.xlane.xlu0 %2335  ;;  %v2318_v48 = vpop.xlane.xlu1 %2317 }
 0x6e0   : > { %v2346_v44 = vsub.f32 %v5709_v4, %v2318_v48  ;;  %4177 = vpow2.f32 %v2363_v54  ;;  %v6354_v48 = vld [vmem:[#allocation13_spill] sm:$0xff] }
 0x6e2   : > { %v2365_v20 = vmul.f32 1.442695, %v2346_v44 }
 0x6e3   : > { %v2572_v18 = vpop.xlane.xlu0 %2571  ;;  %v2320_v15 = vpop.xlane.xlu1 %2319 }
 0x6e4   : > { %v2603_v43 = vsub.f32 %v5718_v29, %v2572_v18  ;;  %v2347_v9 = vsub.f32 %v5721_v31, %v2320_v15  ;;  %4179 = vpow2.f32 %v2365_v20  ;;  %v6355_v15 = vld [vmem:[#allocation10_spill] sm:$0xff] }
 0x6e6   : > { %v2619_v47 = vmul.f32 1.442695, %v2603_v43  ;;  %v2367_v46 = vmul.f32 1.442695, %v2347_v9 }
 0x6e7   : > { %v5875_v62 = vpop.xlane.xlu0 %2337  ;;  %v2322_v14 = vpop.xlane.xlu1 %2321 }
 0x6e8   : > { %4181 = vpow2.f32 %v2619_v47  ;;  %v2348_v42 = vsub.f32 %v5737_v35, %v2322_v14 }
 0x6e9   : > { %v4174_v22 = vpop.eup %4173  ;;  %4183 = vpow2.f32 %v2367_v46  ;;  %v2356_v46 = vsub.f32 %v5734_v45, %v5875_v62 }
 0x6ea   : > { %v4176_v4 = vpop.eup %4175  ;;  %v2369_v57 = vmul.f32 1.442695, %v2348_v42  ;;  %2393 = vadd.xlane.f32.xlu1 %v4174_v22 }
 0x6eb   : > { %2391 = vadd.xlane.f32.xlu0 %v4176_v4  ;;  %3874 = vmatprep.mubr.f32.mxu1 %v4176_v4  ;;  %v5878_v17 = vpop.xlane.xlu0 %2573  ;;  %v2324_v29 = vpop.xlane.xlu1 %2323  ;;  %v2385_v62 = vmul.f32 1.442695, %v2356_v46 }
 0x6ec   : > { %v2349_v31 = vsub.f32 %v5745_v26, %v2324_v29  ;;  %3875 = vmatmul.mubr.f32.vlgmr.msra.gmra.mxu1 %v4174_v22  ;;  %4185 = vpow2.f32 %v2369_v57  ;;  %v6357_v22 = vld [vmem:[#allocation8_spill] sm:$0xff]  ;;  %v6359_v29 = vld [vmem:[#allocation9_spill] sm:$0xff] }
 0x6ed   : > { %3970 = vmatpush3.msra.mxu1 %v6348_v5  ;;  %v4178_v58 = vpop.eup %4177 }
 0x6ee   : > { %v2371_v39 = vmul.f32 1.442695, %v2349_v31  ;;  %3955 = vmatprep.subr.mxu1 %v6349_v7  ;;  %3877 = vmatprep.mubr.f32.mxu1 %v4178_v58 }
 0x6ef   : > { %3971 = vmatpush3.msra.mxu1 %v6349_v7  ;;  %2395 = vadd.xlane.f32.xlu0 %v4178_v58  ;;  %v5884_v35 = vpop.xlane.xlu0 %2575  ;;  %v2326_v40 = vpop.xlane.xlu1 %2325 }
 0x6f0   : > { %3956 = vmatprep.subr.mxu1 %v6350_v0  ;;  %v2350_v16 = vsub.f32 %v5757_v63, %v2326_v40  ;;  %4187 = vpow2.f32 %v2371_v39  ;;  %v2604_v40 = vsub.f32 %v5742_v10, %v5878_v17 }
 0x6f1   : > { %3972 = vmatpush3.msra.mxu1 %v6350_v0  ;;  %v4180_v26 = vpop.eup %4179 }
 0x6f2   : > { %v2373_v50 = vmul.f32 1.442695, %v2350_v16  ;;  %3957 = vmatprep.subr.mxu1 %v6351_v27  ;;  %3878 = vmatmul.mubr.f32.gmra.mxu1 %v4180_v26 }
 0x6f3   : > { %3973 = vmatpush3.msra.mxu1 %v6351_v27  ;;  %2397 = vadd.xlane.f32.xlu0 %v4180_v26  ;;  %v5891_v3 = vpop.xlane.xlu0 %2591  ;;  %v2328_v36 = vpop.xlane.xlu1 %2327  ;;  %v6361_v26 = vld [vmem:[#allocation17_spill] sm:$0xff]  ;;  %v2605_v27 = vsub.f32 %v5754_v13, %v5884_v35 }
 0x6f4   : > { %3958 = vmatprep.subr.mxu1 %v6352_v61  ;;  %v2351_v34 = vsub.f32 %v5769_v23, %v2328_v36  ;;  %4189 = vpow2.f32 %v2373_v50  ;;  %v2354_v23 = vsub.f32 %v5694_v24, %v5867_v25  ;;  %v2355_v24 = vsub.f32 %v5706_v37, %v5870_v56  ;;  %v6356_v25 = vld [vmem:[#allocation11_spill] sm:$0xff] }
 0x6f5   : > { %v5895_v6 = vpop.eup %4181  ;;  %3974 = vmatpush3.msra.mxu1 %v6352_v61  ;;  %v2613_v58 = vsub.f32 %v5766_v19, %v5891_v3  ;;  %v2623_v61 = vmul.f32 1.442695, %v2605_v27 }
 0x6f6   : > { %v4184_v63 = vpop.eup %4183  ;;  %v2375_v51 = vmul.f32 1.442695, %v2351_v34  ;;  %3959 = vmatprep.subr.mxu1 %v6353_v30  ;;  %3930 = vmatprep.mubr.f32.mxu0 %v5895_v6  ;;  %v2381_v47 = vmul.f32 1.442695, %v2354_v23  ;;  %v2383_v56 = vmul.f32 1.442695, %v2355_v24 }
 0x6f7   : > { %3975 = vmatpush3.msra.mxu1 %v6353_v30  ;;  %2399 = vadd.xlane.f32.xlu1 %v4184_v63  ;;  %v5901_v55 = vpop.xlane.xlu0 %2595  ;;  %v2330_v54 = vpop.xlane.xlu1 %2329  ;;  %v2639_v3 = vmul.f32 1.442695, %v2613_v58 }
 0x6f8   : > { %3880 = vmatprep.mubr.f32.mxu1 %v4184_v63  ;;  %3960 = vmatprep.subr.mxu1 %v6354_v48  ;;  %v2352_v44 = vsub.f32 %v5785_v32, %v2330_v54  ;;  %4191 = vpow2.f32 %v2375_v51 }
 0x6f9   : > { %3976 = vmatpush3.msra.mxu1 %v6354_v48  ;;  %v4186_v20 = vpop.eup %4185 }
 0x6fa   : > { %v2377_v18 = vmul.f32 1.442695, %v2352_v44  ;;  %3961 = vmatprep.subr.mxu1 %v6355_v15  ;;  %2401 = vadd.xlane.f32.xlu0 %v4186_v20 }
 0x6fb   : > { %3977 = vmatpush3.msra.mxu1 %v6355_v15  ;;  %v5910_v43 = vpop.xlane.xlu0 %2585  ;;  %v2332_v9 = vpop.xlane.xlu1 %2331 }
 0x6fc   : > { %3881 = vmatmul.mubr.f32.gmra.mxu1 %v4186_v20  ;;  %3962 = vmatprep.subr.mxu1 %v6356_v25  ;;  %v2353_v32 = vsub.f32 %v5793_v41, %v2332_v9  ;;  %4193 = vpow2.f32 %v2377_v18  ;;  %v6358_v41 = vld [vmem:[#allocation7_spill] sm:$0xff]  ;;  %v2610_v54 = vsub.f32 %v5790_v60, %v5910_v43  ;;  %v2615_v43 = vsub.f32 %v5782_v33, %v5901_v55 }
 0x6fd   : > { %3978 = vmatpush3.msra.mxu1 %v6356_v25  ;;  %v4188_v14 = vpop.eup %4187  ;;  %4195 = vpow2.f32 %v2381_v47 }
 0x6fe   : > { %v2379_v42 = vmul.f32 1.442695, %v2353_v32  ;;  %3963 = vmatprep.subr.mxu1 %v6357_v22  ;;  %2403 = vadd.xlane.f32.xlu1 %v4188_v14  ;;  %v2633_v15 = vmul.f32 1.442695, %v2610_v54  ;;  %v2643_v46 = vmul.f32 1.442695, %v2615_v43 }
 0x6ff   : > { %3979 = vmatpush3.msra.mxu1 %v6357_v22  ;;  %v5921_v4 = vpop.xlane.xlu0 %2599  ;;  %v2340_v37 = vpop.xlane.xlu1 %2339  ;;  %3883 = vmatprep.mubr.f32.mxu1 %v4188_v14 }
 0x700   : > { %3964 = vmatprep.subr.mxu1 %v6358_v41  ;;  %v2357_v45 = vsub.f32 %v5805_v2, %v2340_v37  ;;  %4197 = vpow2.f32 %v2379_v42  ;;  %v6360_v2 = vld [vmem:[#allocation6_spill] sm:$0xff] }
 0x701   : > { %3980 = vmatpush3.msra.mxu1 %v6358_v41  ;;  %v4190_v57 = vpop.eup %4189  ;;  %4199 = vpow2.f32 %v2383_v56 }
 0x702   : > { %3965 = vmatprep.subr.mxu1 %v6359_v29  ;;  %2405 = vadd.xlane.f32.xlu0 %v4190_v57  ;;  %v2387_v39 = vmul.f32 1.442695, %v2357_v45  ;;  %4201 = vpow2.f32 %v2385_v62 }
 0x703   : > { %3981 = vmatpush3.msra.mxu1 %v6359_v29  ;;  %v5928_v31 = vpop.xlane.xlu0 %2589  ;;  %v2342_v5 = vpop.xlane.xlu1 %2341 }
 0x704   : > { %3884 = vmatmul.mubr.f32.gmra.mxu1 %v4190_v57  ;;  %3966 = vmatprep.subr.mxu1 %v6360_v2  ;;  %v2358_v7 = vsub.f32 %v5813_v12, %v2342_v5  ;;  %4203 = vpow2.f32 %v2387_v39  ;;  %v2621_v12 = vmul.f32 1.442695, %v2604_v40 }
 0x705   : > { %3982 = vmatpush3.msra.mxu1 %v6360_v2  ;;  %v4192_v0 = vpop.eup %4191 }
 0x706   : > { %v2389_v16 = vmul.f32 1.442695, %v2358_v7  ;;  %3967 = vmatprep.subr.mxu1 %v6361_v26  ;;  %2407 = vadd.xlane.f32.xlu1 %v4192_v0 }
 0x707   : > { %3983 = vmatpush3.msra.mxu1 %v6361_v26  ;;  %v2863_v19 = vpop.permute.xlu0 %2862  ;;  %v2578_v50 = vpop.xlane.xlu1 %2577  ;;  %3886 = vmatprep.mubr.f32.mxu1 %v4192_v0 }
 0x708   : > { %3926 = vmatprep.subr.mxu0 %v2863_v19  ;;  %4205 = vpow2.f32 %v2389_v16  ;;  %v2606_v10 = vsub.f32 %v5820_v38, %v2578_v50  ;;  %3968 = vmatprep.subr.mxu1 %v2863_v19 }
 0x709   : > { %3927 = vmatpush3.msra.mxu0 %v2863_v19  ;;  %v4194_v17 = vpop.eup %4193  ;;  %3984 = vmatpush3.msra.mxu1 %v2863_v19  ;;  %4207 = vpow2.f32 %v2639_v3 }
 0x70a   : > { %2409 = vadd.xlane.f32.xlu0 %v4194_v17  ;;  %3887 = vmatmul.mubr.f32.gmra.mxu1 %v4194_v17  ;;  %v4196_v34 = vpop.eup %4195  ;;  %4209 = vpow2.f32 %v2621_v12  ;;  %v2625_v13 = vmul.f32 1.442695, %v2606_v10 }
 0x70b   : > { %v2580_v36 = vpop.xlane.xlu1 %2579  ;;  %4211 = vpow2.f32 %v2623_v61 }
 0x70c   : > { %v2607_v35 = vsub.f32 %v5826_v49, %v2580_v36  ;;  %4213 = vpow2.f32 %v2625_v13  ;;  %v2612_v49 = vsub.f32 %v5810_v11, %v5928_v31 }
 0x70d   : > { %v4198_v63 = vpop.eup %4197 }
 0x70e   : > { %2413 = vadd.xlane.f32.xlu0 %v4196_v34  ;;  %2411 = vadd.xlane.f32.xlu1 %v4198_v63  ;;  %v4200_v30 = vpop.eup %4199  ;;  %v2627_v23 = vmul.f32 1.442695, %v2607_v35  ;;  %v2637_v9 = vmul.f32 1.442695, %v2612_v49 }
 0x70f   : > { %v2582_v51 = vpop.xlane.xlu1 %2581  ;;  %3889 = vmatprep.mubr.f32.mxu1 %v4198_v63  ;;  %v4202_v48 = vpop.eup %4201 }
 0x710   : > { %v2608_v38 = vsub.f32 %v5832_v52, %v2582_v51  ;;  %3890 = vmatmul.mubr.f32.gmra.mxu1 %v4196_v34 }
 0x711   : > { %3892 = vmatprep.mubr.f32.mxu1 %v4200_v30  ;;  %v4204_v18 = vpop.eup %4203 }
 0x712   : > { %v2629_v44 = vmul.f32 1.442695, %v2608_v38  ;;  %2417 = vadd.xlane.f32.xlu0 %v4202_v48  ;;  %2415 = vadd.xlane.f32.xlu1 %v4200_v30 }
 0x713   : > { %v2594_v20 = vpop.xlane.xlu1 %2593 }
 0x714   : > { %4215 = vpow2.f32 %v2629_v44  ;;  %v2614_v52 = vsub.f32 %v5838_v28, %v2594_v20  ;;  %3893 = vmatmul.mubr.f32.gmra.mxu1 %v4202_v48  ;;  %v2617_v28 = vsub.f32 %v5802_v59, %v5921_v4 }
 0x715   : > { %4217 = vpow2.f32 %v2627_v23  ;;  %v4206_v60 = vpop.eup %4205  ;;  %3895 = vmatprep.mubr.f32.mxu1 %v4204_v18 }
 0x716   : > { %2419 = vadd.xlane.f32.xlu1 %v4204_v18  ;;  %2421 = vadd.xlane.f32.xlu0 %v4206_v60  ;;  %v5952_v24 = vpop.eup %4207  ;;  %4219 = vpow2.f32 %v2633_v15  ;;  %v2641_v25 = vmul.f32 1.442695, %v2614_v52  ;;  %v2647_v22 = vmul.f32 1.442695, %v2617_v28 }
 0x717   : > { %v2584_v47 = vpop.xlane.xlu1 %2583  ;;  %v4210_v32 = vpop.eup %4209  ;;  %4221 = vpow2.f32 %v2637_v9 }
 0x718   : > { %v2609_v11 = vsub.f32 %v5844_v1, %v2584_v47  ;;  %3896 = vmatmul.mubr.f32.gmra.mxu1 %v4206_v60  ;;  %v4212_v55 = vpop.eup %4211 }
 0x719   : > { %3945 = vmatprep.mubr.f32.mxu1 %v5952_v24  ;;  %v4214_v42 = vpop.eup %4213 }
 0x71a   : > { %v2631_v14 = vmul.f32 1.442695, %v2609_v11  ;;  %2651 = vadd.xlane.f32.xlu1 %v5895_v6  ;;  %2653 = vadd.xlane.f32.xlu0 %v4210_v32 }
 0x71b   : > { %v2598_v33 = vpop.xlane.xlu1 %2597 }
 0x71c   : > { %4223 = vpow2.f32 %v2631_v14  ;;  %v2616_v1 = vsub.f32 %v5852_v8, %v2598_v33 }
 0x71d   : > { %4225 = vpow2.f32 %v2641_v25 }
 0x71e   : > { %4227 = vpow2.f32 %v2643_v46  ;;  %v2645_v37 = vmul.f32 1.442695, %v2616_v1  ;;  %2655 = vadd.xlane.f32.xlu1 %v4212_v55  ;;  %2657 = vadd.xlane.f32.xlu0 %v4214_v42 }
 0x71f   : > { %v2588_v59 = vpop.xlane.xlu1 %2587 }
 0x720   : > { %4229 = vpow2.f32 %v2645_v37  ;;  %v2611_v4 = vsub.f32 %v5856_v53, %v2588_v59 }
 0x721   : > { %v4216_v56 = vpop.eup %4215  ;;  %4231 = vpow2.f32 %v2647_v22 }
 0x722   : > { %v4218_v41 = vpop.eup %4217  ;;  %v2635_v6 = vmul.f32 1.442695, %v2611_v4  ;;  %2661 = vadd.xlane.f32.xlu0 %v4216_v56 }
 0x723   : > { %2659 = vadd.xlane.f32.xlu1 %v4218_v41  ;;  %v2602_v45 = vpop.xlane.xlu1 %2601  ;;  %v4220_v62 = vpop.eup %4219 }
 0x724   : > { %4233 = vpow2.f32 %v2635_v6  ;;  %v2618_v8 = vsub.f32 %v5860_v21, %v2602_v45  ;;  %v4222_v31 = vpop.eup %4221 }
 0x726   : > { %v2649_v57 = vmul.f32 1.442695, %v2618_v8  ;;  %2665 = vadd.xlane.f32.xlu0 %v4220_v62 }
 0x727   : > { %v2861_v29 = vpop.permute.xlu1 %2860 }
 0x728   : > { %4235 = vpow2.f32 %v2649_v57  ;;  %3928 = vmatprep.subr.mxu0 %v2861_v29  ;;  %3969 = vmatprep.subr.mxu1 %v2861_v29 }
 0x729   : > { %v4224_v5 = vpop.eup %4223  ;;  %3929 = vmatpush3.msra.mxu0 %v2861_v29  ;;  %3985 = vmatpush3.msra.mxu1 %v2861_v29 }
 0x72a   : > { %v4226_v53 = vpop.eup %4225  ;;  %2663 = vadd.xlane.f32.xlu1 %v4224_v5  ;;  %3931 = vmatmul.mubr.f32.vlgmr.msra.gmra.mxu0 %v4210_v32 }
 0x72b   : > { %v4228_v58 = vpop.eup %4227  ;;  %2669 = vadd.xlane.f32.xlu0 %v4222_v31  ;;  %3946 = vmatmul.mubr.f32.vlgmr.msra.gmra.mxu1 %v4226_v53 }
 0x72c   : > { %3933 = vmatprep.mubr.f32.mxu0 %v4212_v55  ;;  %3948 = vmatprep.mubr.f32.mxu1 %v4228_v58 }
 0x72d   : > { %v4230_v21 = vpop.eup %4229 }
 0x72e   : > { %3934 = vmatmul.mubr.f32.gmra.mxu0 %v4214_v42  ;;  %v4232_v39 = vpop.eup %4231 }
 0x72f   : > { %2673 = vadd.xlane.f32.xlu0 %v4226_v53  ;;  %3949 = vmatmul.mubr.f32.gmra.mxu1 %v4230_v21 }
 0x730   : > { %3936 = vmatprep.mubr.f32.mxu0 %v4218_v41  ;;  %3951 = vmatprep.mubr.f32.mxu1 %v4232_v39 }
 0x731   : > { %v4234_v2 = vpop.eup %4233 }
 0x732   : > { %2667 = vadd.xlane.f32.xlu1 %v4234_v2  ;;  %3937 = vmatmul.mubr.f32.gmra.mxu0 %v4216_v56 }
 0x733   : > { %2677 = vadd.xlane.f32.xlu0 %v4230_v21  ;;  %3939 = vmatprep.mubr.f32.mxu0 %v4224_v5 }
 0x735   : > { %v4236_v7 = vpop.eup %4235 }
 0x736   : > { %2671 = vadd.xlane.f32.xlu1 %v5952_v24  ;;  %3940 = vmatmul.mubr.f32.gmra.mxu0 %v4220_v62  ;;  %v6362_v62 = vld [vmem:[#allocation2_spill] sm:$0xff] }
 0x737   : > { %2681 = vadd.xlane.f32.xlu0 %v4236_v7  ;;  %3952 = vmatmul.mubr.f32.gmra.mxu1 %v4236_v7  ;;  %v3103_v57 = vsub.s32 4, %v6362_v62 }
 0x738   : > { %3942 = vmatprep.mubr.f32.mxu0 %v4234_v2 }
 0x73a   : > { %2675 = vadd.xlane.f32.xlu1 %v4228_v58  ;;  %3943 = vmatmul.mubr.f32.gmra.mxu0 %v4222_v31 }
 0x73e   : > { %2679 = vadd.xlane.f32.xlu1 %v4232_v39 }
 0x773   : > { %v2394_v50 = vpop.xlane.xlu1 %2393 }
 0x774   : > { %v2392_v40 = vpop.xlane.xlu0 %2391  ;;  %4237 = vrcp.f32 %v2394_v50 }
 0x775   : > { %4239 = vrcp.f32 %v2392_v40 }
 0x778   : > { %v2396_v0 = vpop.xlane.xlu0 %2395 }
 0x779   : > { %4241 = vrcp.f32 %v2396_v0 }
 0x77c   : > { %v2398_v16 = vpop.xlane.xlu0 %2397 }
 0x77d   : > { %4243 = vrcp.f32 %v2398_v16  ;;  %v4366_v16 = vld [vmem:[%s6268_s2 + $0x30] sm:$0xff] }
 0x780   : > { %v2400_v3 = vpop.xlane.xlu1 %2399 }
 0x781   : > { %4245 = vrcp.f32 %v2400_v3  ;;  %v4238_v14 = vpop.eup %4237 }
 0x782   : > { %v4240_v1 = vpop.eup %4239 }
 0x783   : > { %v2402_v26 = vpop.xlane.xlu0 %2401 }
 0x784   : > { %4247 = vrcp.f32 %v2402_v26  ;;  %v6013_v26 = vrot.slane %v4366_v16, %v3103_v57 }
 0x786   : > { %v4242_v55 = vpop.eup %4241 }
 0x787   : > { %v2404_v10 = vpop.xlane.xlu1 %2403 }
 0x788   : > { %4249 = vrcp.f32 %v2404_v10 }
 0x78a   : > { %v4244_v42 = vpop.eup %4243 }
 0x78b   : > { %v2406_v19 = vpop.xlane.xlu0 %2405 }
 0x78c   : > { %4251 = vrcp.f32 %v2406_v19 }
 0x78e   : > { %v5992_v37 = vpop.eup %4245 }
 0x78f   : > { %v2408_v17 = vpop.xlane.xlu1 %2407 }
 0x790   : > { %4253 = vrcp.f32 %v2408_v17 }
 0x791   : > { %v4248_v59 = vpop.eup %4247 }
 0x793   : > { %v2410_v27 = vpop.xlane.xlu0 %2409 }
 0x794   : > { %4255 = vrcp.f32 %v2410_v27 }
 0x795   : > { %v5994_v56 = vpop.eup %4249 }
 0x797   : > { %v2414_v12 = vpop.xlane.xlu0 %2413  ;;  %v2412_v34 = vpop.xlane.xlu1 %2411 }
 0x799   : > { %v5996_v6 = vpop.eup %4251 }
 0x79b   : > { %v2418_v36 = vpop.xlane.xlu0 %2417  ;;  %v2416_v51 = vpop.xlane.xlu1 %2415 }
 0x79d   : > { %v6000_v8 = vpop.eup %4253 }
 0x79f   : > { %v2422_v35 = vpop.xlane.xlu0 %2421  ;;  %v5972_v23 = vpop.xlane.xlu1 %2419 }
 0x7a1   : > { %v6003_v29 = vpop.eup %4255 }
 0x7a3   : > { %v2654_v30 = vpop.xlane.xlu0 %2653  ;;  %v2652_v20 = vpop.xlane.xlu1 %2651 }
 0x7a4   : > { %4257 = vrcp.f32 %v2654_v30 }
 0x7a5   : > { %4259 = vrcp.f32 %v2414_v12 }
 0x7a6   : > { %4261 = vrcp.f32 %v2652_v20 }
 0x7a7   : > { %v2658_v44 = vpop.xlane.xlu0 %2657  ;;  %v2656_v60 = vpop.xlane.xlu1 %2655  ;;  %4263 = vrcp.f32 %v2412_v34 }
 0x7a8   : > { %4265 = vrcp.f32 %v2658_v44 }
 0x7a9   : > { %4267 = vrcp.f32 %v2418_v36 }
 0x7aa   : > { %4269 = vrcp.f32 %v2656_v60 }
 0x7ab   : > { %v2662_v15 = vpop.xlane.xlu0 %2661  ;;  %4271 = vrcp.f32 %v2416_v51 }
 0x7ac   : > { %v5962_v61 = vpop.f32.mrf.mxu1  ;;  %v2660_v47 = vpop.xlane.xlu1 %2659  ;;  %4273 = vrcp.f32 %v2662_v15 }
 0x7ad   : > { %v2845_v58 = vmul.f32 %v4238_v14, %v5962_v61 }
 0x7ae   : > { %v5964_v13 = vpop.f32.mrf.mxu1 }
 0x7af   : > { %v2666_v9 = vpop.xlane.xlu0 %2665  ;;  %v2844_v50 = vmul.f32 %v4240_v1, %v5964_v13 }
 0x7b1   : > { %v4258_v31 = vpop.eup %4257 }
 0x7b2   : > { %v5966_v63 = vpop.f32.mrf.mxu1  ;;  %v6005_v53 = vpop.eup %4259 }
 0x7b3   : > { %v2664_v25 = vpop.xlane.xlu1 %2663  ;;  %v4262_v7 = vpop.eup %4261  ;;  %v2847_v17 = vmul.f32 %v4244_v42, %v5966_v63 }
 0x7b4   : > { %v5968_v38 = vpop.f32.mrf.mxu1  ;;  %v2670_v24 = vpop.xlane.xlu0 %2669 }
 0x7b5   : > { %v6015_v19 = vpop.eup %4263  ;;  %v2846_v44 = vmul.f32 %v4242_v55, %v5968_v38 }
 0x7b6   : > { %v4266_v10 = vpop.eup %4265 }
 0x7b7   : > { %v6019_v61 = vpop.eup %4267 }
 0x7b8   : > { %v2674_v33 = vpop.xlane.xlu0 %2673  ;;  %v4270_v30 = vpop.eup %4269 }
 0x7b9   : > { %4275 = vrcp.f32 %v2674_v33  ;;  %v6022_v20 = vpop.eup %4271 }
 0x7ba   : > { %4277 = vrcp.f32 %v2660_v47 }
 0x7bb   : > { %v2668_v46 = vpop.xlane.xlu1 %2667  ;;  %4279 = vrcp.f32 %v2422_v35 }
 0x7bc   : > { %v5970_v54 = vpop.f32.mrf.mxu1  ;;  %v2678_v41 = vpop.xlane.xlu0 %2677  ;;  %4281 = vrcp.f32 %v2666_v9 }
 0x7be   : > { %v5974_v48 = vpop.f32.mrf.mxu1 }
 0x7bf   : > { %v2672_v4 = vpop.xlane.xlu1 %2671 }
 0x7c0   : > { %4283 = vrcp.f32 %v2672_v4  ;;  %v2682_v40 = vpop.xlane.xlu0 %2681 }
 0x7c1   : > { %4285 = vrcp.f32 %v2664_v25  ;;  %v4274_v25 = vpop.eup %4273 }
 0x7c2   : > { %4287 = vrcp.f32 %v2678_v41  ;;  %v2848_v41 = vmul.f32 %v5992_v37, %v5974_v48 }
 0x7c3   : > { %v2676_v21 = vpop.xlane.xlu1 %2675  ;;  %4289 = vrcp.f32 %v2670_v24 }
 0x7c4   : > { %v5976_v49 = vpop.f32.mrf.mxu1  ;;  %4291 = vrcp.f32 %v2668_v46  ;;  %v2849_v46 = vmul.f32 %v4248_v59, %v5970_v54 }
 0x7c5   : > { %4293 = vrcp.f32 %v2682_v40  ;;  %v2851_v48 = vmul.f32 %v5996_v6, %v5976_v49 }
 0x7c6   : > { %v5978_v18 = vpop.f32.mrf.mxu1  ;;  %4295 = vrcp.f32 %v2676_v21  ;;  %v4276_v38 = vpop.eup %4275 }
 0x7c7   : > { %v2680_v15 = vpop.xlane.xlu1 %2679  ;;  %4297 = vrcp.f32 %v5972_v23  ;;  %v4278_v4 = vpop.eup %4277  ;;  %v2850_v37 = vmul.f32 %v5994_v56, %v5978_v18 }
 0x7c8   : > { %4299 = vrcp.f32 %v2680_v15  ;;  %v6036_v54 = vpop.eup %4279 }
 0x7ca   : > { %v5980_v52 = vpop.f32.mrf.mxu1 }
 0x7cb   : > { %v2853_v49 = vmul.f32 %v6003_v29, %v5980_v52 }
 0x7cc   : > { %v5982_v43 = vpop.f32.mrf.mxu1 }
 0x7d0   : > { %v5984_v11 = vpop.f32.mrf.mxu1 }
 0x7d2   : > { %v5986_v32 = vpop.f32.mrf.mxu1 }
 0x7d3   : > { %v2854_v52 = vmul.f32 %v6015_v19, %v5986_v32 }
 0x7d4   : > { %v5988_v28 = vpop.f32.mrf.mxu1 }
 0x7d6   : > { %v5990_v22 = vpop.f32.mrf.mxu1 }
 0x7d8   : > { %v5998_v45 = vpop.f32.mrf.mxu1 }
 0x7da   : > { %v6008_v39 = vpop.f32.mrf.mxu1 }
 0x7ea   : > { %v3932_v5 = vpop.f32.mrf.mxu0 }
 0x7eb   : > { %v3054_v2 = vmul.f32 %v4258_v31, %v3932_v5  ;;  %v3947_v3 = vpop.f32.mrf.mxu1 }
 0x7ec   : > { %v2974_v0 = vpop.f32.mrf.mxu0  ;;  %v3064_v62 = vmul.f32 %v4276_v38, %v3947_v3 }
 0x7ed   : > { %v3070_v27 = vadd.f32 %v3054_v2, %v2845_v58  ;;  %v3053_v12 = vmul.f32 %v4262_v7, %v2974_v0  ;;  %v3024_v9 = vpop.f32.mrf.mxu1  ;;  %v4282_v2 = vpop.eup %4281  ;;  %v2855_v7 = vmul.f32 %v6005_v53, %v5984_v11 }
 0x7ee   : > { %v3935_v36 = vpop.f32.mrf.mxu0  ;;  %v4284_v16 = vpop.eup %4283 }
 0x7ef   : > { %v3086_v34 = vmul.f32 0.5, %v3070_v27  ;;  %v3069_v35 = vadd.f32 %v3053_v12, %v2844_v50  ;;  %v3056_v51 = vmul.f32 %v4266_v10, %v3935_v36  ;;  %v3950_v59 = vpop.f32.mrf.mxu1  ;;  %v4286_v10 = vpop.eup %4285  ;;  %v3080_v18 = vadd.f32 %v3064_v62, %v2855_v7 }
 0x7f0   : > { %v2984_v13 = vpop.f32.mrf.mxu0  ;;  %v3063_v56 = vmul.f32 %v4284_v16, %v3024_v9  ;;  %v4288_v53 = vpop.eup %4287  ;;  %v2859_v7 = vmul.f32 %v6036_v54, %v5998_v45 }
 0x7f1   : > { %v3085_v60 = vmul.f32 0.5, %v3069_v35  ;;  %v3072_v63 = vadd.f32 %v3056_v51, %v2847_v17  ;;  %v3055_v47 = vmul.f32 %v4270_v30, %v2984_v13  ;;  %v6025_v24 = vadd.f32 %v6013_v26, %v3086_v34  ;;  %v3034_v17 = vpop.f32.mrf.mxu1  ;;  %v4290_v30 = vpop.eup %4289 }
 0x7f2   : > { %v3938_v14 = vpop.f32.mrf.mxu0  ;;  %v3066_v29 = vmul.f32 %v4288_v53, %v3950_v59  ;;  %v3079_v32 = vadd.f32 %v3063_v56, %v2854_v52 }
 0x7f3   : > { %v3088_v33 = vmul.f32 0.5, %v3072_v63  ;;  %v3071_v1 = vadd.f32 %v3055_v47, %v2846_v44  ;;  %v3058_v55 = vmul.f32 %v4274_v25, %v3938_v14  ;;  %v3125_v42 = vsel %vm3121_vm4, %v6025_v24, -inf }
 0x7f4   : > { %v2994_v57 = vpop.f32.mrf.mxu0  ;;  %3126 = vmax.xlane.f32.xlu0 %v3125_v42  ;;  %v6034_v23 = vadd.f32 %v6013_v26, %v3085_v60  ;;  %v2852_v44 = vmul.f32 %v6000_v8, %v5982_v43  ;;  %v4292_v60 = vpop.eup %4291  ;;  %v2857_v43 = vmul.f32 %v6019_v61, %v5988_v28  ;;  %v3096_v8 = vmul.f32 0.5, %v3080_v18 }
 0x7f5   : > { %v3087_v31 = vmul.f32 0.5, %v3071_v1  ;;  %v3074_v5 = vadd.f32 %v3058_v55, %v2849_v46  ;;  %v3057_v58 = vmul.f32 %v4278_v4, %v2994_v57  ;;  %v6039_v21 = vadd.f32 %v6013_v26, %v3088_v33  ;;  %v4294_v14 = vpop.eup %4293 }
 0x7f6   : > { %v3941_v40 = vpop.f32.mrf.mxu0  ;;  %v3122_v0 = vsel %vm3121_vm4, %v6034_v23, -inf  ;;  %v4296_v33 = vpop.eup %4295 }
 0x7f7   : > { %v3090_v50 = vmul.f32 0.5, %v3074_v5  ;;  %v3073_v27 = vadd.f32 %v3057_v58, %v2848_v41  ;;  %v3060_v3 = vmul.f32 %v4282_v2, %v3941_v40  ;;  %3123 = vmax.xlane.f32.xlu1 %v3122_v0  ;;  %v3131_v12 = vsel %vm3121_vm4, %v6039_v21, -inf  ;;  %v3953_v63 = vpop.f32.mrf.mxu1  ;;  %v4298_v61 = vpop.eup %4297 }
 0x7f8   : > { %v3004_v6 = vpop.f32.mrf.mxu0  ;;  %3132 = vmax.xlane.f32.xlu0 %v3131_v12  ;;  %v6054_v11 = vadd.f32 %v6013_v26, %v3087_v31  ;;  %v3082_v41 = vadd.f32 %v3066_v29, %v2857_v43  ;;  %v3065_v62 = vmul.f32 %v4296_v33, %v3034_v17  ;;  %v3068_v57 = vmul.f32 %v4294_v14, %v3953_v63 }
 0x7f9   : > { %v3089_v36 = vmul.f32 0.5, %v3073_v27  ;;  %v3076_v34 = vadd.f32 %v3060_v3, %v2851_v48  ;;  %v3059_v35 = vmul.f32 %v4286_v10, %v3004_v6  ;;  %v6057_v51 = vadd.f32 %v6013_v26, %v3090_v50  ;;  %v3044_v59 = vpop.f32.mrf.mxu1 }
 0x7fa   : > { %v3944_v13 = vpop.f32.mrf.mxu0  ;;  %v3128_v15 = vsel %vm3121_vm4, %v6054_v11, -inf  ;;  %v2856_v48 = vmul.f32 %v6022_v20, %v5990_v22  ;;  %v3095_v50 = vmul.f32 0.5, %v3079_v32  ;;  %v6092_v12 = vadd.f32 %v6013_v26, %v3096_v8 }
 0x7fb   : > { %v3092_v9 = vmul.f32 0.5, %v3076_v34  ;;  %v3075_v47 = vadd.f32 %v3059_v35, %v2850_v37  ;;  %v3062_v25 = vmul.f32 %v4290_v30, %v3944_v13  ;;  %3129 = vmax.xlane.f32.xlu1 %v3128_v15  ;;  %v3137_v46 = vsel %vm3121_vm4, %v6057_v51, -inf  ;;  %v4300_v37 = vpop.eup %4299 }
 0x7fc   : > { %v3014_v19 = vpop.f32.mrf.mxu0  ;;  %3138 = vmax.xlane.f32.xlu0 %v3137_v46  ;;  %v6070_v38 = vadd.f32 %v6013_v26, %v3089_v36  ;;  %v3081_v27 = vadd.f32 %v3065_v62, %v2856_v48  ;;  %v3067_v3 = vmul.f32 %v4300_v37, %v3044_v59  ;;  %v3098_v10 = vmul.f32 0.5, %v3082_v41 }
 0x7fd   : > { %v3091_v1 = vmul.f32 0.5, %v3075_v47  ;;  %v3078_v55 = vadd.f32 %v3062_v25, %v2853_v49  ;;  %v3061_v42 = vmul.f32 %v4292_v60, %v3014_v19  ;;  %v6073_v4 = vadd.f32 %v6013_v26, %v3092_v9 }
 0x7fe   : > { %v3134_v28 = vsel %vm3121_vm4, %v6070_v38, -inf  ;;  %v3084_v22 = vadd.f32 %v3068_v57, %v2859_v7  ;;  %v2858_v54 = vmul.f32 %v4298_v61, %v6008_v39  ;;  %v3097_v18 = vmul.f32 0.5, %v3081_v27 }
 0x7ff   : > { %v3094_v31 = vmul.f32 0.5, %v3078_v55  ;;  %v3077_v5 = vadd.f32 %v3061_v42, %v2852_v44  ;;  %3135 = vmax.xlane.f32.xlu1 %v3134_v28  ;;  %v3143_v58 = vsel %vm3121_vm4, %v6073_v4, -inf  ;;  %v6080_v2 = vadd.f32 %v6013_v26, %v3091_v1 }
 0x800   : > { %3144 = vmax.xlane.f32.xlu0 %v3143_v58  ;;  %v3083_v56 = vadd.f32 %v3067_v3, %v2858_v54  ;;  %v6103_v6 = vadd.f32 %v6013_v26, %v3095_v50  ;;  %v3100_v53 = vmul.f32 0.5, %v3084_v22  ;;  %v3155_v17 = vsel %vm3121_vm4, %v6092_v12, -inf }
 0x801   : > { %v3093_v40 = vmul.f32 0.5, %v3077_v5  ;;  %v3140_v0 = vsel %vm3121_vm4, %v6080_v2, -inf  ;;  %v6089_v16 = vadd.f32 %v6013_v26, %v3094_v31  ;;  %v6108_v36 = vadd.f32 %v6013_v26, %v3098_v10 }
 0x802   : > { %v3099_v34 = vmul.f32 0.5, %v3083_v56  ;;  %v3152_v39 = vsel %vm3121_vm4, %v6103_v6, -inf  ;;  %v6113_v35 = vadd.f32 %v6013_v26, %v3097_v18  ;;  %v6118_v44 = vadd.f32 %v6013_v26, %v3100_v53 }
 0x803   : > { %3141 = vmax.xlane.f32.xlu1 %v3140_v0  ;;  %v3149_v20 = vsel %vm3121_vm4, %v6089_v16, -inf  ;;  %v6097_v45 = vadd.f32 %v6013_v26, %v3093_v40  ;;  %v3161_v30 = vsel %vm3121_vm4, %v6108_v36, -inf }
 0x804   : > { %3150 = vmax.xlane.f32.xlu0 %v3149_v20  ;;  %v3158_v52 = vsel %vm3121_vm4, %v6113_v35, -inf  ;;  %v6123_v29 = vadd.f32 %v6013_v26, %v3099_v34  ;;  %v3167_v13 = vsel %vm3121_vm4, %v6118_v44, -inf }
 0x805   : > { %v3146_v49 = vsel %vm3121_vm4, %v6097_v45, -inf }
 0x806   : > { %v3164_v15 = vsel %vm3121_vm4, %v6123_v29, -inf }
 0x807   : > { %3147 = vmax.xlane.f32.xlu1 %v3146_v49 }
 0x808   : > { %3156 = vmax.xlane.f32.xlu0 %v3155_v17 }
 0x80b   : > { %3153 = vmax.xlane.f32.xlu1 %v3152_v39 }
 0x80c   : > { %3162 = vmax.xlane.f32.xlu0 %v3161_v30 }
 0x80f   : > { %3159 = vmax.xlane.f32.xlu1 %v3158_v52 }
 0x810   : > { %3168 = vmax.xlane.f32.xlu0 %v3167_v13 }
 0x813   : > { %3165 = vmax.xlane.f32.xlu1 %v3164_v15 }
 0x87d   : > { %v3127_v60 = vpop.xlane.xlu0 %3126 }
 0x87e   : > { %v6130_v9 = vsub.f32 %v6025_v24, %v3127_v60 }
 0x880   : > { %v3188_v63 = vmul.f32 1.442695, %v6130_v9  ;;  %v3124_v47 = vpop.xlane.xlu1 %3123 }
 0x881   : > { %v6134_v25 = vsub.f32 %v6034_v23, %v3124_v47  ;;  %v3133_v26 = vpop.xlane.xlu0 %3132 }
 0x882   : > { %4301 = vpow2.f32 %v3188_v63  ;;  %v6137_v46 = vsub.f32 %v6039_v21, %v3133_v26 }
 0x883   : > { %v3186_v14 = vmul.f32 1.442695, %v6134_v25 }
 0x884   : > { %v3192_v43 = vmul.f32 1.442695, %v6137_v46  ;;  %v3130_v8 = vpop.xlane.xlu1 %3129 }
 0x885   : > { %4303 = vpow2.f32 %v3186_v14  ;;  %v6142_v24 = vsub.f32 %v6054_v11, %v3130_v8  ;;  %v3139_v32 = vpop.xlane.xlu0 %3138 }
 0x886   : > { %4305 = vpow2.f32 %v3192_v43  ;;  %v6145_v19 = vsub.f32 %v6057_v51, %v3139_v32 }
 0x887   : > { %v3190_v23 = vmul.f32 1.442695, %v6142_v24 }
 0x888   : > { %v3196_v33 = vmul.f32 1.442695, %v6145_v19  ;;  %v3136_v21 = vpop.xlane.xlu1 %3135 }
 0x889   : > { %4307 = vpow2.f32 %v3190_v23  ;;  %v6150_v1 = vsub.f32 %v6070_v38, %v3136_v21  ;;  %v3145_v55 = vpop.xlane.xlu0 %3144 }
 0x88a   : > { %4309 = vpow2.f32 %v3196_v33  ;;  %v6153_v42 = vsub.f32 %v6073_v4, %v3145_v55 }
 0x88b   : > { %v3194_v11 = vmul.f32 1.442695, %v6150_v1 }
 0x88c   : > { %v3200_v41 = vmul.f32 1.442695, %v6153_v42  ;;  %v3142_v51 = vpop.xlane.xlu1 %3141 }
 0x88d   : > { %4311 = vpow2.f32 %v3194_v11  ;;  %v6158_v62 = vsub.f32 %v6080_v2, %v3142_v51  ;;  %v3151_v57 = vpop.xlane.xlu0 %3150 }
 0x88e   : > { %4313 = vpow2.f32 %v3200_v41  ;;  %v6161_v28 = vsub.f32 %v6089_v16, %v3151_v57 }
 0x88f   : > { %v4302_v38 = vpop.eup %4301  ;;  %v3198_v61 = vmul.f32 1.442695, %v6158_v62 }
 0x890   : > { %v3204_v4 = vmul.f32 1.442695, %v6161_v28  ;;  %v3148_v59 = vpop.xlane.xlu1 %3147  ;;  %v3221_v31 = vsel %vm3121_vm4, %v4302_v38, 0.0 }
 0x891   : > { %4315 = vpow2.f32 %v3198_v61  ;;  %v6167_v5 = vsub.f32 %v6097_v45, %v3148_v59  ;;  %v3157_v58 = vpop.xlane.xlu0 %3156  ;;  %3222 = vadd.xlane.f32.xlu0 %v3221_v31 }
 0x892   : > { %v4304_v2 = vpop.eup %4303  ;;  %4317 = vpow2.f32 %v3204_v4  ;;  %v6170_v48 = vsub.f32 %v6092_v12, %v3157_v58 }
 0x893   : > { %v4306_v37 = vpop.eup %4305  ;;  %v3202_v7 = vmul.f32 1.442695, %v6167_v5  ;;  %v3218_v40 = vsel %vm3121_vm4, %v4304_v2, 0.0 }
 0x894   : > { %v3208_v0 = vmul.f32 1.442695, %v6170_v48  ;;  %v3154_v16 = vpop.xlane.xlu1 %3153  ;;  %3219 = vadd.xlane.f32.xlu1 %v3218_v40  ;;  %v3227_v50 = vsel %vm3121_vm4, %v4306_v37, 0.0 }
 0x895   : > { %4319 = vpow2.f32 %v3202_v7  ;;  %v6177_v27 = vsub.f32 %v6103_v6, %v3154_v16  ;;  %v3163_v3 = vpop.xlane.xlu0 %3162  ;;  %3228 = vadd.xlane.f32.xlu0 %v3227_v50 }
 0x896   : > { %v4308_v10 = vpop.eup %4307  ;;  %4321 = vpow2.f32 %v3208_v0  ;;  %v6180_v12 = vsub.f32 %v6108_v36, %v3163_v3 }
 0x897   : > { %v4310_v22 = vpop.eup %4309  ;;  %v3206_v20 = vmul.f32 1.442695, %v6177_v27  ;;  %v3224_v45 = vsel %vm3121_vm4, %v4308_v10, 0.0 }
 0x898   : > { %v3212_v54 = vmul.f32 1.442695, %v6180_v12  ;;  %v3160_v49 = vpop.xlane.xlu1 %3159  ;;  %3225 = vadd.xlane.f32.xlu1 %v3224_v45  ;;  %v3233_v18 = vsel %vm3121_vm4, %v4310_v22, 0.0 }
 0x899   : > { %4323 = vpow2.f32 %v3206_v20  ;;  %v6187_v56 = vsub.f32 %v6113_v35, %v3160_v49  ;;  %3234 = vadd.xlane.f32.xlu0 %v3233_v18  ;;  %v3169_v6 = vpop.xlane.xlu0 %3168 }
 0x89a   : > { %v4312_v53 = vpop.eup %4311  ;;  %4325 = vpow2.f32 %v3212_v54  ;;  %v6190_v17 = vsub.f32 %v6118_v44, %v3169_v6 }
 0x89b   : > { %v4314_v36 = vpop.eup %4313  ;;  %v3210_v34 = vmul.f32 1.442695, %v6187_v56  ;;  %v3230_v39 = vsel %vm3121_vm4, %v4312_v53, 0.0 }
 0x89c   : > { %v3216_v30 = vmul.f32 1.442695, %v6190_v17  ;;  %3231 = vadd.xlane.f32.xlu1 %v3230_v39  ;;  %v3166_v52 = vpop.xlane.xlu1 %3165  ;;  %v3239_v13 = vsel %vm3121_vm4, %v4314_v36, 0.0 }
 0x89d   : > { %4327 = vpow2.f32 %v3210_v34  ;;  %v6197_v35 = vsub.f32 %v6123_v29, %v3166_v52  ;;  %3240 = vadd.xlane.f32.xlu0 %v3239_v13 }
 0x89e   : > { %v4316_v15 = vpop.eup %4315  ;;  %4329 = vpow2.f32 %v3216_v30 }
 0x89f   : > { %v4318_v44 = vpop.eup %4317  ;;  %v3214_v60 = vmul.f32 1.442695, %v6197_v35  ;;  %v3236_v63 = vsel %vm3121_vm4, %v4316_v15, 0.0 }
 0x8a0   : > { %3237 = vadd.xlane.f32.xlu1 %v3236_v63  ;;  %v3245_v47 = vsel %vm3121_vm4, %v4318_v44, 0.0 }
 0x8a1   : > { %4331 = vpow2.f32 %v3214_v60  ;;  %3246 = vadd.xlane.f32.xlu0 %v3245_v47 }
 0x8a2   : > { %v4320_v26 = vpop.eup %4319 }
 0x8a3   : > { %v4322_v14 = vpop.eup %4321  ;;  %v3242_v43 = vsel %vm3121_vm4, %v4320_v26, 0.0 }
 0x8a4   : > { %3243 = vadd.xlane.f32.xlu1 %v3242_v43  ;;  %v3251_v29 = vsel %vm3121_vm4, %v4322_v14, 0.0 }
 0x8a5   : > { %3252 = vadd.xlane.f32.xlu0 %v3251_v29 }
 0x8a6   : > { %v4324_v8 = vpop.eup %4323 }
 0x8a7   : > { %v4326_v32 = vpop.eup %4325  ;;  %v3248_v23 = vsel %vm3121_vm4, %v4324_v8, 0.0 }
 0x8a8   : > { %3249 = vadd.xlane.f32.xlu1 %v3248_v23  ;;  %v3257_v33 = vsel %vm3121_vm4, %v4326_v32, 0.0 }
 0x8a9   : > { %3258 = vadd.xlane.f32.xlu0 %v3257_v33 }
 0x8aa   : > { %v4328_v21 = vpop.eup %4327 }
 0x8ab   : > { %v4330_v55 = vpop.eup %4329  ;;  %v3254_v11 = vsel %vm3121_vm4, %v4328_v21, 0.0 }
 0x8ac   : > { %3255 = vadd.xlane.f32.xlu1 %v3254_v11  ;;  %v3263_v41 = vsel %vm3121_vm4, %v4330_v55, 0.0 }
 0x8ad   : > { %3264 = vadd.xlane.f32.xlu0 %v3263_v41 }
 0x8ae   : > { %v4332_v51 = vpop.eup %4331 }
 0x8af   : > { %v3260_v57 = vsel %vm3121_vm4, %v4332_v51, 0.0 }
 0x8b0   : > { %3261 = vadd.xlane.f32.xlu1 %v3260_v57 }
 0x91a   : > { %v3223_v38 = vpop.xlane.xlu0 %3222 }
 0x91b   : > { %4333 = vlog2.f32 %v3223_v38 }
 0x91d   : > { %v3220_v61 = vpop.xlane.xlu1 %3219 }
 0x91e   : > { %4335 = vlog2.f32 %v3220_v61  ;;  %v3229_v4 = vpop.xlane.xlu0 %3228 }
 0x91f   : > { %4337 = vlog2.f32 %v3229_v4 }
 0x921   : > { %v3226_v59 = vpop.xlane.xlu1 %3225 }
 0x922   : > { %4339 = vlog2.f32 %v3226_v59  ;;  %v3235_v31 = vpop.xlane.xlu0 %3234 }
 0x923   : > { %4341 = vlog2.f32 %v3235_v31 }
 0x925   : > { %v3232_v58 = vpop.xlane.xlu1 %3231 }
 0x926   : > { %4343 = vlog2.f32 %v3232_v58  ;;  %v3241_v2 = vpop.xlane.xlu0 %3240 }
 0x927   : > { %4345 = vlog2.f32 %v3241_v2 }
 0x928   : > { %v4334_v37 = vpop.eup %4333 }
 0x929   : > { %v3269_v7 = vmul.f32 0.6931472, %v4334_v37  ;;  %v3238_v40 = vpop.xlane.xlu1 %3237 }
 0x92a   : > { %4347 = vlog2.f32 %v3238_v40  ;;  %v3247_v0 = vpop.xlane.xlu0 %3246 }
 0x92b   : > { %v4336_v16 = vpop.eup %4335  ;;  %v3299_v50 = vsub.f32 %v6130_v9, %v3269_v7  ;;  %4349 = vlog2.f32 %v3247_v0 }
 0x92c   : > { %v4338_v3 = vpop.eup %4337  ;;  %v3267_v10 = vmul.f32 0.6931472, %v4336_v16 }
 0x92d   : > { %3315 = vst.msk [vmem:[%s6213_s20 + $0x8] sm:$0xff] %vm3121_vm4, %v3299_v50  ;;  %v3273_v22 = vmul.f32 0.6931472, %v4338_v3  ;;  %v3244_v20 = vpop.xlane.xlu1 %3243 }
 0x92e   : > { %v3298_v45 = vsub.f32 %v6134_v25, %v3267_v10  ;;  %4351 = vlog2.f32 %v3244_v20  ;;  %v3253_v54 = vpop.xlane.xlu0 %3252 }
 0x92f   : > { %v4340_v49 = vpop.eup %4339  ;;  %v3301_v18 = vsub.f32 %v6137_v46, %v3273_v22  ;;  %4353 = vlog2.f32 %v3253_v54 }
 0x930   : > { %v4342_v6 = vpop.eup %4341  ;;  %3314 = vst.msk [vmem:[%s6213_s20] sm:$0xff] %vm3121_vm4, %v3298_v45  ;;  %v3271_v9 = vmul.f32 0.6931472, %v4340_v49 }
 0x931   : > { %3317 = vst.msk [vmem:[%s6213_s20 + $0x18] sm:$0xff] %vm3121_vm4, %v3301_v18  ;;  %v3277_v53 = vmul.f32 0.6931472, %v4342_v6  ;;  %v3250_v36 = vpop.xlane.xlu1 %3249 }
 0x932   : > { %v3300_v34 = vsub.f32 %v6142_v24, %v3271_v9  ;;  %4355 = vlog2.f32 %v3250_v36  ;;  %v3259_v25 = vpop.xlane.xlu0 %3258 }
 0x933   : > { %v4344_v39 = vpop.eup %4343  ;;  %v3303_v30 = vsub.f32 %v6145_v19, %v3277_v53  ;;  %4357 = vlog2.f32 %v3259_v25 }
 0x934   : > { %v4346_v46 = vpop.eup %4345  ;;  %3316 = vst.msk [vmem:[%s6213_s20 + $0x10] sm:$0xff] %vm3121_vm4, %v3300_v34  ;;  %v3275_v52 = vmul.f32 0.6931472, %v4344_v39 }
 0x935   : > { %3319 = vst.msk [vmem:[%s6213_s20 + $0x28] sm:$0xff] %vm3121_vm4, %v3303_v30  ;;  %v3281_v13 = vmul.f32 0.6931472, %v4346_v46  ;;  %v3256_v15 = vpop.xlane.xlu1 %3255 }
 0x936   : > { %v3302_v44 = vsub.f32 %v6150_v1, %v3275_v52  ;;  %4359 = vlog2.f32 %v3256_v15  ;;  %v3265_v24 = vpop.xlane.xlu0 %3264 }
 0x937   : > { %v4348_v60 = vpop.eup %4347  ;;  %v3305_v63 = vsub.f32 %v6153_v42, %v3281_v13  ;;  %4361 = vlog2.f32 %v3265_v24 }
 0x938   : > { %v4350_v19 = vpop.eup %4349  ;;  %3318 = vst.msk [vmem:[%s6213_s20 + $0x20] sm:$0xff] %vm3121_vm4, %v3302_v44  ;;  %v3279_v47 = vmul.f32 0.6931472, %v4348_v60 }
 0x939   : > { %3321 = vst.msk [vmem:[%s6213_s20 + $0x38] sm:$0xff] %vm3121_vm4, %v3305_v63  ;;  %v3285_v26 = vmul.f32 0.6931472, %v4350_v19  ;;  %v3262_v14 = vpop.xlane.xlu1 %3261 }
 0x93a   : > { %v3304_v1 = vsub.f32 %v6158_v62, %v3279_v47  ;;  %4363 = vlog2.f32 %v3262_v14 }
 0x93b   : > { %v4352_v43 = vpop.eup %4351  ;;  %v3307_v29 = vsub.f32 %v6161_v28, %v3285_v26 }
 0x93c   : > { %v4354_v8 = vpop.eup %4353  ;;  %3320 = vst.msk [vmem:[%s6213_s20 + $0x30] sm:$0xff] %vm3121_vm4, %v3304_v1  ;;  %v3283_v42 = vmul.f32 0.6931472, %v4352_v43 }
 0x93d   : > { %3323 = vst.msk [vmem:[%s6213_s20 + $0x48] sm:$0xff] %vm3121_vm4, %v3307_v29  ;;  %v3289_v32 = vmul.f32 0.6931472, %v4354_v8 }
 0x93e   : > { %v3306_v23 = vsub.f32 %v6167_v5, %v3283_v42 }
 0x93f   : > { %v4356_v33 = vpop.eup %4355  ;;  %v3309_v21 = vsub.f32 %v6170_v48, %v3289_v32 }
 0x940   : > { %v4358_v55 = vpop.eup %4357  ;;  %3322 = vst.msk [vmem:[%s6213_s20 + $0x40] sm:$0xff] %vm3121_vm4, %v3306_v23  ;;  %v3287_v62 = vmul.f32 0.6931472, %v4356_v33 }
 0x941   : > { %3325 = vst.msk [vmem:[%s6213_s20 + $0x58] sm:$0xff] %vm3121_vm4, %v3309_v21  ;;  %v3293_v28 = vmul.f32 0.6931472, %v4358_v55 }
 0x942   : > { %v3308_v11 = vsub.f32 %v6177_v27, %v3287_v62 }
 0x943   : > { %v4360_v41 = vpop.eup %4359  ;;  %v3311_v51 = vsub.f32 %v6180_v12, %v3293_v28 }
 0x944   : > { %v4362_v57 = vpop.eup %4361  ;;  %3324 = vst.msk [vmem:[%s6213_s20 + $0x50] sm:$0xff] %vm3121_vm4, %v3308_v11  ;;  %v3291_v5 = vmul.f32 0.6931472, %v4360_v41 }
 0x945   : > { %3327 = vst.msk [vmem:[%s6213_s20 + $0x68] sm:$0xff] %vm3121_vm4, %v3311_v51  ;;  %v3297_v48 = vmul.f32 0.6931472, %v4362_v57 }
 0x946   : > { %v3310_v38 = vsub.f32 %v6187_v56, %v3291_v5 }
 0x947   : > { %v4364_v61 = vpop.eup %4363  ;;  %v3313_v4 = vsub.f32 %v6190_v17, %v3297_v48 }
 0x948   : > { %3326 = vst.msk [vmem:[%s6213_s20 + $0x60] sm:$0xff] %vm3121_vm4, %v3310_v38  ;;  %v3295_v59 = vmul.f32 0.6931472, %v4364_v61 }
 0x949   : > { %3329 = vst.msk [vmem:[%s6213_s20 + $0x78] sm:$0xff] %vm3121_vm4, %v3313_v4 }
 0x94a   : > { %v3312_v27 = vsub.f32 %v6197_v35, %v3295_v59 }
 0x94c   : > { %3328 = vst.msk [vmem:[%s6213_s20 + $0x70] sm:$0xff] %vm3121_vm4, %v3312_v27 }
 0x94d PF: > { %s13_s12 = sadd.s32 1, %s4373_s12  }
 0x94e   : > { %p10_p4 = scmp.ge.s32.totalorder %s13_s12, 4  }
 0x950   :  { %12 = sbr.rel (!%p10_p4) target bundleno = 1 (0x1), region = 65 }

</bundles_post_ra>
